<compile_context>
chip_gen: v6e
topology: v6e:2x2x1
jax: 0.10.0
libtpu: 0.0.40
codegen_flags: <defaults>
</compile_context>

<pallas_src>
import jax
import jax.numpy as jnp
from jax.experimental import pallas as pl
from jax.experimental.pallas import tpu as pltpu

BN_EPS = 1e-5  # PyTorch BatchNorm1d default


def _make_kernel(resident, inv_n, compute_dtype):
    """Fused kernel. grid = (phase, tile):
       phase 0 : h = x @ W1 (MXU) + BN batch-stat accumulation (VMEM scratch)
       phase 1 : fold BN -> scale/shift, ReLU, out = a @ W2 + b2 (MXU)."""

    def kernel(x_ref, w1_ref, gamma_ref, beta_ref, w2_ref, b2_ref, o_ref,
               sum_ref, sq_ref, scale_ref, shift_ref, *h_scratch):
        phase = pl.program_id(0)
        i = pl.program_id(1)
        h_ref = h_scratch[0] if resident else None

        @pl.when((phase == 0) & (i == 0))
        def _init_stats():
            sum_ref[...] = jnp.zeros_like(sum_ref)
            sq_ref[...] = jnp.zeros_like(sq_ref)

        @pl.when(phase == 0)
        def _linear1_and_stats():
            h = jnp.dot(x_ref[...].astype(compute_dtype),
                        w1_ref[...].astype(compute_dtype),
                        preferred_element_type=jnp.float32)
            # Direct accumulator stores (no concatenate); stats never touch HBM.
            sum_ref[...] += jnp.sum(h, axis=0, keepdims=True)
            sq_ref[...] += jnp.sum(h * h, axis=0, keepdims=True)
            if resident:
                h_ref[i] = h

        @pl.when(phase == 1)
        def _bn_relu_linear2():
            @pl.when(i == 0)
            def _fold_bn():
                mean = sum_ref[...] * inv_n
                # Clamp: E[h^2] - mean^2 can go slightly negative numerically.
                var = jnp.maximum(sq_ref[...] * inv_n - mean * mean, 0.0)
                g_rstd = gamma_ref[...] * jax.lax.rsqrt(var + BN_EPS)
                scale_ref[...] = g_rstd
                shift_ref[...] = beta_ref[...] - mean * g_rstd

            if resident:
                h = h_ref[i]
            else:
                # Large-N path: recompute x @ W1 rather than spilling h to HBM.
                h = jnp.dot(x_ref[...].astype(compute_dtype),
                            w1_ref[...].astype(compute_dtype),
                            preferred_element_type=jnp.float32)
            a = jnp.maximum(h * scale_ref[...] + shift_ref[...], 0.0)
            out = jnp.dot(a.astype(compute_dtype),
                          w2_ref[...].astype(compute_dtype),
                          preferred_element_type=jnp.float32) + b2_ref[...]
            o_ref[...] = out.astype(o_ref.dtype)

    return kernel


def _vmem_limit_bytes():
    # Generation-aware: ~half of physical VMEM (=> ~32 MiB on v7x, 64 MiB v5e/v6e).
    try:
        cap = pltpu.get_tpu_info().vmem_capacity_bytes
    except Exception:
        cap = 128 << 20
    return int(min(cap // 2, 100 << 20))


def projection_head(x, w1, b1, gamma, beta, w2, b2, *, tile_n=256,
                    compute_dtype=jnp.float32):
    """x: (N, input_dim) -> (N, output_dim). Train-mode BatchNorm1d semantics."""
    n, input_dim = x.shape
    hidden_dim = w1.shape[1]
    output_dim = w2.shape[1]
    del b1  # exactly cancelled by the batch-mean subtraction of train-mode BN
    # TODO(synk): re-add b1 if this kernel is ever reused in eval mode (running stats).

    gamma = gamma.reshape(1, hidden_dim).astype(jnp.float32)
    beta = beta.reshape(1, hidden_dim).astype(jnp.float32)
    b2 = b2.reshape(1, output_dim).astype(jnp.float32)

    # Batch tiling: multiple of 8 sublanes; shrink the tile for tiny batches,
    # zero-pad ragged batches (padded rows contribute 0 to the BN sums).
    tile_n = max(8, (int(tile_n) // 8) * 8)
    tile_n = min(tile_n, ((n + 7) // 8) * 8)
    num_tiles = pl.cdiv(n, tile_n)
    n_pad = num_tiles * tile_n
    if n_pad != n:
        x = jnp.pad(x, ((0, n_pad - n), (0, 0)))

    vmem_limit = _vmem_limit_bytes()
    h_bytes = num_tiles * tile_n * hidden_dim * 4
    resident = h_bytes <= vmem_limit // 2  # keep h in VMEM scratch when it fits

    scratch = [
        pltpu.VMEM((1, hidden_dim), jnp.float32),  # batch sum
        pltpu.VMEM((1, hidden_dim), jnp.float32),  # batch sum of squares
        pltpu.VMEM((1, hidden_dim), jnp.float32),  # folded BN scale
        pltpu.VMEM((1, hidden_dim), jnp.float32),  # folded BN shift
    ]
    if resident:
        scratch.append(pltpu.VMEM((num_tiles, tile_n, hidden_dim), jnp.float32))
        # Phase 1 reads h from scratch -> pin x to block 0 (no re-fetch per step).
        x_map = lambda p, i: (i * (1 - p), 0)
    else:
        x_map = lambda p, i: (i, 0)

    kernel = _make_kernel(resident, 1.0 / n, compute_dtype)

    out = pl.pallas_call(
        kernel,
        out_shape=jax.ShapeDtypeStruct((n_pad, output_dim), jnp.float32),
        grid=(2, num_tiles),  # (phase, batch tile); phase 1 needs all of phase 0
        in_specs=[
            pl.BlockSpec((tile_n, input_dim), x_map),
            # Stationary operands: constant index_maps -> fetched once, resident
            # across all grid steps.  (On v7x with huge weights, additionally
            # setting pipeline_mode=pl.Buffered(1) would drop their second
            # pipeline buffer; omitted here for API portability.)
            pl.BlockSpec((input_dim, hidden_dim), lambda p, i: (0, 0)),
            pl.BlockSpec((1, hidden_dim), lambda p, i: (0, 0)),   # gamma
            pl.BlockSpec((1, hidden_dim), lambda p, i: (0, 0)),   # beta
            pl.BlockSpec((hidden_dim, output_dim), lambda p, i: (0, 0)),
            pl.BlockSpec((1, output_dim), lambda p, i: (0, 0)),   # b2
        ],
        # Phase 0 never writes the output; pinning its index to block 0 during
        # phase 0 avoids writing back untouched tiles before phase 1 fills them.
        out_specs=pl.BlockSpec((tile_n, output_dim), lambda p, i: (p * i, 0)),
        scratch_shapes=scratch,
        compiler_params=pltpu.CompilerParams(
            # BN couples every tile through the batch stats -> sequential grid.
            dimension_semantics=("arbitrary", "arbitrary"),
            vmem_limit_bytes=vmem_limit,
        ),
    )(x, w1, gamma, beta, w2, b2)

    return out[:n] if n_pad != n else out


def init_params(key, input_dim, hidden_dim, output_dim):
    """Deterministic PyTorch-style (uniform +/- 1/sqrt(fan_in)) init."""
    k1, k2, k3, k4 = jax.random.split(key, 4)
    bound1 = 1.0 / jnp.sqrt(input_dim)
    bound2 = 1.0 / jnp.sqrt(hidden_dim)
    w1 = jax.random.uniform(k1, (input_dim, hidden_dim), jnp.float32, -bound1, bound1)
    b1 = jax.random.uniform(k2, (1, hidden_dim), jnp.float32, -bound1, bound1)
    gamma = jnp.ones((1, hidden_dim), jnp.float32)   # BN weight init = 1
    beta = jnp.zeros((1, hidden_dim), jnp.float32)   # BN bias init = 0
    w2 = jax.random.uniform(k3, (hidden_dim, output_dim), jnp.float32, -bound2, bound2)
    b2 = jax.random.uniform(k4, (1, output_dim), jnp.float32, -bound2, bound2)
    return w1, b1, gamma, beta, w2, b2


def reference(x, w1, b1, gamma, beta, w2, b2):
    # Exact PyTorch forward (with b1; b1 cancels mathematically under train-mode BN).
    h = x @ w1 + b1
    mean = jnp.mean(h, axis=0, keepdims=True)
    var = jnp.mean((h - mean) ** 2, axis=0, keepdims=True)
    h = (h - mean) / jnp.sqrt(var + BN_EPS) * gamma + beta
    h = jnp.maximum(h, 0.0)
    return h @ w2 + b2


if __name__ == "__main__":
    # Module defaults: hidden_dim=512, output_dim=128; modest lane-dense input/batch.
    INPUT_DIM, HIDDEN_DIM, OUTPUT_DIM = 256, 512, 128

    key = jax.random.PRNGKey(0)
    kx, kp = jax.random.split(key)
    params = init_params(kp, INPUT_DIM, HIDDEN_DIM, OUTPUT_DIM)

    # 1) f32 MXU operands, tile-divisible batch (tight check)
    x = jax.random.normal(kx, (512, INPUT_DIM), jnp.float32)
    out = jax.block_until_ready(projection_head(x, *params))
    ref = reference(x, *params)
    assert out.shape == (512, OUTPUT_DIM)
    err = jnp.max(jnp.abs(out - ref))
    assert jnp.allclose(out, ref, atol=2e-4, rtol=2e-4), f"f32 max abs err {err}"

    # 2) ragged batch: exercises zero-pad + true-n BN stats + output slice
    xr = x[:384]
    out_r = jax.block_until_ready(projection_head(xr, *params))
    ref_r = reference(xr, *params)
    assert out_r.shape == (384, OUTPUT_DIM)
    err_r = jnp.max(jnp.abs(out_r - ref_r))
    assert jnp.allclose(out_r, ref_r, atol=2e-4, rtol=2e-4), f"ragged max abs err {err_r}"

    # 3) bf16 MXU operands (f32 accumulation) — looser tolerance vs f32 reference
    out_bf = jax.block_until_ready(
        projection_head(x, *params, compute_dtype=jnp.bfloat16))
    err_bf = jnp.max(jnp.abs(out_bf - ref))
    assert jnp.allclose(out_bf, ref, atol=5e-2, rtol=5e-2), f"bf16 max abs err {err_bf}"

    print("KERNEL_OK")
</pallas_src>

<mosaic_0001>
module attributes {stable_mosaic.version = 11 : i64} {
  func.func @kernel(%arg0: i32, %arg1: i32, %arg2: memref<256x256xf32, #tpu.memory_space<vmem>>, %arg3: memref<256x512xf32, #tpu.memory_space<vmem>>, %arg4: memref<1x512xf32, #tpu.memory_space<vmem>>, %arg5: memref<1x512xf32, #tpu.memory_space<vmem>>, %arg6: memref<512x128xf32, #tpu.memory_space<vmem>>, %arg7: memref<1x128xf32, #tpu.memory_space<vmem>>, %arg8: memref<256x128xf32, #tpu.memory_space<vmem>>, %arg9: memref<1x512xf32, #tpu.memory_space<vmem>>, %arg10: memref<1x512xf32, #tpu.memory_space<vmem>>, %arg11: memref<1x512xf32, #tpu.memory_space<vmem>>, %arg12: memref<1x512xf32, #tpu.memory_space<vmem>>, %arg13: memref<2x256x512xf32, #tpu.memory_space<vmem>>) attributes {dimension_semantics = [#tpu.dimension_semantics<arbitrary>, #tpu.dimension_semantics<arbitrary>], iteration_bounds = array<i64: 2, 2>, scalar_prefetch = 0 : i64, scratch_operands = 5 : i64, tpu.core_type = #tpu.core_type<tc>, window_params = [{transform_indices = @transform_0, window_bounds = array<i64: 256, 256>}, {pipeline_mode = #tpu.pipeline_mode<synchronous>, transform_indices = @transform_1, window_bounds = array<i64: 256, 512>}, {pipeline_mode = #tpu.pipeline_mode<synchronous>, transform_indices = @transform_2, window_bounds = array<i64: 1, 512>}, {pipeline_mode = #tpu.pipeline_mode<synchronous>, transform_indices = @transform_3, window_bounds = array<i64: 1, 512>}, {pipeline_mode = #tpu.pipeline_mode<synchronous>, transform_indices = @transform_4, window_bounds = array<i64: 512, 128>}, {pipeline_mode = #tpu.pipeline_mode<synchronous>, transform_indices = @transform_5, window_bounds = array<i64: 1, 128>}, {transform_indices = @transform_6, window_bounds = array<i64: 256, 128>}]} {
    %c0_i32 = arith.constant 0 : i32
    %0 = arith.cmpi eq, %arg0, %c0_i32 : i32
    %c0_i32_0 = arith.constant 0 : i32
    %1 = arith.cmpi eq, %arg1, %c0_i32_0 : i32
    %2 = arith.andi %0, %1 : i1
    %3 = arith.extui %2 : i1 to i32
    %c0_i32_1 = arith.constant 0 : i32
    %4 = arith.cmpi ne, %3, %c0_i32_1 : i32
    scf.if %4 {
      %cst = arith.constant 0.000000e+00 : f32
      %11 = vector.broadcast %cst : f32 to vector<1x512xf32>
      %c0 = arith.constant 0 : index
      %c0_5 = arith.constant 0 : index
      %12 = vector.load %arg9[%c0, %c0_5] : memref<1x512xf32, #tpu.memory_space<vmem>>, vector<1x512xf32>
      tpu.vector_store %arg9[%c0, %c0_5], %11 {strides = array<i32>} : memref<1x512xf32, #tpu.memory_space<vmem>>, vector<1x512xf32>,
      %cst_6 = arith.constant 0.000000e+00 : f32
      %13 = vector.broadcast %cst_6 : f32 to vector<1x512xf32>
      %c0_7 = arith.constant 0 : index
      %c0_8 = arith.constant 0 : index
      %14 = vector.load %arg10[%c0_7, %c0_8] : memref<1x512xf32, #tpu.memory_space<vmem>>, vector<1x512xf32>
      tpu.vector_store %arg10[%c0_7, %c0_8], %13 {strides = array<i32>} : memref<1x512xf32, #tpu.memory_space<vmem>>, vector<1x512xf32>,
    } else {
    }
    %c0_i32_2 = arith.constant 0 : i32
    %5 = arith.cmpi eq, %arg0, %c0_i32_2 : i32
    %6 = arith.extui %5 : i1 to i32
    %c0_i32_3 = arith.constant 0 : i32
    %7 = arith.cmpi ne, %6, %c0_i32_3 : i32
    scf.if %7 {
      %c0 = arith.constant 0 : index
      %c0_5 = arith.constant 0 : index
      %11 = vector.load %arg2[%c0, %c0_5] : memref<256x256xf32, #tpu.memory_space<vmem>>, vector<256x256xf32>
      %c0_6 = arith.constant 0 : index
      %c0_7 = arith.constant 0 : index
      %12 = vector.load %arg3[%c0_6, %c0_7] : memref<256x512xf32, #tpu.memory_space<vmem>>, vector<256x512xf32>
      %cst = arith.constant dense<0.000000e+00> : vector<256x512xf32>
      %13 = tpu.matmul %11, %12, %cst {dimension_numbers = #tpu.dot_dimension_numbers<[1], [0], [0], [1], [0, 0, 1, 1], [], []>} : vector<256x256xf32>, vector<256x512xf32>, vector<256x512xf32> -> vector<256x512xf32>
      %c0_8 = arith.constant 0 : index
      %c0_9 = arith.constant 0 : index
      %14 = vector.load %arg9[%c0_8, %c0_9] : memref<1x512xf32, #tpu.memory_space<vmem>>, vector<1x512xf32>
      %cst_10 = arith.constant dense<0.000000e+00> : vector<512xf32>
      %15 = vector.multi_reduction <add>, %13, %cst_10 [0] : vector<256x512xf32> to vector<512xf32>
      %16 = vector.shape_cast %15 : vector<512xf32> to vector<1x512xf32>
      %17 = arith.addf %14, %16 : vector<1x512xf32>
      %c0_11 = arith.constant 0 : index
      %c0_12 = arith.constant 0 : index
      %18 = vector.load %arg9[%c0_11, %c0_12] : memref<1x512xf32, #tpu.memory_space<vmem>>, vector<1x512xf32>
      tpu.vector_store %arg9[%c0_11, %c0_12], %17 {strides = array<i32>} : memref<1x512xf32, #tpu.memory_space<vmem>>, vector<1x512xf32>,
      %c0_13 = arith.constant 0 : index
      %c0_14 = arith.constant 0 : index
      %19 = vector.load %arg10[%c0_13, %c0_14] : memref<1x512xf32, #tpu.memory_space<vmem>>, vector<1x512xf32>
      %20 = arith.mulf %13, %13 : vector<256x512xf32>
      %cst_15 = arith.constant dense<0.000000e+00> : vector<512xf32>
      %21 = vector.multi_reduction <add>, %20, %cst_15 [0] : vector<256x512xf32> to vector<512xf32>
      %22 = vector.shape_cast %21 : vector<512xf32> to vector<1x512xf32>
      %23 = arith.addf %19, %22 : vector<1x512xf32>
      %c0_16 = arith.constant 0 : index
      %c0_17 = arith.constant 0 : index
      %24 = vector.load %arg10[%c0_16, %c0_17] : memref<1x512xf32, #tpu.memory_space<vmem>>, vector<1x512xf32>
      tpu.vector_store %arg10[%c0_16, %c0_17], %23 {strides = array<i32>} : memref<1x512xf32, #tpu.memory_space<vmem>>, vector<1x512xf32>,
      %25 = arith.index_cast %arg1 : i32 to index
      %c0_18 = arith.constant 0 : index
      %c0_19 = arith.constant 0 : index
      %26 = vector.load %arg13[%25, %c0_18, %c0_19] : memref<2x256x512xf32, #tpu.memory_space<vmem>>, vector<1x256x512xf32>
      %27 = vector.shape_cast %26 : vector<1x256x512xf32> to vector<256x512xf32>
      %28 = vector.shape_cast %13 : vector<256x512xf32> to vector<1x256x512xf32>
      tpu.vector_store %arg13[%25, %c0_18, %c0_19], %28 {strides = array<i32>} : memref<2x256x512xf32, #tpu.memory_space<vmem>>, vector<1x256x512xf32>,
    } else {
    }
    %c1_i32 = arith.constant 1 : i32
    %8 = arith.cmpi eq, %arg0, %c1_i32 : i32
    %9 = arith.extui %8 : i1 to i32
    %c0_i32_4 = arith.constant 0 : i32
    %10 = arith.cmpi ne, %9, %c0_i32_4 : i32
    scf.if %10 {
      %c0_i32_5 = arith.constant 0 : i32
      %11 = arith.cmpi eq, %arg1, %c0_i32_5 : i32
      %12 = arith.extui %11 : i1 to i32
      %c0_i32_6 = arith.constant 0 : i32
      %13 = arith.cmpi ne, %12, %c0_i32_6 : i32
      scf.if %13 {
        %c0_19 = arith.constant 0 : index
        %c0_20 = arith.constant 0 : index
        %31 = vector.load %arg9[%c0_19, %c0_20] : memref<1x512xf32, #tpu.memory_space<vmem>>, vector<1x512xf32>
        %cst_21 = arith.constant 0.001953125 : f32
        %32 = vector.broadcast %cst_21 : f32 to vector<1x512xf32>
        %33 = arith.mulf %31, %32 : vector<1x512xf32>
        %c0_22 = arith.constant 0 : index
        %c0_23 = arith.constant 0 : index
        %34 = vector.load %arg10[%c0_22, %c0_23] : memref<1x512xf32, #tpu.memory_space<vmem>>, vector<1x512xf32>
        %cst_24 = arith.constant 0.001953125 : f32
        %35 = vector.broadcast %cst_24 : f32 to vector<1x512xf32>
        %36 = arith.mulf %34, %35 : vector<1x512xf32>
        %37 = arith.mulf %33, %33 : vector<1x512xf32>
        %38 = arith.subf %36, %37 : vector<1x512xf32>
        %cst_25 = arith.constant 0.000000e+00 : f32
        %39 = vector.broadcast %cst_25 : f32 to vector<1x512xf32>
        %40 = arith.maximumf %38, %39 : vector<1x512xf32>
        %c0_26 = arith.constant 0 : index
        %c0_27 = arith.constant 0 : index
        %41 = vector.load %arg4[%c0_26, %c0_27] : memref<1x512xf32, #tpu.memory_space<vmem>>, vector<1x512xf32>
        %cst_28 = arith.constant 9.99999974E-6 : f32
        %42 = vector.broadcast %cst_28 : f32 to vector<1x512xf32>
        %43 = arith.addf %40, %42 : vector<1x512xf32>
        %44 = math.rsqrt %43 : vector<1x512xf32>
        %45 = arith.mulf %41, %44 : vector<1x512xf32>
        %c0_29 = arith.constant 0 : index
        %c0_30 = arith.constant 0 : index
        %46 = vector.load %arg11[%c0_29, %c0_30] : memref<1x512xf32, #tpu.memory_space<vmem>>, vector<1x512xf32>
        tpu.vector_store %arg11[%c0_29, %c0_30], %45 {strides = array<i32>} : memref<1x512xf32, #tpu.memory_space<vmem>>, vector<1x512xf32>,
        %c0_31 = arith.constant 0 : index
        %c0_32 = arith.constant 0 : index
        %47 = vector.load %arg5[%c0_31, %c0_32] : memref<1x512xf32, #tpu.memory_space<vmem>>, vector<1x512xf32>
        %48 = arith.mulf %33, %45 : vector<1x512xf32>
        %49 = arith.subf %47, %48 : vector<1x512xf32>
        %c0_33 = arith.constant 0 : index
        %c0_34 = arith.constant 0 : index
        %50 = vector.load %arg12[%c0_33, %c0_34] : memref<1x512xf32, #tpu.memory_space<vmem>>, vector<1x512xf32>
        tpu.vector_store %arg12[%c0_33, %c0_34], %49 {strides = array<i32>} : memref<1x512xf32, #tpu.memory_space<vmem>>, vector<1x512xf32>,
      } else {
      }
      %14 = arith.index_cast %arg1 : i32 to index
      %c0 = arith.constant 0 : index
      %c0_7 = arith.constant 0 : index
      %15 = vector.load %arg13[%14, %c0, %c0_7] : memref<2x256x512xf32, #tpu.memory_space<vmem>>, vector<1x256x512xf32>
      %16 = vector.shape_cast %15 : vector<1x256x512xf32> to vector<256x512xf32>
      %c0_8 = arith.constant 0 : index
      %c0_9 = arith.constant 0 : index
      %17 = vector.load %arg11[%c0_8, %c0_9] : memref<1x512xf32, #tpu.memory_space<vmem>>, vector<1x512xf32>
      %18 = vector.broadcast %17 : vector<1x512xf32> to vector<256x512xf32>
      %19 = arith.mulf %16, %18 : vector<256x512xf32>
      %c0_10 = arith.constant 0 : index
      %c0_11 = arith.constant 0 : index
      %20 = vector.load %arg12[%c0_10, %c0_11] : memref<1x512xf32, #tpu.memory_space<vmem>>, vector<1x512xf32>
      %21 = vector.broadcast %20 : vector<1x512xf32> to vector<256x512xf32>
      %22 = arith.addf %19, %21 : vector<256x512xf32>
      %cst = arith.constant 0.000000e+00 : f32
      %23 = vector.broadcast %cst : f32 to vector<256x512xf32>
      %24 = arith.maximumf %22, %23 : vector<256x512xf32>
      %c0_12 = arith.constant 0 : index
      %c0_13 = arith.constant 0 : index
      %25 = vector.load %arg6[%c0_12, %c0_13] : memref<512x128xf32, #tpu.memory_space<vmem>>, vector<512x128xf32>
      %cst_14 = arith.constant dense<0.000000e+00> : vector<256x128xf32>
      %26 = tpu.matmul %24, %25, %cst_14 {dimension_numbers = #tpu.dot_dimension_numbers<[1], [0], [0], [1], [0, 0, 1, 1], [], []>} : vector<256x512xf32>, vector<512x128xf32>, vector<256x128xf32> -> vector<256x128xf32>
      %c0_15 = arith.constant 0 : index
      %c0_16 = arith.constant 0 : index
      %27 = vector.load %arg7[%c0_15, %c0_16] : memref<1x128xf32, #tpu.memory_space<vmem>>, vector<1x128xf32>
      %28 = vector.broadcast %27 : vector<1x128xf32> to vector<256x128xf32>
      %29 = arith.addf %26, %28 : vector<256x128xf32>
      %c0_17 = arith.constant 0 : index
      %c0_18 = arith.constant 0 : index
      %30 = vector.load %arg8[%c0_17, %c0_18] : memref<256x128xf32, #tpu.memory_space<vmem>>, vector<256x128xf32>
      tpu.vector_store %arg8[%c0_17, %c0_18], %29 {strides = array<i32>} : memref<256x128xf32, #tpu.memory_space<vmem>>, vector<256x128xf32>,
    } else {
    }
    return
  }
  func.func @transform_0(%arg0: i32, %arg1: i32) -> (i32, i32) {
    %c1_i32 = arith.constant 1 : i32
    %0 = arith.subi %c1_i32, %arg0 : i32
    %1 = arith.muli %arg1, %0 : i32
    %c0_i32 = arith.constant 0 : i32
    %c0_i32_0 = arith.constant 0 : i32
    return %1, %c0_i32 : i32, i32
  }
  func.func @transform_1(%arg0: i32, %arg1: i32) -> (i32, i32) {
    %c0_i32 = arith.constant 0 : i32
    %c0_i32_0 = arith.constant 0 : i32
    %c0_i32_1 = arith.constant 0 : i32
    return %c0_i32, %c0_i32_0 : i32, i32
  }
  func.func @transform_2(%arg0: i32, %arg1: i32) -> (i32, i32) {
    %c0_i32 = arith.constant 0 : i32
    %c0_i32_0 = arith.constant 0 : i32
    %c0_i32_1 = arith.constant 0 : i32
    return %c0_i32, %c0_i32_0 : i32, i32
  }
  func.func @transform_3(%arg0: i32, %arg1: i32) -> (i32, i32) {
    %c0_i32 = arith.constant 0 : i32
    %c0_i32_0 = arith.constant 0 : i32
    %c0_i32_1 = arith.constant 0 : i32
    return %c0_i32, %c0_i32_0 : i32, i32
  }
  func.func @transform_4(%arg0: i32, %arg1: i32) -> (i32, i32) {
    %c0_i32 = arith.constant 0 : i32
    %c0_i32_0 = arith.constant 0 : i32
    %c0_i32_1 = arith.constant 0 : i32
    return %c0_i32, %c0_i32_0 : i32, i32
  }
  func.func @transform_5(%arg0: i32, %arg1: i32) -> (i32, i32) {
    %c0_i32 = arith.constant 0 : i32
    %c0_i32_0 = arith.constant 0 : i32
    %c0_i32_1 = arith.constant 0 : i32
    return %c0_i32, %c0_i32_0 : i32, i32
  }
  func.func @transform_6(%arg0: i32, %arg1: i32) -> (i32, i32) {
    %0 = arith.muli %arg0, %arg1 : i32
    %c0_i32 = arith.constant 0 : i32
    %c0_i32_0 = arith.constant 0 : i32
    return %0, %c0_i32 : i32, i32
  }
}

</mosaic_0001>

<bundles_post_ra>
// kernel: tpu_custom_call.1
= control target key start
LH: loop header
LB: loop body
LE: loop exit
PB: predicated region body
PF: predicated region fallthrough
CT: control target
= control target key end

     0   :  { %s4989_s0 = inlined_call_operand.hbm [shape: f32[512,256], index: 0, kind: input, shape index: {}]   ;;  %s4990_s1 = inlined_call_operand.hbm [shape: f32[256,512], index: 1, kind: input, shape index: {}]   ;;  %s4991_s2 = inlined_call_operand.hbm [shape: f32[1,512], index: 2, kind: input, shape index: {}]   ;;  %s4992_s3 = inlined_call_operand.vmem [shape: f32[1,512], index: 3, kind: input, shape index: {}]   ;;  %s4993_s4 = inlined_call_operand.hbm [shape: f32[512,128], index: 4, kind: input, shape index: {}]   ;;  %s4994_s5 = inlined_call_operand.vmem [shape: f32[1,128], index: 5, kind: input, shape index: {}]   ;;  %s4995_s6 = inlined_call_operand.hbm [shape: f32[512,128], index: 6, kind: output, shape index: {}]  }
   0x1   :  { %5007 = sst [smem:[#allocation27_spill]] %s4990_s1 }
   0x2   :  { %5008 = sst [smem:[#allocation28_spill]] %s4991_s2 }
   0x3   :  { %5009 = sst [smem:[#allocation29_spill]] %s4992_s3 }
   0x4   :  { %5010 = sst [smem:[#allocation30_spill]] %s4993_s4 }
   0x5   :  { %5011 = sst [smem:[#allocation31_spill]] %s4994_s5 }
   0x6   :  { %5012 = sst [smem:[#allocation32_spill]] %s4995_s6 }
   0x7   :  { %11 = vsyncpa [#allocation8], 0 }
   0x8   :  { %13 = vsyncpa [#allocation8 + $0x1], 0 }
   0x9   :  { %14 = vsyncpa [#allocation11], 0 }
   0xa   :  { %15 = vsyncpa [#allocation14], 0 }
   0xb   :  { %16 = vsyncpa [#allocation9], 0 }
   0xc   :  { %18 = vsyncpa [#allocation9 + $0x1], 0  ;;  %s3421_s21 = smov 0   ;;  %s3423_s22 = smov 0  }
   0xd   :  { %s3425_s23 = smov 0   ;;  %s3427_s24 = smov 0  }
   0xe   :  { %s3429_s25 = smov 0   ;;  %s3431_s26 = smov 0  }
   0xf   :  { %s3433_s27 = smov 0   ;;  %s3435_s28 = smov 0  }
  0x10   :  { %s3437_s29 = smov 0   ;;  %s3439_s30 = smov 0  }
  0x11   :  { %s3441_s7 = smov 0  }
  0x12 LB: > { %5013 = sst [smem:[#allocation20_spill]] %s3328_s21  ;;  %s2953_s8 = sadd.s32 4294967295, %s3368_s7   ;;  %s3368_s7 = sphi %s3441_s7, %s24_s7   ;;  %s3364_s30 = sphi %s3439_s30, %s5060_s30   ;;  %s3360_s29 = sphi %s3437_s29, %s5059_s29   ;;  %s3356_s28 = sphi %s3435_s28, %s5052_s28   ;;  %s3352_s27 = sphi %s3433_s27, %s5051_s27   ;;  %s3348_s26 = sphi %s3431_s26, %s5058_s26   ;;  %s3344_s25 = sphi %s3429_s25, %s5057_s25   ;;  %s3340_s24 = sphi %s3427_s24, %s5056_s24   ;;  %s3336_s23 = sphi %s3425_s23, %s5055_s23   ;;  %s3332_s22 = sphi %s3423_s22, %s5054_s22   ;;  %s3328_s21 = sphi %s3421_s21, %s5053_s21  }
  0x13   : > { %5014 = sst [smem:[#allocation21_spill]] %s3352_s27  ;;  %s2954_s9 = sadd.s32 4294967294, %s3368_s7  }
  0x14   : > { %5015 = sst [smem:[#allocation22_spill]] %s3356_s28  ;;  %p60_p0 = scmp.ne.s32.totalorder %s3344_s25, %s3340_s24 }
  0x15   : > { %5016 = sst [smem:[#allocation23_spill]] %s3360_s29  ;;  %p3477_p1 = scmp.eq.s32.totalorder %s2953_s8, 0 }
  0x16   : > { %5017 = sst [smem:[#allocation24_spill]] %s3364_s30  ;;  %p190_p2 = scmp.ne.s32.totalorder %s3336_s23, %s3332_s22 }
  0x17   : > { %s5018_s10 = scalar_select %p3477_p1, 1, 0 }
  0x18   : > { %p3486_p3 = por %p3477_p1, %p60_p0  ;;  %p191_p4 = scmp.eq.s32.totalorder %s2953_s8, 3 }
  0x19   : > { %p196_p5 = scmp.ne.s32.totalorder %s3332_s22, %s3328_s21  ;;  %p197_p6 = scmp.eq.s32.totalorder %s2954_s9, 3 }
  0x1a   : > { %s5019_s12 = scalar_select %p3486_p3, 1, 0 }
  0x1b   : > { %p3492_p7 = por %p191_p4, %p190_p2  ;;  %p2955_p8 = scmp.ge.s32.totalorder %s3368_s7, 1 }
  0x1c   : > { %p3497_p9 = por %p197_p6, %p196_p5  ;;  %p204_p10 = scmp.lt.s32.totalorder %s3368_s7, 5 }
  0x1d   : > { %s5020_s13 = scalar_select %p3492_p7, 1, 0 }
  0x1e   : > { %s5022_s14 = scalar_select %p3497_p9, 1, 0 }
  0x1f   : > { %5021 = sst [smem:[#allocation25_spill]] %s5020_s13  ;;  %p3502_p11 = pnand %p2955_p8, %p204_p10 }
  0x20   : > { %5023 = sst [smem:[#allocation26_spill]] %s5022_s14  ;;  %s3370_s16 = smov [#allocation10]  }
  0x21   : > { %s216_s17 = sshll.u32 %s3370_s16, 4  ;;  %p3004_p12 = pneg %p3502_p11  ;;  %s217_s17 = int_to_ptr.vmem [resolvable:$true] %s216_s17 }
  0x22   : > { %s3371_s19 = smov [#allocation12]   ;;  %s3372_s24 = smov [#allocation13]  }
  0x23   : > { %p3510_p13 = pnand %p3004_p12, %p3477_p1  ;;  %s230_s20 = sshll.u32 %s3371_s19, 4  ;;  %s231_s20 = int_to_ptr.vmem [resolvable:$true] %s230_s20 }
  0x24   : > { %s243_s8 = sshll.u32 %s3372_s24, 4  ;;  %s3145_s9 = scalar_lea.vmem %s217_s17, 16384  ;;  %s244_s8 = int_to_ptr.vmem [resolvable:$true] %s243_s8 }
  0x25   : > { %p3136_p0 = pneg %p3510_p13  ;;  %p3146_p2 = scmp.ne.s32.totalorder %s217_s17, %s3145_s9 }
  0x26   : > { %p3153_p6 = scmp.lt.s32.totalorder %s217_s17, %s217_s17  ;;  %p3154_p8 = scmp.lt.s32.totalorder %s3145_s9, %s3145_s9 }
  0x27   : > { %p3148_p4 = pnand %p3146_p2, %p3136_p0 }
  0x28   : > { %p3155_p10 = por %p3154_p8, %p3153_p6 }
  0x29   : > { %p3149_p5 = pneg %p3148_p4 }
  0x2b   : > { %p3156_p12 = pnand %p3155_p10, %p3149_p5 }
  0x2d   : > { %3159 = shalt.err (!%p3156_p12)
}
  0x2e   : > { %s3373_s16 = smov 512   ;;  %s3374_s19 = smov 32  }
  0x2f   : > { %s5026_s1 = sld [smem:[#allocation27_spill]]  ;;  %s3171_s14 = scalar_lea.vmem %s231_s20, 64 }
  0x30   : > { %p3172_p9 = scmp.ne.s32.totalorder %s231_s20, %s3171_s14  ;;  %p3179_p7 = scmp.lt.s32.totalorder %s231_s20, %s231_s20 }
  0x31   : > { %p3180_p1 = scmp.lt.s32.totalorder %s3171_s14, %s3171_s14 }
  0x32   : > { %p3174_p2 = pnand %p3172_p9, %p3136_p0 }
  0x33   : > { %p3181_p6 = por %p3180_p1, %p3179_p7 }
  0x34   : > { %p3175_p4 = pneg %p3174_p2 }
  0x35   : > { %3007 = dma.hbm_to_vmem [thread:$0]  (!%p3510_p13), %s5026_s1, 16384, %s217_s17, [#allocation11], %s3373_s16, %s3373_s16, %s3374_s19  }
  0x36   : > { %p3182_p5 = pnand %p3181_p6, %p3175_p4 }
  0x38   : > { %3185 = shalt.err (!%p3182_p5)
}
  0x39   : > { %s5027_s2 = sld [smem:[#allocation28_spill]]  ;;  %s3197_s11 = scalar_lea.vmem %s244_s8, 8192 }
  0x3a   : > { %p3198_p8 = scmp.ne.s32.totalorder %s244_s8, %s3197_s11  ;;  %p3205_p12 = scmp.lt.s32.totalorder %s244_s8, %s244_s8 }
  0x3b   : > { %p3206_p2 = scmp.lt.s32.totalorder %s3197_s11, %s3197_s11 }
  0x3c   : > { %p3200_p10 = pnand %p3198_p8, %p3136_p0 }
  0x3d   : > { %p3207_p3 = por %p3206_p2, %p3205_p12 }
  0x3e   : > { %p3201_p9 = pneg %p3200_p10 }
  0x3f   : > { %3010 = dma.hbm_to_vmem [thread:$0]  (!%p3510_p13), %s5027_s2, 64, %s231_s20, [#allocation11]  }
  0x40   : > { %p3208_p1 = pnand %p3207_p3, %p3201_p9 }
  0x42   : > { %3211 = shalt.err (!%p3208_p1)
}
  0x43   : > { %s3375_s14 = smov 128   ;;  %s3376_s21 = smov 8  }
  0x44   : > { %s5028_s4 = sld [smem:[#allocation30_spill]]  ;;  %s33_s16 = sadd.s32 1, %s3360_s29 }
  0x45   : > { %p34_p3 = scmp.ge.s32.totalorder %s33_s16, 2  ;;  %s36_s19 = sadd.s32 1, %s3364_s30 }
  0x46   : > { %s40_s24 = ssub.s32 1, %s3364_s30  ;;  %s47_s9 = sadd.s32 1, %s3348_s26 }
  0x47   : > { %s5062_s16 = smov (%p34_p3, %s33_s16), 0  ;;  %s5064_s19 = smov (!%p34_p3, %s36_s19), %s3364_s30 }
  0x48   : > { %s41_s11 = smul.u32 %s3360_s29, %s40_s24  ;;  %p54_p7 = scmp.ne.s32.totalorder %s3348_s26, %s3344_s25 }
  0x49   : > { %p38_p0 = scmp.ge.s32.totalorder %s5064_s19, 2  ;;  %p55_p4 = scmp.eq.s32.totalorder %s3368_s7, 0 }
  0x4a   : > { %3013 = dma.hbm_to_vmem [thread:$0]  (!%p3510_p13), %s5028_s4, 8192, %s244_s8, [#allocation14], %s3375_s14, %s3375_s14, %s3376_s21  }
  0x4b   : > { %s175_s18 = smul.u32 %s3360_s29, %s3364_s30  ;;  %p3025_p13 = scmp.lt.s32.totalorder %s3368_s7, 4 }
  0x4c   : > { %s5066_s19 = smov (%p38_p0, %s5064_s19), 0  ;;  %p3556_p6 = por %p55_p4, %p54_p7 }
  0x4d   : > { %s260_s14 = sand.u32 1, %s3348_s26   ;;  %s42_s21 = ssub.s32 1, %s5066_s19 }
  0x4e   : > { %s176_s17 = smul.u32 %s5066_s19, %s5062_s16  ;;  %s2960_s1 = sshll.u32 %s260_s14, 9 }
  0x4f   : > { %s43_s20 = smul.u32 %s42_s21, %s5062_s16  ;;  %s5030_s4 = sadd.s32 1, %s3336_s23 }
  0x50   : > { %s177_s24 = ssub.s32 %s175_s18, %s176_s17  ;;  %s2984_s6 = sshll.u32 %s41_s11, 13 }
  0x51   : > { %s44_s2 = ssub.s32 %s41_s11, %s43_s20  ;;  %p178_p5 = scmp.eq.s32.totalorder %s177_s24, 0 }
  0x52   : > { %p45_p8 = scmp.eq.s32.totalorder %s44_s2, 0  ;;  %s264_s13 = scalar_lea.vmem [#allocation7], %s2960_s1 }
  0x53   : > { %s3568_s30 = scalar_select %p178_p5, %s3336_s23, %s5030_s4  }
  0x54   : > { %s3571_s29 = scalar_select %p45_p8, %s3348_s26, %s47_s9  }
  0x55   : > { %s274_s5 = sshll.u32 %s264_s13, 4  ;;  %s273_s28 = scalar_lea.hbm %s4989_s0, %s2984_s6  ;;  %s275_s5 = int_to_ptr.vmem [resolvable:$true] %s274_s5 }
  0x56   : > { %p3580_p10 = pnand %p3025_p13, %p3556_p6  ;;  %s261_s2 = scalar_lea.sflag [#allocation8], %s260_s14 }
  0x57   : > { %s3225_s4 = scalar_lea.vmem %s275_s5, 8192  ;;  %s3377_s1 = smov [#allocation7]  }
  0x58   : > { %p3214_p9 = pneg %p3580_p10  ;;  %p3226_p12 = scmp.ne.s32.totalorder %s275_s5, %s3225_s4 }
  0x59   : > { %s3230_s13 = sshll.u32 %s3377_s1, 4  ;;  %s3231_s13 = int_to_ptr.vmem [resolvable:$false] %s3230_s13 }
  0x5a   : > { %p3228_p2 = pnand %p3226_p12, %p3214_p9  ;;  %s3232_s3 = scalar_lea.vmem %s3231_s13, 16384 }
  0x5b   : > { %p3233_p3 = scmp.lt.s32.totalorder %s275_s5, %s3231_s13  ;;  %p3234_p7 = scmp.lt.s32.totalorder %s3232_s3, %s3225_s4 }
  0x5c   : > { %p3229_p1 = pneg %p3228_p2 }
  0x5d   : > { %p3235_p0 = por %p3234_p7, %p3233_p3 }
  0x5f   : > { %p3236_p4 = pnand %p3235_p0, %p3229_p1 }
  0x61   : > { %3239 = shalt.err (!%p3236_p4)
}
  0x62   : > { %s3378_s6 = smov 256   ;;  %s3379_s27 = smov 16  }
  0x63   : > { %3017 = dma.hbm_to_vmem [thread:$0]  (!%p3580_p10), %s273_s28, 8192, %s275_s5, %s261_s2, %s3378_s6, %s3378_s6, %s3379_s27  }
  0x64   : > { %286 = sbr.rel (%p3502_p11) target bundleno = 1026 (0x402), region = 44  ;;  %s288_s9 = sand.u32 (!%p3502_p11), 1, %s3344_s25  }
  0x65   : > { %s2965_s11 = sshll.u32 (!%p3502_p11), %s288_s9, 9  ;;  %s289_s8 = scalar_lea.sflag (!%p3502_p11), [#allocation8], %s288_s9 }
  0x66   : > { %s3591_s14 = scalar_lea.vmem (!%p3502_p11), [#allocation7], %s2965_s11  ;;  %p5032_p13 = scmp.ne.s32.totalorder (!%p3502_p11), %s5019_s12, 0 }
  0x69   : > { %3311 = dma.done.wait (%p5032_p13), %s289_s8, 8192  }
  0x6a   : > { %3313 = vsyncadd (%p5032_p13), %s289_s8, 4294959104  ;;  %p5033_p6 = scmp.ne.s32.totalorder %s5018_s10, 0 }
  0x6c   : > { %3315 = dma.done.wait (%p5033_p6), [#allocation11], 16448  }
  0x6d   : > { %3317 = vsyncadd (%p5033_p6), [#allocation11], 4294950848 }
  0x6e   : > { %3319 = dma.done.wait (%p5033_p6), [#allocation14], 8192  }
  0x6f   : > { %3321 = vsyncadd (%p5033_p6), [#allocation14], 4294959104  ;;  %s5034_s5 = sld [smem:[#allocation22_spill]]  ;;  %s330_s15 = sand.u32 1, %s3332_s22  }
  0x70   : > { %s5035_s28 = sld [smem:[#allocation21_spill]]  ;;  %s2969_s12 = sshll.u32 %s330_s15, 8 }
  0x71   : > { %s3610_s21 = scalar_lea.vmem [#allocation15], %s2969_s12 }
  0x75   : > { %p338_p11 = scmp.eq.s32.totalorder %s5034_s5, 0 }
  0x76   : > { %p339_p5 = scmp.eq.s32.totalorder %s5035_s28, 0 }
  0x78   : > { %p340_p8 = pnand %p339_p5, %p338_p11 }
  0x7a   : > { %343 = sbr.rel (%p340_p8) target bundleno = 131 (0x83), region = 64 }
  0x7f   : > { %v344_v0 = vlaneseq  ;;  %v3380_v1 = vmov 0.0  }
  0x81   : > { %vm346_vm0 = vcmp.lt.s32.totalorder %v344_v0, 512 }
  0x82   : > { %348 = vst.msk [vmem:[#allocation2] sm:$0xf] %vm346_vm0, %v3380_v1  ;;  %349 = vst.msk [vmem:[#allocation3] sm:$0xf] %vm346_vm0, %v3380_v1 }
  0x83 PF: > { %s5036_s10 = sld [smem:[#allocation22_spill]] }
  0x89   : > { %p2970_p10 = scmp.ne.s32.totalorder %s5036_s10, 0 }
  0x8a   : > { %s5037_s17 = sld [smem:[#allocation21_spill]] (!%p2970_p10) }
  0x8b   : > { %352 = sbr.rel (%p2970_p10) target bundleno = 557 (0x22d), region = 68 }
  0x90   : > { %v478_v2 = vld [vmem:[#allocation10 + $0x1e8] sm:$0xff]  ;;  %v480_v3 = vld [vmem:[#allocation10 + $0x1f8] sm:$0xff]  ;;  %v477_v4 = vld [vmem:[#allocation10 + $0x1e0] sm:$0xff]  ;;  %s2985_s20 = sshll.u32 %s5037_s17, 10 }
  0x91   : > { %545 = vmatprep.subr.mxu0 %v478_v2  ;;  %802 = vmatprep.subr.mxu1 %v480_v3  ;;  %v479_v5 = vld [vmem:[#allocation10 + $0x1f0] sm:$0xff]  ;;  %v474_v6 = vld [vmem:[#allocation10 + $0x1c8] sm:$0xff]  ;;  %v476_v7 = vld [vmem:[#allocation10 + $0x1d8] sm:$0xff]  ;;  %s3682_s24 = scalar_lea.vmem [#allocation6], %s2985_s20 }
  0x92   : > { %546 = vmatpush1.msra.mxu0 %v477_v4  ;;  %803 = vmatpush1.msra.mxu1 %v479_v5  ;;  %v473_v8 = vld [vmem:[#allocation10 + $0x1c0] sm:$0xff]  ;;  %v475_v9 = vld [vmem:[#allocation10 + $0x1d0] sm:$0xff]  ;;  %v470_v10 = vld [vmem:[#allocation10 + $0x1a8] sm:$0xff] }
  0x93   : > { %547 = vmatprep.subr.mxu0 %v474_v6  ;;  %804 = vmatprep.subr.mxu1 %v476_v7  ;;  %v472_v11 = vld [vmem:[#allocation10 + $0x1b8] sm:$0xff]  ;;  %v469_v12 = vld [vmem:[#allocation10 + $0x1a0] sm:$0xff]  ;;  %v471_v13 = vld [vmem:[#allocation10 + $0x1b0] sm:$0xff] }
  0x94   : > { %548 = vmatpush1.msra.mxu0 %v473_v8  ;;  %805 = vmatpush1.msra.mxu1 %v475_v9  ;;  %v466_v14 = vld [vmem:[#allocation10 + $0x188] sm:$0xff]  ;;  %v468_v15 = vld [vmem:[#allocation10 + $0x198] sm:$0xff]  ;;  %v465_v16 = vld [vmem:[#allocation10 + $0x180] sm:$0xff] }
  0x95   : > { %549 = vmatprep.subr.mxu0 %v470_v10  ;;  %806 = vmatprep.subr.mxu1 %v472_v11  ;;  %v467_v17 = vld [vmem:[#allocation10 + $0x190] sm:$0xff]  ;;  %v462_v18 = vld [vmem:[#allocation10 + $0x168] sm:$0xff]  ;;  %v464_v19 = vld [vmem:[#allocation10 + $0x178] sm:$0xff] }
  0x96   : > { %550 = vmatpush1.msra.mxu0 %v469_v12  ;;  %807 = vmatpush1.msra.mxu1 %v471_v13  ;;  %v461_v20 = vld [vmem:[#allocation10 + $0x160] sm:$0xff]  ;;  %v463_v21 = vld [vmem:[#allocation10 + $0x170] sm:$0xff]  ;;  %v458_v22 = vld [vmem:[#allocation10 + $0x148] sm:$0xff] }
  0x97   : > { %551 = vmatprep.subr.mxu0 %v466_v14  ;;  %808 = vmatprep.subr.mxu1 %v468_v15  ;;  %v460_v23 = vld [vmem:[#allocation10 + $0x158] sm:$0xff]  ;;  %v457_v24 = vld [vmem:[#allocation10 + $0x140] sm:$0xff]  ;;  %v459_v25 = vld [vmem:[#allocation10 + $0x150] sm:$0xff] }
  0x98   : > { %552 = vmatpush1.msra.mxu0 %v465_v16  ;;  %809 = vmatpush1.msra.mxu1 %v467_v17  ;;  %v454_v26 = vld [vmem:[#allocation10 + $0x128] sm:$0xff]  ;;  %v456_v27 = vld [vmem:[#allocation10 + $0x138] sm:$0xff]  ;;  %v453_v28 = vld [vmem:[#allocation10 + $0x120] sm:$0xff] }
  0x99   : > { %553 = vmatprep.subr.mxu0 %v462_v18  ;;  %810 = vmatprep.subr.mxu1 %v464_v19  ;;  %v455_v29 = vld [vmem:[#allocation10 + $0x130] sm:$0xff]  ;;  %v450_v30 = vld [vmem:[#allocation10 + $0x108] sm:$0xff]  ;;  %v452_v31 = vld [vmem:[#allocation10 + $0x118] sm:$0xff] }
  0x9a   : > { %554 = vmatpush1.msra.mxu0 %v461_v20  ;;  %811 = vmatpush1.msra.mxu1 %v463_v21  ;;  %v449_v32 = vld [vmem:[#allocation10 + $0x100] sm:$0xff]  ;;  %v451_v33 = vld [vmem:[#allocation10 + $0x110] sm:$0xff]  ;;  %v446_v34 = vld [vmem:[#allocation10 + $0xe8] sm:$0xff] }
  0x9b   : > { %555 = vmatprep.subr.mxu0 %v458_v22  ;;  %812 = vmatprep.subr.mxu1 %v460_v23  ;;  %v448_v35 = vld [vmem:[#allocation10 + $0xf8] sm:$0xff]  ;;  %v445_v36 = vld [vmem:[#allocation10 + $0xe0] sm:$0xff]  ;;  %v447_v37 = vld [vmem:[#allocation10 + $0xf0] sm:$0xff] }
  0x9c   : > { %556 = vmatpush1.msra.mxu0 %v457_v24  ;;  %813 = vmatpush1.msra.mxu1 %v459_v25  ;;  %v442_v38 = vld [vmem:[#allocation10 + $0xc8] sm:$0xff]  ;;  %v444_v39 = vld [vmem:[#allocation10 + $0xd8] sm:$0xff]  ;;  %v441_v40 = vld [vmem:[#allocation10 + $0xc0] sm:$0xff] }
  0x9d   : > { %557 = vmatprep.subr.mxu0 %v454_v26  ;;  %814 = vmatprep.subr.mxu1 %v456_v27  ;;  %v443_v41 = vld [vmem:[#allocation10 + $0xd0] sm:$0xff]  ;;  %v438_v42 = vld [vmem:[#allocation10 + $0xa8] sm:$0xff]  ;;  %v440_v43 = vld [vmem:[#allocation10 + $0xb8] sm:$0xff] }
  0x9e   : > { %558 = vmatpush1.msra.mxu0 %v453_v28  ;;  %815 = vmatpush1.msra.mxu1 %v455_v29  ;;  %v437_v44 = vld [vmem:[#allocation10 + $0xa0] sm:$0xff]  ;;  %v439_v45 = vld [vmem:[#allocation10 + $0xb0] sm:$0xff]  ;;  %v434_v46 = vld [vmem:[#allocation10 + $0x88] sm:$0xff] }
  0x9f   : > { %559 = vmatprep.subr.mxu0 %v450_v30  ;;  %816 = vmatprep.subr.mxu1 %v452_v31  ;;  %v436_v47 = vld [vmem:[#allocation10 + $0x98] sm:$0xff]  ;;  %v433_v48 = vld [vmem:[#allocation10 + $0x80] sm:$0xff]  ;;  %v435_v49 = vld [vmem:[#allocation10 + $0x90] sm:$0xff] }
  0xa0   : > { %560 = vmatpush1.msra.mxu0 %v449_v32  ;;  %817 = vmatpush1.msra.mxu1 %v451_v33  ;;  %v430_v50 = vld [vmem:[#allocation10 + $0x68] sm:$0xff]  ;;  %v432_v51 = vld [vmem:[#allocation10 + $0x78] sm:$0xff]  ;;  %v429_v52 = vld [vmem:[#allocation10 + $0x60] sm:$0xff] }
  0xa1   : > { %561 = vmatprep.subr.mxu0 %v446_v34  ;;  %818 = vmatprep.subr.mxu1 %v448_v35  ;;  %v431_v53 = vld [vmem:[#allocation10 + $0x70] sm:$0xff]  ;;  %v426_v54 = vld [vmem:[#allocation10 + $0x48] sm:$0xff]  ;;  %v428_v55 = vld [vmem:[#allocation10 + $0x58] sm:$0xff] }
  0xa2   : > { %562 = vmatpush1.msra.mxu0 %v445_v36  ;;  %819 = vmatpush1.msra.mxu1 %v447_v37  ;;  %v425_v56 = vld [vmem:[#allocation10 + $0x40] sm:$0xff]  ;;  %v427_v57 = vld [vmem:[#allocation10 + $0x50] sm:$0xff]  ;;  %v422_v58 = vld [vmem:[#allocation10 + $0x28] sm:$0xff] }
  0xa3   : > { %563 = vmatprep.subr.mxu0 %v442_v38  ;;  %820 = vmatprep.subr.mxu1 %v444_v39  ;;  %v424_v59 = vld [vmem:[#allocation10 + $0x38] sm:$0xff]  ;;  %v421_v60 = vld [vmem:[#allocation10 + $0x20] sm:$0xff]  ;;  %v423_v61 = vld [vmem:[#allocation10 + $0x30] sm:$0xff] }
  0xa4   : > { %564 = vmatpush1.msra.mxu0 %v441_v40  ;;  %821 = vmatpush1.msra.mxu1 %v443_v41  ;;  %v418_v62 = vld [vmem:[#allocation10 + $0x8] sm:$0xff]  ;;  %v420_v63 = vld [vmem:[#allocation10 + $0x18] sm:$0xff]  ;;  %v417_v0 = vld [vmem:[#allocation10] sm:$0xff] }
  0xa5   : > { %565 = vmatprep.subr.mxu0 %v438_v42  ;;  %822 = vmatprep.subr.mxu1 %v440_v43  ;;  %v419_v1 = vld [vmem:[#allocation10 + $0x10] sm:$0xff]  ;;  %v542_v2 = vld [vmem:[#allocation10 + $0x3e8] sm:$0xff]  ;;  %v544_v3 = vld [vmem:[#allocation10 + $0x3f8] sm:$0xff] }
  0xa6   : > { %566 = vmatpush1.msra.mxu0 %v437_v44  ;;  %823 = vmatpush1.msra.mxu1 %v439_v45  ;;  %v541_v4 = vld [vmem:[#allocation10 + $0x3e0] sm:$0xff]  ;;  %v543_v5 = vld [vmem:[#allocation10 + $0x3f0] sm:$0xff]  ;;  %v538_v6 = vld [vmem:[#allocation10 + $0x3c8] sm:$0xff] }
  0xa7   : > { %567 = vmatprep.subr.mxu0 %v434_v46  ;;  %824 = vmatprep.subr.mxu1 %v436_v47  ;;  %v540_v7 = vld [vmem:[#allocation10 + $0x3d8] sm:$0xff]  ;;  %v537_v8 = vld [vmem:[#allocation10 + $0x3c0] sm:$0xff]  ;;  %v539_v9 = vld [vmem:[#allocation10 + $0x3d0] sm:$0xff] }
  0xa8   : > { %568 = vmatpush1.msra.mxu0 %v433_v48  ;;  %825 = vmatpush1.msra.mxu1 %v435_v49  ;;  %v534_v10 = vld [vmem:[#allocation10 + $0x3a8] sm:$0xff]  ;;  %v536_v11 = vld [vmem:[#allocation10 + $0x3b8] sm:$0xff]  ;;  %v533_v12 = vld [vmem:[#allocation10 + $0x3a0] sm:$0xff] }
  0xa9   : > { %569 = vmatprep.subr.mxu0 %v430_v50  ;;  %826 = vmatprep.subr.mxu1 %v432_v51  ;;  %v535_v13 = vld [vmem:[#allocation10 + $0x3b0] sm:$0xff]  ;;  %v530_v14 = vld [vmem:[#allocation10 + $0x388] sm:$0xff]  ;;  %v532_v15 = vld [vmem:[#allocation10 + $0x398] sm:$0xff] }
  0xaa   : > { %570 = vmatpush1.msra.mxu0 %v429_v52  ;;  %827 = vmatpush1.msra.mxu1 %v431_v53  ;;  %v529_v16 = vld [vmem:[#allocation10 + $0x380] sm:$0xff]  ;;  %v531_v17 = vld [vmem:[#allocation10 + $0x390] sm:$0xff]  ;;  %v526_v18 = vld [vmem:[#allocation10 + $0x368] sm:$0xff] }
  0xab   : > { %571 = vmatprep.subr.mxu0 %v426_v54  ;;  %828 = vmatprep.subr.mxu1 %v428_v55  ;;  %v528_v19 = vld [vmem:[#allocation10 + $0x378] sm:$0xff]  ;;  %v525_v20 = vld [vmem:[#allocation10 + $0x360] sm:$0xff]  ;;  %v527_v21 = vld [vmem:[#allocation10 + $0x370] sm:$0xff] }
  0xac   : > { %572 = vmatpush1.msra.mxu0 %v425_v56  ;;  %829 = vmatpush1.msra.mxu1 %v427_v57  ;;  %v522_v22 = vld [vmem:[#allocation10 + $0x348] sm:$0xff]  ;;  %v524_v23 = vld [vmem:[#allocation10 + $0x358] sm:$0xff]  ;;  %v521_v24 = vld [vmem:[#allocation10 + $0x340] sm:$0xff] }
  0xad   : > { %573 = vmatprep.subr.mxu0 %v422_v58  ;;  %830 = vmatprep.subr.mxu1 %v424_v59  ;;  %v523_v25 = vld [vmem:[#allocation10 + $0x350] sm:$0xff]  ;;  %v518_v26 = vld [vmem:[#allocation10 + $0x328] sm:$0xff]  ;;  %v520_v27 = vld [vmem:[#allocation10 + $0x338] sm:$0xff] }
  0xae   : > { %574 = vmatpush1.msra.mxu0 %v421_v60  ;;  %831 = vmatpush1.msra.mxu1 %v423_v61  ;;  %v517_v28 = vld [vmem:[#allocation10 + $0x320] sm:$0xff]  ;;  %v519_v29 = vld [vmem:[#allocation10 + $0x330] sm:$0xff]  ;;  %v514_v30 = vld [vmem:[#allocation10 + $0x308] sm:$0xff] }
  0xaf   : > { %575 = vmatprep.subr.mxu0 %v418_v62  ;;  %832 = vmatprep.subr.mxu1 %v420_v63  ;;  %v516_v31 = vld [vmem:[#allocation10 + $0x318] sm:$0xff]  ;;  %v513_v32 = vld [vmem:[#allocation10 + $0x300] sm:$0xff]  ;;  %v515_v33 = vld [vmem:[#allocation10 + $0x310] sm:$0xff] }
  0xb0   : > { %576 = vmatpush1.msra.mxu0 %v417_v0  ;;  %833 = vmatpush1.msra.mxu1 %v419_v1  ;;  %v510_v34 = vld [vmem:[#allocation10 + $0x2e8] sm:$0xff]  ;;  %v512_v35 = vld [vmem:[#allocation10 + $0x2f8] sm:$0xff]  ;;  %v509_v36 = vld [vmem:[#allocation10 + $0x2e0] sm:$0xff] }
  0xb1   : > { %577 = vmatprep.subr.mxu0 %v542_v2  ;;  %834 = vmatprep.subr.mxu1 %v544_v3  ;;  %v511_v37 = vld [vmem:[#allocation10 + $0x2f0] sm:$0xff]  ;;  %v506_v38 = vld [vmem:[#allocation10 + $0x2c8] sm:$0xff]  ;;  %v508_v39 = vld [vmem:[#allocation10 + $0x2d8] sm:$0xff] }
  0xb2   : > { %578 = vmatpush2.msra.mxu0 %v541_v4  ;;  %835 = vmatpush2.msra.mxu1 %v543_v5  ;;  %v505_v40 = vld [vmem:[#allocation10 + $0x2c0] sm:$0xff]  ;;  %v507_v41 = vld [vmem:[#allocation10 + $0x2d0] sm:$0xff]  ;;  %v502_v42 = vld [vmem:[#allocation10 + $0x2a8] sm:$0xff] }
  0xb3   : > { %579 = vmatprep.subr.mxu0 %v538_v6  ;;  %836 = vmatprep.subr.mxu1 %v540_v7  ;;  %v504_v43 = vld [vmem:[#allocation10 + $0x2b8] sm:$0xff]  ;;  %v501_v44 = vld [vmem:[#allocation10 + $0x2a0] sm:$0xff]  ;;  %v503_v45 = vld [vmem:[#allocation10 + $0x2b0] sm:$0xff] }
  0xb4   : > { %580 = vmatpush2.msra.mxu0 %v537_v8  ;;  %837 = vmatpush2.msra.mxu1 %v539_v9  ;;  %v498_v46 = vld [vmem:[#allocation10 + $0x288] sm:$0xff]  ;;  %v500_v47 = vld [vmem:[#allocation10 + $0x298] sm:$0xff]  ;;  %v497_v48 = vld [vmem:[#allocation10 + $0x280] sm:$0xff] }
  0xb5   : > { %581 = vmatprep.subr.mxu0 %v534_v10  ;;  %838 = vmatprep.subr.mxu1 %v536_v11  ;;  %v499_v49 = vld [vmem:[#allocation10 + $0x290] sm:$0xff]  ;;  %v494_v50 = vld [vmem:[#allocation10 + $0x268] sm:$0xff]  ;;  %v496_v51 = vld [vmem:[#allocation10 + $0x278] sm:$0xff] }
  0xb6   : > { %582 = vmatpush2.msra.mxu0 %v533_v12  ;;  %839 = vmatpush2.msra.mxu1 %v535_v13  ;;  %v493_v52 = vld [vmem:[#allocation10 + $0x260] sm:$0xff]  ;;  %v495_v53 = vld [vmem:[#allocation10 + $0x270] sm:$0xff]  ;;  %v490_v54 = vld [vmem:[#allocation10 + $0x248] sm:$0xff] }
  0xb7   : > { %583 = vmatprep.subr.mxu0 %v530_v14  ;;  %840 = vmatprep.subr.mxu1 %v532_v15  ;;  %v492_v55 = vld [vmem:[#allocation10 + $0x258] sm:$0xff]  ;;  %v489_v56 = vld [vmem:[#allocation10 + $0x240] sm:$0xff]  ;;  %v491_v57 = vld [vmem:[#allocation10 + $0x250] sm:$0xff] }
  0xb8   : > { %584 = vmatpush2.msra.mxu0 %v529_v16  ;;  %841 = vmatpush2.msra.mxu1 %v531_v17  ;;  %v486_v58 = vld [vmem:[#allocation10 + $0x228] sm:$0xff]  ;;  %v488_v59 = vld [vmem:[#allocation10 + $0x238] sm:$0xff]  ;;  %v485_v60 = vld [vmem:[#allocation10 + $0x220] sm:$0xff] }
  0xb9   : > { %585 = vmatprep.subr.mxu0 %v526_v18  ;;  %842 = vmatprep.subr.mxu1 %v528_v19  ;;  %v487_v61 = vld [vmem:[#allocation10 + $0x230] sm:$0xff]  ;;  %v482_v62 = vld [vmem:[#allocation10 + $0x208] sm:$0xff]  ;;  %v484_v63 = vld [vmem:[#allocation10 + $0x218] sm:$0xff] }
  0xba   : > { %586 = vmatpush2.msra.mxu0 %v525_v20  ;;  %843 = vmatpush2.msra.mxu1 %v527_v21  ;;  %v481_v0 = vld [vmem:[#allocation10 + $0x200] sm:$0xff]  ;;  %v354_v1 = vld [vmem:[%s3591_s14 + $0x8] sm:$0xff]  ;;  %v483_v2 = vld [vmem:[#allocation10 + $0x210] sm:$0xff] }
  0xbb   : > { %587 = vmatprep.subr.mxu0 %v522_v22  ;;  %844 = vmatprep.subr.mxu1 %v524_v23  ;;  %v353_v3 = vld [vmem:[%s3591_s14] sm:$0xff]  ;;  %v356_v4 = vld [vmem:[%s3591_s14 + $0x18] sm:$0xff]  ;;  %v355_v5 = vld [vmem:[%s3591_s14 + $0x10] sm:$0xff] }
  0xbc   : > { %588 = vmatpush2.msra.mxu0 %v521_v24  ;;  %845 = vmatpush2.msra.mxu1 %v523_v25  ;;  %v358_v6 = vld [vmem:[%s3591_s14 + $0x28] sm:$0xff]  ;;  %v357_v7 = vld [vmem:[%s3591_s14 + $0x20] sm:$0xff]  ;;  %v360_v8 = vld [vmem:[%s3591_s14 + $0x38] sm:$0xff] }
  0xbd   : > { %589 = vmatprep.subr.mxu0 %v518_v26  ;;  %846 = vmatprep.subr.mxu1 %v520_v27  ;;  %v359_v9 = vld [vmem:[%s3591_s14 + $0x30] sm:$0xff]  ;;  %v362_v10 = vld [vmem:[%s3591_s14 + $0x48] sm:$0xff]  ;;  %v361_v11 = vld [vmem:[%s3591_s14 + $0x40] sm:$0xff] }
  0xbe   : > { %590 = vmatpush2.msra.mxu0 %v517_v28  ;;  %847 = vmatpush2.msra.mxu1 %v519_v29  ;;  %v364_v12 = vld [vmem:[%s3591_s14 + $0x58] sm:$0xff]  ;;  %v363_v13 = vld [vmem:[%s3591_s14 + $0x50] sm:$0xff]  ;;  %v366_v14 = vld [vmem:[%s3591_s14 + $0x68] sm:$0xff] }
  0xbf   : > { %591 = vmatprep.subr.mxu0 %v514_v30  ;;  %848 = vmatprep.subr.mxu1 %v516_v31  ;;  %v365_v15 = vld [vmem:[%s3591_s14 + $0x60] sm:$0xff]  ;;  %v368_v16 = vld [vmem:[%s3591_s14 + $0x78] sm:$0xff]  ;;  %v367_v17 = vld [vmem:[%s3591_s14 + $0x70] sm:$0xff] }
  0xc0   : > { %592 = vmatpush2.msra.mxu0 %v513_v32  ;;  %849 = vmatpush2.msra.mxu1 %v515_v33  ;;  %v370_v18 = vld [vmem:[%s3591_s14 + $0x88] sm:$0xff]  ;;  %v369_v19 = vld [vmem:[%s3591_s14 + $0x80] sm:$0xff]  ;;  %v372_v20 = vld [vmem:[%s3591_s14 + $0x98] sm:$0xff] }
  0xc1   : > { %593 = vmatprep.subr.mxu0 %v510_v34  ;;  %850 = vmatprep.subr.mxu1 %v512_v35  ;;  %v371_v21 = vld [vmem:[%s3591_s14 + $0x90] sm:$0xff]  ;;  %v374_v22 = vld [vmem:[%s3591_s14 + $0xa8] sm:$0xff]  ;;  %v373_v23 = vld [vmem:[%s3591_s14 + $0xa0] sm:$0xff] }
  0xc2   : > { %594 = vmatpush2.msra.mxu0 %v509_v36  ;;  %851 = vmatpush2.msra.mxu1 %v511_v37  ;;  %v376_v24 = vld [vmem:[%s3591_s14 + $0xb8] sm:$0xff]  ;;  %v375_v25 = vld [vmem:[%s3591_s14 + $0xb0] sm:$0xff]  ;;  %v378_v26 = vld [vmem:[%s3591_s14 + $0xc8] sm:$0xff] }
  0xc3   : > { %595 = vmatprep.subr.mxu0 %v506_v38  ;;  %852 = vmatprep.subr.mxu1 %v508_v39  ;;  %v377_v27 = vld [vmem:[%s3591_s14 + $0xc0] sm:$0xff]  ;;  %v380_v28 = vld [vmem:[%s3591_s14 + $0xd8] sm:$0xff]  ;;  %v379_v29 = vld [vmem:[%s3591_s14 + $0xd0] sm:$0xff] }
  0xc4   : > { %596 = vmatpush2.msra.mxu0 %v505_v40  ;;  %853 = vmatpush2.msra.mxu1 %v507_v41  ;;  %v382_v30 = vld [vmem:[%s3591_s14 + $0xe8] sm:$0xff]  ;;  %v381_v31 = vld [vmem:[%s3591_s14 + $0xe0] sm:$0xff]  ;;  %v384_v32 = vld [vmem:[%s3591_s14 + $0xf8] sm:$0xff] }
  0xc5   : > { %597 = vmatprep.subr.mxu0 %v502_v42  ;;  %854 = vmatprep.subr.mxu1 %v504_v43  ;;  %v383_v33 = vld [vmem:[%s3591_s14 + $0xf0] sm:$0xff]  ;;  %v386_v34 = vld [vmem:[%s3591_s14 + $0x108] sm:$0xff]  ;;  %v385_v35 = vld [vmem:[%s3591_s14 + $0x100] sm:$0xff] }
  0xc6   : > { %598 = vmatpush2.msra.mxu0 %v501_v44  ;;  %855 = vmatpush2.msra.mxu1 %v503_v45  ;;  %v388_v36 = vld [vmem:[%s3591_s14 + $0x118] sm:$0xff]  ;;  %v387_v37 = vld [vmem:[%s3591_s14 + $0x110] sm:$0xff]  ;;  %v390_v38 = vld [vmem:[%s3591_s14 + $0x128] sm:$0xff] }
  0xc7   : > { %599 = vmatprep.subr.mxu0 %v498_v46  ;;  %856 = vmatprep.subr.mxu1 %v500_v47  ;;  %v389_v39 = vld [vmem:[%s3591_s14 + $0x120] sm:$0xff]  ;;  %v392_v40 = vld [vmem:[%s3591_s14 + $0x138] sm:$0xff]  ;;  %v391_v41 = vld [vmem:[%s3591_s14 + $0x130] sm:$0xff] }
  0xc8   : > { %600 = vmatpush2.msra.mxu0 %v497_v48  ;;  %857 = vmatpush2.msra.mxu1 %v499_v49  ;;  %v394_v42 = vld [vmem:[%s3591_s14 + $0x148] sm:$0xff]  ;;  %v393_v43 = vld [vmem:[%s3591_s14 + $0x140] sm:$0xff]  ;;  %v396_v44 = vld [vmem:[%s3591_s14 + $0x158] sm:$0xff] }
  0xc9   : > { %601 = vmatprep.subr.mxu0 %v494_v50  ;;  %858 = vmatprep.subr.mxu1 %v496_v51  ;;  %v395_v45 = vld [vmem:[%s3591_s14 + $0x150] sm:$0xff]  ;;  %v398_v46 = vld [vmem:[%s3591_s14 + $0x168] sm:$0xff]  ;;  %v397_v47 = vld [vmem:[%s3591_s14 + $0x160] sm:$0xff] }
  0xca   : > { %602 = vmatpush2.msra.mxu0 %v493_v52  ;;  %859 = vmatpush2.msra.mxu1 %v495_v53  ;;  %v400_v48 = vld [vmem:[%s3591_s14 + $0x178] sm:$0xff]  ;;  %v399_v49 = vld [vmem:[%s3591_s14 + $0x170] sm:$0xff]  ;;  %v402_v50 = vld [vmem:[%s3591_s14 + $0x188] sm:$0xff] }
  0xcb   : > { %603 = vmatprep.subr.mxu0 %v490_v54  ;;  %860 = vmatprep.subr.mxu1 %v492_v55  ;;  %v401_v51 = vld [vmem:[%s3591_s14 + $0x180] sm:$0xff]  ;;  %v404_v52 = vld [vmem:[%s3591_s14 + $0x198] sm:$0xff]  ;;  %v403_v53 = vld [vmem:[%s3591_s14 + $0x190] sm:$0xff] }
  0xcc   : > { %604 = vmatpush2.msra.mxu0 %v489_v56  ;;  %861 = vmatpush2.msra.mxu1 %v491_v57  ;;  %v406_v54 = vld [vmem:[%s3591_s14 + $0x1a8] sm:$0xff]  ;;  %v405_v55 = vld [vmem:[%s3591_s14 + $0x1a0] sm:$0xff]  ;;  %v408_v56 = vld [vmem:[%s3591_s14 + $0x1b8] sm:$0xff] }
  0xcd   : > { %605 = vmatprep.subr.mxu0 %v486_v58  ;;  %862 = vmatprep.subr.mxu1 %v488_v59  ;;  %v407_v57 = vld [vmem:[%s3591_s14 + $0x1b0] sm:$0xff]  ;;  %v410_v58 = vld [vmem:[%s3591_s14 + $0x1c8] sm:$0xff]  ;;  %v409_v59 = vld [vmem:[%s3591_s14 + $0x1c0] sm:$0xff] }
  0xce   : > { %606 = vmatpush2.msra.mxu0 %v485_v60  ;;  %863 = vmatpush2.msra.mxu1 %v487_v61  ;;  %v412_v60 = vld [vmem:[%s3591_s14 + $0x1d8] sm:$0xff]  ;;  %v411_v61 = vld [vmem:[%s3591_s14 + $0x1d0] sm:$0xff] }
  0xcf   : > { %607 = vmatprep.subr.mxu0 %v482_v62  ;;  %864 = vmatprep.subr.mxu1 %v484_v63  ;;  %v414_v62 = vld [vmem:[%s3591_s14 + $0x1e8] sm:$0xff]  ;;  %v413_v63 = vld [vmem:[%s3591_s14 + $0x1e0] sm:$0xff] }
  0xd0   : > { %608 = vmatpush2.msra.mxu0 %v481_v0  ;;  %609 = vmatprep.mubr.f32.mxu0 %v354_v1  ;;  %v416_v0 = vld [vmem:[%s3591_s14 + $0x1f8] sm:$0xff] }
  0xd1   : > { %865 = vmatpush2.msra.mxu1 %v483_v2  ;;  %866 = vmatprep.mubr.f32.mxu1 %v354_v1  ;;  %v415_v1 = vld [vmem:[%s3591_s14 + $0x1f0] sm:$0xff] }
  0xd2   : > { %610 = vmatmul.mubr.f32.vlgmr.msra.gmra.mxu0 %v353_v3  ;;  %867 = vmatmul.mubr.f32.vlgmr.msra.gmra.mxu1 %v353_v3 }
  0xd3   : > { %615 = vmatprep.mubr.f32.mxu0 %v356_v4  ;;  %872 = vmatprep.mubr.f32.mxu1 %v356_v4 }
  0xd6   : > { %616 = vmatmul.mubr.f32.gmra.mxu0 %v355_v5  ;;  %873 = vmatmul.mubr.f32.gmra.mxu1 %v355_v5 }
  0xd7   : > { %621 = vmatprep.mubr.f32.mxu0 %v358_v6  ;;  %878 = vmatprep.mubr.f32.mxu1 %v358_v6 }
  0xda   : > { %622 = vmatmul.mubr.f32.gmra.mxu0 %v357_v7  ;;  %879 = vmatmul.mubr.f32.gmra.mxu1 %v357_v7 }
  0xdb   : > { %627 = vmatprep.mubr.f32.mxu0 %v360_v8  ;;  %884 = vmatprep.mubr.f32.mxu1 %v360_v8 }
  0xde   : > { %628 = vmatmul.mubr.f32.gmra.mxu0 %v359_v9  ;;  %885 = vmatmul.mubr.f32.gmra.mxu1 %v359_v9 }
  0xdf   : > { %633 = vmatprep.mubr.f32.mxu0 %v362_v10  ;;  %890 = vmatprep.mubr.f32.mxu1 %v362_v10 }
  0xe2   : > { %634 = vmatmul.mubr.f32.gmra.mxu0 %v361_v11  ;;  %891 = vmatmul.mubr.f32.gmra.mxu1 %v361_v11 }
  0xe3   : > { %639 = vmatprep.mubr.f32.mxu0 %v364_v12  ;;  %896 = vmatprep.mubr.f32.mxu1 %v364_v12 }
  0xe6   : > { %640 = vmatmul.mubr.f32.gmra.mxu0 %v363_v13  ;;  %897 = vmatmul.mubr.f32.gmra.mxu1 %v363_v13 }
  0xe7   : > { %645 = vmatprep.mubr.f32.mxu0 %v366_v14  ;;  %902 = vmatprep.mubr.f32.mxu1 %v366_v14 }
  0xea   : > { %646 = vmatmul.mubr.f32.gmra.mxu0 %v365_v15  ;;  %903 = vmatmul.mubr.f32.gmra.mxu1 %v365_v15 }
  0xeb   : > { %651 = vmatprep.mubr.f32.mxu0 %v368_v16  ;;  %908 = vmatprep.mubr.f32.mxu1 %v368_v16 }
  0xee   : > { %652 = vmatmul.mubr.f32.gmra.mxu0 %v367_v17  ;;  %909 = vmatmul.mubr.f32.gmra.mxu1 %v367_v17 }
  0xef   : > { %657 = vmatprep.mubr.f32.mxu0 %v370_v18  ;;  %914 = vmatprep.mubr.f32.mxu1 %v370_v18 }
  0xf2   : > { %658 = vmatmul.mubr.f32.gmra.mxu0 %v369_v19  ;;  %915 = vmatmul.mubr.f32.gmra.mxu1 %v369_v19 }
  0xf3   : > { %663 = vmatprep.mubr.f32.mxu0 %v372_v20  ;;  %920 = vmatprep.mubr.f32.mxu1 %v372_v20 }
  0xf6   : > { %664 = vmatmul.mubr.f32.gmra.mxu0 %v371_v21  ;;  %921 = vmatmul.mubr.f32.gmra.mxu1 %v371_v21 }
  0xf7   : > { %669 = vmatprep.mubr.f32.mxu0 %v374_v22  ;;  %926 = vmatprep.mubr.f32.mxu1 %v374_v22 }
  0xfa   : > { %670 = vmatmul.mubr.f32.gmra.mxu0 %v373_v23  ;;  %927 = vmatmul.mubr.f32.gmra.mxu1 %v373_v23 }
  0xfb   : > { %675 = vmatprep.mubr.f32.mxu0 %v376_v24  ;;  %932 = vmatprep.mubr.f32.mxu1 %v376_v24 }
  0xfe   : > { %676 = vmatmul.mubr.f32.gmra.mxu0 %v375_v25  ;;  %933 = vmatmul.mubr.f32.gmra.mxu1 %v375_v25 }
  0xff   : > { %681 = vmatprep.mubr.f32.mxu0 %v378_v26  ;;  %938 = vmatprep.mubr.f32.mxu1 %v378_v26 }
 0x102   : > { %682 = vmatmul.mubr.f32.gmra.mxu0 %v377_v27  ;;  %939 = vmatmul.mubr.f32.gmra.mxu1 %v377_v27 }
 0x103   : > { %687 = vmatprep.mubr.f32.mxu0 %v380_v28  ;;  %944 = vmatprep.mubr.f32.mxu1 %v380_v28 }
 0x106   : > { %688 = vmatmul.mubr.f32.gmra.mxu0 %v379_v29  ;;  %945 = vmatmul.mubr.f32.gmra.mxu1 %v379_v29 }
 0x107   : > { %693 = vmatprep.mubr.f32.mxu0 %v382_v30  ;;  %950 = vmatprep.mubr.f32.mxu1 %v382_v30 }
 0x10a   : > { %694 = vmatmul.mubr.f32.gmra.mxu0 %v381_v31  ;;  %951 = vmatmul.mubr.f32.gmra.mxu1 %v381_v31 }
 0x10b   : > { %699 = vmatprep.mubr.f32.mxu0 %v384_v32  ;;  %956 = vmatprep.mubr.f32.mxu1 %v384_v32 }
 0x10e   : > { %700 = vmatmul.mubr.f32.gmra.mxu0 %v383_v33  ;;  %957 = vmatmul.mubr.f32.gmra.mxu1 %v383_v33 }
 0x10f   : > { %705 = vmatprep.mubr.f32.mxu0 %v386_v34  ;;  %962 = vmatprep.mubr.f32.mxu1 %v386_v34 }
 0x112   : > { %706 = vmatmul.mubr.f32.gmra.mxu0 %v385_v35  ;;  %963 = vmatmul.mubr.f32.gmra.mxu1 %v385_v35 }
 0x113   : > { %711 = vmatprep.mubr.f32.mxu0 %v388_v36  ;;  %968 = vmatprep.mubr.f32.mxu1 %v388_v36 }
 0x116   : > { %712 = vmatmul.mubr.f32.gmra.mxu0 %v387_v37  ;;  %969 = vmatmul.mubr.f32.gmra.mxu1 %v387_v37 }
 0x117   : > { %717 = vmatprep.mubr.f32.mxu0 %v390_v38  ;;  %974 = vmatprep.mubr.f32.mxu1 %v390_v38 }
 0x11a   : > { %718 = vmatmul.mubr.f32.gmra.mxu0 %v389_v39  ;;  %975 = vmatmul.mubr.f32.gmra.mxu1 %v389_v39 }
 0x11b   : > { %723 = vmatprep.mubr.f32.mxu0 %v392_v40  ;;  %980 = vmatprep.mubr.f32.mxu1 %v392_v40 }
 0x11e   : > { %724 = vmatmul.mubr.f32.gmra.mxu0 %v391_v41  ;;  %981 = vmatmul.mubr.f32.gmra.mxu1 %v391_v41 }
 0x11f   : > { %729 = vmatprep.mubr.f32.mxu0 %v394_v42  ;;  %986 = vmatprep.mubr.f32.mxu1 %v394_v42 }
 0x122   : > { %730 = vmatmul.mubr.f32.gmra.mxu0 %v393_v43  ;;  %987 = vmatmul.mubr.f32.gmra.mxu1 %v393_v43 }
 0x123   : > { %735 = vmatprep.mubr.f32.mxu0 %v396_v44  ;;  %992 = vmatprep.mubr.f32.mxu1 %v396_v44 }
 0x126   : > { %736 = vmatmul.mubr.f32.gmra.mxu0 %v395_v45  ;;  %993 = vmatmul.mubr.f32.gmra.mxu1 %v395_v45 }
 0x127   : > { %741 = vmatprep.mubr.f32.mxu0 %v398_v46  ;;  %998 = vmatprep.mubr.f32.mxu1 %v398_v46 }
 0x12a   : > { %742 = vmatmul.mubr.f32.gmra.mxu0 %v397_v47  ;;  %999 = vmatmul.mubr.f32.gmra.mxu1 %v397_v47 }
 0x12b   : > { %747 = vmatprep.mubr.f32.mxu0 %v400_v48  ;;  %1004 = vmatprep.mubr.f32.mxu1 %v400_v48 }
 0x12e   : > { %748 = vmatmul.mubr.f32.gmra.mxu0 %v399_v49  ;;  %1005 = vmatmul.mubr.f32.gmra.mxu1 %v399_v49 }
 0x12f   : > { %753 = vmatprep.mubr.f32.mxu0 %v402_v50  ;;  %1010 = vmatprep.mubr.f32.mxu1 %v402_v50 }
 0x132   : > { %754 = vmatmul.mubr.f32.gmra.mxu0 %v401_v51  ;;  %1011 = vmatmul.mubr.f32.gmra.mxu1 %v401_v51 }
 0x133   : > { %759 = vmatprep.mubr.f32.mxu0 %v404_v52  ;;  %1016 = vmatprep.mubr.f32.mxu1 %v404_v52 }
 0x136   : > { %760 = vmatmul.mubr.f32.gmra.mxu0 %v403_v53  ;;  %1017 = vmatmul.mubr.f32.gmra.mxu1 %v403_v53 }
 0x137   : > { %765 = vmatprep.mubr.f32.mxu0 %v406_v54  ;;  %1022 = vmatprep.mubr.f32.mxu1 %v406_v54 }
 0x13a   : > { %766 = vmatmul.mubr.f32.gmra.mxu0 %v405_v55  ;;  %1023 = vmatmul.mubr.f32.gmra.mxu1 %v405_v55  ;;  %v1217_v55 = vlaneseq }
 0x13b   : > { %771 = vmatprep.mubr.f32.mxu0 %v408_v56  ;;  %1028 = vmatprep.mubr.f32.mxu1 %v408_v56 }
 0x13c   : > { %vm1240_vm1 = vcmp.lt.s32.totalorder %v1217_v55, 512 }
 0x13e   : > { %772 = vmatmul.mubr.f32.gmra.mxu0 %v407_v57  ;;  %1029 = vmatmul.mubr.f32.gmra.mxu1 %v407_v57 }
 0x13f   : > { %777 = vmatprep.mubr.f32.mxu0 %v410_v58  ;;  %1034 = vmatprep.mubr.f32.mxu1 %v410_v58 }
 0x142   : > { %778 = vmatmul.mubr.f32.gmra.mxu0 %v409_v59  ;;  %1035 = vmatmul.mubr.f32.gmra.mxu1 %v409_v59 }
 0x143   : > { %783 = vmatprep.mubr.f32.mxu0 %v412_v60  ;;  %1040 = vmatprep.mubr.f32.mxu1 %v412_v60 }
 0x146   : > { %784 = vmatmul.mubr.f32.gmra.mxu0 %v411_v61  ;;  %1041 = vmatmul.mubr.f32.gmra.mxu1 %v411_v61 }
 0x147   : > { %789 = vmatprep.mubr.f32.mxu0 %v414_v62  ;;  %1046 = vmatprep.mubr.f32.mxu1 %v414_v62 }
 0x14a   : > { %790 = vmatmul.mubr.f32.gmra.mxu0 %v413_v63  ;;  %1047 = vmatmul.mubr.f32.gmra.mxu1 %v413_v63 }
 0x14b   : > { %795 = vmatprep.mubr.f32.mxu0 %v416_v0  ;;  %1052 = vmatprep.mubr.f32.mxu1 %v416_v0 }
 0x14e   : > { %796 = vmatmul.mubr.f32.gmra.mxu0 %v415_v1  ;;  %1053 = vmatmul.mubr.f32.gmra.mxu1 %v415_v1  ;;  %v3381_v1 = vmov 1966171168  }
 0x192   : > { %v3678_v2 = vpop.f32.mrf.mxu0  ;;  %v3680_v3 = vpop.f32.mrf.mxu1 }
 0x193   : > { %1554 = vst [vmem:[%s3682_s24] sm:$0xff] %v3678_v2  ;;  %1556 = vst [vmem:[%s3682_s24 + $0x10] sm:$0xff] %v3680_v3  ;;  %v1244_v38 = vmul.f32 %v3678_v2, %v3678_v2  ;;  %v1246_v39 = vmul.f32 %v3680_v3, %v3680_v3 }
 0x194   : > { %v3688_v4 = vpop.f32.mrf.mxu0  ;;  %v3690_v5 = vpop.f32.mrf.mxu1 }
 0x195   : > { %1555 = vst [vmem:[%s3682_s24 + $0x8] sm:$0xff] %v3688_v4  ;;  %1557 = vst [vmem:[%s3682_s24 + $0x18] sm:$0xff] %v3690_v5  ;;  %v1245_v43 = vmul.f32 %v3688_v4, %v3688_v4  ;;  %v1247_v44 = vmul.f32 %v3690_v5, %v3690_v5 }
 0x196   : > { %v3696_v6 = vpop.f32.mrf.mxu0  ;;  %v3698_v7 = vpop.f32.mrf.mxu1 }
 0x197   : > { %1558 = vst [vmem:[%s3682_s24 + $0x20] sm:$0xff] %v3696_v6  ;;  %1560 = vst [vmem:[%s3682_s24 + $0x30] sm:$0xff] %v3698_v7  ;;  %v1248_v34 = vmul.f32 %v3696_v6, %v3696_v6  ;;  %v1250_v37 = vmul.f32 %v3698_v7, %v3698_v7  ;;  %v1060_v45 = vadd.f32 %v3696_v6, %v3678_v2  ;;  %v3876_v2 = vunpack.c.l.s4 %v3381_v1 }
 0x198   : > { %v3704_v8 = vpop.f32.mrf.mxu0  ;;  %v3706_v9 = vpop.f32.mrf.mxu1  ;;  %v1134_v46 = vadd.f32 %v3698_v7, %v3680_v3 }
 0x199   : > { %1559 = vst [vmem:[%s3682_s24 + $0x28] sm:$0xff] %v3704_v8  ;;  %1561 = vst [vmem:[%s3682_s24 + $0x38] sm:$0xff] %v3706_v9  ;;  %v1249_v40 = vmul.f32 %v3704_v8, %v3704_v8  ;;  %v1372_v47 = vadd.f32 %v1248_v34, %v1244_v38  ;;  %v1251_v48 = vmul.f32 %v3706_v9, %v3706_v9 }
 0x19a   : > { %v3712_v10 = vpop.f32.mrf.mxu0  ;;  %v3714_v11 = vpop.f32.mrf.mxu1  ;;  %v1446_v52 = vadd.f32 %v1250_v37, %v1246_v39  ;;  %v1097_v53 = vadd.f32 %v3704_v8, %v3688_v4  ;;  %v1171_v57 = vadd.f32 %v3706_v9, %v3690_v5 }
 0x19b   : > { %1562 = vst [vmem:[%s3682_s24 + $0x40] sm:$0xff] %v3712_v10  ;;  %1564 = vst [vmem:[%s3682_s24 + $0x50] sm:$0xff] %v3714_v11  ;;  %v1252_v49 = vmul.f32 %v3712_v10, %v3712_v10  ;;  %v1254_v54 = vmul.f32 %v3714_v11, %v3714_v11  ;;  %v1409_v56 = vadd.f32 %v1249_v40, %v1245_v43 }
 0x19c   : > { %v3720_v12 = vpop.f32.mrf.mxu0  ;;  %v3722_v13 = vpop.f32.mrf.mxu1  ;;  %v1061_v58 = vadd.f32 %v1060_v45, %v3712_v10  ;;  %v1135_v62 = vadd.f32 %v1134_v46, %v3714_v11  ;;  %v1483_v3 = vadd.f32 %v1251_v48, %v1247_v44 }
 0x19d   : > { %1563 = vst [vmem:[%s3682_s24 + $0x48] sm:$0xff] %v3720_v12  ;;  %1565 = vst [vmem:[%s3682_s24 + $0x58] sm:$0xff] %v3722_v13  ;;  %v1253_v59 = vmul.f32 %v3720_v12, %v3720_v12  ;;  %v1255_v63 = vmul.f32 %v3722_v13, %v3722_v13  ;;  %v1373_v4 = vadd.f32 %v1372_v47, %v1252_v49 }
 0x19e   : > { %v3728_v14 = vpop.f32.mrf.mxu0  ;;  %v3730_v15 = vpop.f32.mrf.mxu1  ;;  %v1098_v5 = vadd.f32 %v1097_v53, %v3720_v12  ;;  %v1172_v6 = vadd.f32 %v1171_v57, %v3722_v13  ;;  %v1447_v9 = vadd.f32 %v1446_v52, %v1254_v54  ;;  %v3893_v12 = vshrl.u32 %v1217_v55, 7 }
 0x19f   : > { %1566 = vst [vmem:[%s3682_s24 + $0x60] sm:$0xff] %v3728_v14  ;;  %1568 = vst [vmem:[%s3682_s24 + $0x70] sm:$0xff] %v3730_v15  ;;  %v1256_v0 = vmul.f32 %v3728_v14, %v3728_v14  ;;  %v1258_v10 = vmul.f32 %v3730_v15, %v3730_v15  ;;  %v1410_v13 = vadd.f32 %v1409_v56, %v1253_v59 }
 0x1a0   : > { %v3736_v16 = vpop.f32.mrf.mxu0  ;;  %v3738_v17 = vpop.f32.mrf.mxu1  ;;  %v1062_v34 = vadd.f32 %v1061_v58, %v3728_v14  ;;  %v1484_v43 = vadd.f32 %v1483_v3, %v1255_v63  ;;  %v1136_v45 = vadd.f32 %v1135_v62, %v3730_v15  ;;  %v1216_v14 = vunpack.c.0.s8 %v3876_v2 }
 0x1a1   : > { %1567 = vst [vmem:[%s3682_s24 + $0x68] sm:$0xff] %v3736_v16  ;;  %1569 = vst [vmem:[%s3682_s24 + $0x78] sm:$0xff] %v3738_v17  ;;  %v1257_v11 = vmul.f32 %v3736_v16, %v3736_v16  ;;  %v1259_v37 = vmul.f32 %v3738_v17, %v3738_v17  ;;  %v1374_v44 = vadd.f32 %v1373_v4, %v1256_v0 }
 0x1a2   : > { %v3744_v18 = vpop.f32.mrf.mxu0  ;;  %v3746_v19 = vpop.f32.mrf.mxu1  ;;  %v1099_v46 = vadd.f32 %v1098_v5, %v3736_v16  ;;  %v1173_v47 = vadd.f32 %v1172_v6, %v3738_v17  ;;  %v1448_v15 = vadd.f32 %v1447_v9, %v1258_v10 }
 0x1a3   : > { %1570 = vst [vmem:[%s3682_s24 + $0x80] sm:$0xff] %v3744_v18  ;;  %1572 = vst [vmem:[%s3682_s24 + $0x90] sm:$0xff] %v3746_v19  ;;  %v1260_v38 = vmul.f32 %v3744_v18, %v3744_v18  ;;  %v1262_v48 = vmul.f32 %v3746_v19, %v3746_v19  ;;  %v1411_v54 = vadd.f32 %v1410_v13, %v1257_v11 }
 0x1a4   : > { %v3752_v20 = vpop.f32.mrf.mxu0  ;;  %v3754_v21 = vpop.f32.mrf.mxu1  ;;  %v1485_v17 = vadd.f32 %v1484_v43, %v1259_v37  ;;  %v1063_v57 = vadd.f32 %v1062_v34, %v3744_v18  ;;  %v1137_v59 = vadd.f32 %v1136_v45, %v3746_v19 }
 0x1a5   : > { %1571 = vst [vmem:[%s3682_s24 + $0x88] sm:$0xff] %v3752_v20  ;;  %1573 = vst [vmem:[%s3682_s24 + $0x98] sm:$0xff] %v3754_v21  ;;  %v1261_v49 = vmul.f32 %v3752_v20, %v3752_v20  ;;  %v1263_v56 = vmul.f32 %v3754_v21, %v3754_v21  ;;  %v1375_v58 = vadd.f32 %v1374_v44, %v1260_v38 }
 0x1a6   : > { %v3760_v22 = vpop.f32.mrf.mxu0  ;;  %v3762_v23 = vpop.f32.mrf.mxu1  ;;  %v1100_v0 = vadd.f32 %v1099_v46, %v3752_v20  ;;  %v1174_v1 = vadd.f32 %v1173_v47, %v3754_v21  ;;  %v1449_v18 = vadd.f32 %v1448_v15, %v1262_v48 }
 0x1a7   : > { %1574 = vst [vmem:[%s3682_s24 + $0xa0] sm:$0xff] %v3760_v22  ;;  %1576 = vst [vmem:[%s3682_s24 + $0xb0] sm:$0xff] %v3762_v23  ;;  %v1264_v16 = vmul.f32 %v3760_v22, %v3760_v22  ;;  %v1266_v3 = vmul.f32 %v3762_v23, %v3762_v23  ;;  %v1412_v19 = vadd.f32 %v1411_v54, %v1261_v49 }
 0x1a8   : > { %v3768_v24 = vpop.f32.mrf.mxu0  ;;  %v3770_v25 = vpop.f32.mrf.mxu1  ;;  %v1486_v9 = vadd.f32 %v1485_v17, %v1263_v56  ;;  %v1064_v10 = vadd.f32 %v1063_v57, %v3760_v22  ;;  %v1138_v13 = vadd.f32 %v1137_v59, %v3762_v23 }
 0x1a9   : > { %1575 = vst [vmem:[%s3682_s24 + $0xa8] sm:$0xff] %v3768_v24  ;;  %1577 = vst [vmem:[%s3682_s24 + $0xb8] sm:$0xff] %v3770_v25  ;;  %v1265_v4 = vmul.f32 %v3768_v24, %v3768_v24  ;;  %v1267_v5 = vmul.f32 %v3770_v25, %v3770_v25  ;;  %v1376_v11 = vadd.f32 %v1375_v58, %v1264_v16 }
 0x1aa   : > { %v3776_v26 = vpop.f32.mrf.mxu0  ;;  %v3778_v27 = vpop.f32.mrf.mxu1  ;;  %v1101_v34 = vadd.f32 %v1100_v0, %v3768_v24  ;;  %v1175_v37 = vadd.f32 %v1174_v1, %v3770_v25  ;;  %v1450_v45 = vadd.f32 %v1449_v18, %v1266_v3 }
 0x1ab   : > { %1578 = vst [vmem:[%s3682_s24 + $0xc0] sm:$0xff] %v3776_v26  ;;  %1580 = vst [vmem:[%s3682_s24 + $0xd0] sm:$0xff] %v3778_v27  ;;  %v1268_v20 = vmul.f32 %v3776_v26, %v3776_v26  ;;  %v1270_v38 = vmul.f32 %v3778_v27, %v3778_v27  ;;  %v1413_v23 = vadd.f32 %v1412_v19, %v1265_v4 }
 0x1ac   : > { %v3784_v28 = vpop.f32.mrf.mxu0  ;;  %v3786_v29 = vpop.f32.mrf.mxu1  ;;  %v1487_v25 = vadd.f32 %v1486_v9, %v1267_v5  ;;  %v1065_v47 = vadd.f32 %v1064_v10, %v3776_v26  ;;  %v1139_v49 = vadd.f32 %v1138_v13, %v3778_v27 }
 0x1ad   : > { %1579 = vst [vmem:[%s3682_s24 + $0xc8] sm:$0xff] %v3784_v28  ;;  %1581 = vst [vmem:[%s3682_s24 + $0xd8] sm:$0xff] %v3786_v29  ;;  %v1269_v43 = vmul.f32 %v3784_v28, %v3784_v28  ;;  %v1271_v46 = vmul.f32 %v3786_v29, %v3786_v29  ;;  %v1377_v48 = vadd.f32 %v1376_v11, %v1268_v20 }
 0x1ae   : > { %v3792_v30 = vpop.f32.mrf.mxu0  ;;  %v3794_v31 = vpop.f32.mrf.mxu1  ;;  %v1102_v56 = vadd.f32 %v1101_v34, %v3784_v28  ;;  %v1176_v16 = vadd.f32 %v1175_v37, %v3786_v29  ;;  %v1451_v26 = vadd.f32 %v1450_v45, %v1270_v38 }
 0x1af   : > { %1582 = vst [vmem:[%s3682_s24 + $0xe0] sm:$0xff] %v3792_v30  ;;  %1584 = vst [vmem:[%s3682_s24 + $0xf0] sm:$0xff] %v3794_v31  ;;  %v1272_v24 = vmul.f32 %v3792_v30, %v3792_v30  ;;  %v1274_v17 = vmul.f32 %v3794_v31, %v3794_v31  ;;  %v1414_v27 = vadd.f32 %v1413_v23, %v1269_v43 }
 0x1b0   : > { %v3800_v32 = vpop.f32.mrf.mxu0  ;;  %v3802_v33 = vpop.f32.mrf.mxu1  ;;  %v1488_v0 = vadd.f32 %v1487_v25, %v1271_v46  ;;  %v1066_v1 = vadd.f32 %v1065_v47, %v3792_v30  ;;  %v1140_v4 = vadd.f32 %v1139_v49, %v3794_v31 }
 0x1b1   : > { %1583 = vst [vmem:[%s3682_s24 + $0xe8] sm:$0xff] %v3800_v32  ;;  %1585 = vst [vmem:[%s3682_s24 + $0xf8] sm:$0xff] %v3802_v33  ;;  %v1273_v57 = vmul.f32 %v3800_v32, %v3800_v32  ;;  %v1275_v58 = vmul.f32 %v3802_v33, %v3802_v33  ;;  %v1378_v3 = vadd.f32 %v1377_v48, %v1272_v24 }
 0x1b2   : > { %v3810_v35 = vpop.f32.mrf.mxu0  ;;  %v3812_v36 = vpop.f32.mrf.mxu1  ;;  %v1103_v18 = vadd.f32 %v1102_v56, %v3800_v32  ;;  %v1177_v19 = vadd.f32 %v1176_v16, %v3802_v33  ;;  %v1452_v10 = vadd.f32 %v1451_v26, %v1274_v17 }
 0x1b3   : > { %1586 = vst [vmem:[%s3682_s24 + $0x100] sm:$0xff] %v3810_v35  ;;  %1588 = vst [vmem:[%s3682_s24 + $0x110] sm:$0xff] %v3812_v36  ;;  %v1276_v28 = vmul.f32 %v3810_v35, %v3810_v35  ;;  %v1278_v5 = vmul.f32 %v3812_v36, %v3812_v36  ;;  %v1415_v31 = vadd.f32 %v1414_v27, %v1273_v57 }
 0x1b4   : > { %v3826_v41 = vpop.f32.mrf.mxu0  ;;  %v3828_v42 = vpop.f32.mrf.mxu1  ;;  %v1489_v33 = vadd.f32 %v1488_v0, %v1275_v58  ;;  %v1067_v13 = vadd.f32 %v1066_v1, %v3810_v35  ;;  %v1141_v37 = vadd.f32 %v1140_v4, %v3812_v36 }
 0x1b5   : > { %1587 = vst [vmem:[%s3682_s24 + $0x108] sm:$0xff] %v3826_v41  ;;  %1589 = vst [vmem:[%s3682_s24 + $0x118] sm:$0xff] %v3828_v42  ;;  %v1277_v20 = vmul.f32 %v3826_v41, %v3826_v41  ;;  %v1279_v11 = vmul.f32 %v3828_v42, %v3828_v42  ;;  %v1379_v34 = vadd.f32 %v1378_v3, %v1276_v28 }
 0x1b6   : > { %v3846_v50 = vpop.f32.mrf.mxu0  ;;  %v3848_v51 = vpop.f32.mrf.mxu1  ;;  %v1104_v45 = vadd.f32 %v1103_v18, %v3826_v41  ;;  %v1178_v23 = vadd.f32 %v1177_v19, %v3828_v42  ;;  %v1453_v35 = vadd.f32 %v1452_v10, %v1278_v5 }
 0x1b7   : > { %1590 = vst [vmem:[%s3682_s24 + $0x120] sm:$0xff] %v3846_v50  ;;  %1592 = vst [vmem:[%s3682_s24 + $0x130] sm:$0xff] %v3848_v51  ;;  %v1280_v32 = vmul.f32 %v3846_v50, %v3846_v50  ;;  %v1282_v46 = vmul.f32 %v3848_v51, %v3848_v51  ;;  %v1416_v36 = vadd.f32 %v1415_v31, %v1277_v20 }
 0x1b8   : > { %v3863_v60 = vpop.f32.mrf.mxu0  ;;  %v3865_v61 = vpop.f32.mrf.mxu1  ;;  %v1490_v48 = vadd.f32 %v1489_v33, %v1279_v11  ;;  %v1068_v49 = vadd.f32 %v1067_v13, %v3846_v50  ;;  %v1142_v16 = vadd.f32 %v1141_v37, %v3848_v51 }
 0x1b9   : > { %1591 = vst [vmem:[%s3682_s24 + $0x128] sm:$0xff] %v3863_v60  ;;  %1593 = vst [vmem:[%s3682_s24 + $0x138] sm:$0xff] %v3865_v61  ;;  %v1281_v24 = vmul.f32 %v3863_v60, %v3863_v60  ;;  %v1283_v25 = vmul.f32 %v3865_v61, %v3865_v61  ;;  %v1380_v56 = vadd.f32 %v1379_v34, %v1280_v32 }
 0x1ba   : > { %v3880_v7 = vpop.f32.mrf.mxu0  ;;  %v3882_v8 = vpop.f32.mrf.mxu1  ;;  %v1105_v17 = vadd.f32 %v1104_v45, %v3863_v60  ;;  %v1179_v57 = vadd.f32 %v1178_v23, %v3865_v61  ;;  %v1454_v28 = vadd.f32 %v1453_v35, %v1282_v46 }
 0x1bb   : > { %1594 = vst [vmem:[%s3682_s24 + $0x140] sm:$0xff] %v3880_v7  ;;  %1596 = vst [vmem:[%s3682_s24 + $0x150] sm:$0xff] %v3882_v8  ;;  %v1284_v41 = vmul.f32 %v3880_v7, %v3880_v7  ;;  %v1286_v26 = vmul.f32 %v3882_v8, %v3882_v8  ;;  %v1417_v51 = vadd.f32 %v1416_v36, %v1281_v24 }
 0x1bc   : > { %v3900_v39 = vpop.f32.mrf.mxu0  ;;  %v3902_v40 = vpop.f32.mrf.mxu1  ;;  %v1491_v61 = vadd.f32 %v1490_v48, %v1283_v25  ;;  %v1069_v1 = vadd.f32 %v1068_v49, %v3880_v7  ;;  %v1143_v4 = vadd.f32 %v1142_v16, %v3882_v8 }
 0x1bd   : > { %1595 = vst [vmem:[%s3682_s24 + $0x148] sm:$0xff] %v3900_v39  ;;  %1597 = vst [vmem:[%s3682_s24 + $0x158] sm:$0xff] %v3902_v40  ;;  %v1285_v27 = vmul.f32 %v3900_v39, %v3900_v39  ;;  %v1287_v0 = vmul.f32 %v3902_v40, %v3902_v40  ;;  %v1381_v3 = vadd.f32 %v1380_v56, %v1284_v41 }
 0x1be   : > { %v3916_v52 = vpop.f32.mrf.mxu0  ;;  %v3918_v53 = vpop.f32.mrf.mxu1  ;;  %v1106_v5 = vadd.f32 %v1105_v17, %v3900_v39  ;;  %v1180_v20 = vadd.f32 %v1179_v57, %v3902_v40  ;;  %v1455_v7 = vadd.f32 %v1454_v28, %v1286_v26 }
 0x1bf   : > { %1598 = vst [vmem:[%s3682_s24 + $0x160] sm:$0xff] %v3916_v52  ;;  %1600 = vst [vmem:[%s3682_s24 + $0x170] sm:$0xff] %v3918_v53  ;;  %v1288_v60 = vmul.f32 %v3916_v52, %v3916_v52  ;;  %v1290_v10 = vmul.f32 %v3918_v53, %v3918_v53  ;;  %v1418_v8 = vadd.f32 %v1417_v51, %v1285_v27 }
 0x1c0   : > { %v3930_v62 = vpop.f32.mrf.mxu0  ;;  %v3932_v63 = vpop.f32.mrf.mxu1  ;;  %v1492_v33 = vadd.f32 %v1491_v61, %v1287_v0  ;;  %v1070_v13 = vadd.f32 %v1069_v1, %v3916_v52  ;;  %v1144_v37 = vadd.f32 %v1143_v4, %v3918_v53 }
 0x1c1   : > { %1599 = vst [vmem:[%s3682_s24 + $0x168] sm:$0xff] %v3930_v62  ;;  %1601 = vst [vmem:[%s3682_s24 + $0x178] sm:$0xff] %v3932_v63  ;;  %v1289_v31 = vmul.f32 %v3930_v62, %v3930_v62  ;;  %v1291_v11 = vmul.f32 %v3932_v63, %v3932_v63  ;;  %v1382_v34 = vadd.f32 %v1381_v3, %v1288_v60 }
 0x1c2   : > { %v3948_v21 = vpop.f32.mrf.mxu0  ;;  %v3950_v6 = vpop.f32.mrf.mxu1  ;;  %v1107_v45 = vadd.f32 %v1106_v5, %v3930_v62  ;;  %v1181_v23 = vadd.f32 %v1180_v20, %v3932_v63  ;;  %v1456_v36 = vadd.f32 %v1455_v7, %v1290_v10 }
 0x1c3   : > { %1602 = vst [vmem:[%s3682_s24 + $0x180] sm:$0xff] %v3948_v21  ;;  %1604 = vst [vmem:[%s3682_s24 + $0x190] sm:$0xff] %v3950_v6  ;;  %v1292_v39 = vmul.f32 %v3948_v21, %v3948_v21  ;;  %v1294_v46 = vmul.f32 %v3950_v6, %v3950_v6  ;;  %v1419_v53 = vadd.f32 %v1418_v8, %v1289_v31 }
 0x1c4   : > { %v3964_v44 = vpop.f32.mrf.mxu0  ;;  %v3966_v22 = vpop.f32.mrf.mxu1  ;;  %v1493_v63 = vadd.f32 %v1492_v33, %v1291_v11  ;;  %v1071_v41 = vadd.f32 %v1070_v13, %v3948_v21  ;;  %v1145_v49 = vadd.f32 %v1144_v37, %v3950_v6 }
 0x1c5   : > { %1603 = vst [vmem:[%s3682_s24 + $0x188] sm:$0xff] %v3964_v44  ;;  %1605 = vst [vmem:[%s3682_s24 + $0x198] sm:$0xff] %v3966_v22  ;;  %v1293_v24 = vmul.f32 %v3964_v44, %v3964_v44  ;;  %v1295_v25 = vmul.f32 %v3966_v22, %v3966_v22  ;;  %v1383_v48 = vadd.f32 %v1382_v34, %v1292_v39 }
 0x1c6   : > { %v3978_v15 = vpop.f32.mrf.mxu0  ;;  %v3980_v54 = vpop.f32.mrf.mxu1  ;;  %v1108_v17 = vadd.f32 %v1107_v45, %v3964_v44  ;;  %v1182_v57 = vadd.f32 %v1181_v23, %v3966_v22  ;;  %v1457_v21 = vadd.f32 %v1456_v36, %v1294_v46 }
 0x1c7   : > { %1606 = vst [vmem:[%s3682_s24 + $0x1a0] sm:$0xff] %v3978_v15  ;;  %1608 = vst [vmem:[%s3682_s24 + $0x1b0] sm:$0xff] %v3980_v54  ;;  %v1296_v62 = vmul.f32 %v3978_v15, %v3978_v15  ;;  %v1298_v26 = vmul.f32 %v3980_v54, %v3980_v54  ;;  %v1420_v6 = vadd.f32 %v1419_v53, %v1293_v24 }
 0x1c8   : > { %v3996_v29 = vpop.f32.mrf.mxu0  ;;  %v3998_v59 = vpop.f32.mrf.mxu1  ;;  %v1494_v0 = vadd.f32 %v1493_v63, %v1295_v25  ;;  %v1072_v60 = vadd.f32 %v1071_v41, %v3978_v15  ;;  %v1146_v1 = vadd.f32 %v1145_v49, %v3980_v54 }
 0x1c9   : > { %1607 = vst [vmem:[%s3682_s24 + $0x1a8] sm:$0xff] %v3996_v29  ;;  %1609 = vst [vmem:[%s3682_s24 + $0x1b8] sm:$0xff] %v3998_v59  ;;  %v1297_v27 = vmul.f32 %v3996_v29, %v3996_v29  ;;  %v1299_v28 = vmul.f32 %v3998_v59, %v3998_v59  ;;  %v1384_v61 = vadd.f32 %v1383_v48, %v1296_v62 }
 0x1ca   : > { %v4012_v9 = vpop.f32.mrf.mxu0  ;;  %v4014_v30 = vpop.f32.mrf.mxu1  ;;  %v1109_v3 = vadd.f32 %v1108_v17, %v3996_v29  ;;  %v1183_v4 = vadd.f32 %v1182_v57, %v3998_v59  ;;  %v1458_v31 = vadd.f32 %v1457_v21, %v1298_v26 }
 0x1cb   : > { %1610 = vst [vmem:[%s3682_s24 + $0x1c0] sm:$0xff] %v4012_v9  ;;  %1612 = vst [vmem:[%s3682_s24 + $0x1d0] sm:$0xff] %v4014_v30  ;;  %v1300_v44 = vmul.f32 %v4012_v9, %v4012_v9  ;;  %v1302_v5 = vmul.f32 %v4014_v30, %v4014_v30  ;;  %v1421_v54 = vadd.f32 %v1420_v6, %v1297_v27 }
 0x1cc   : > { %v4026_v38 = vpop.f32.mrf.mxu0  ;;  %v4028_v43 = vpop.f32.mrf.mxu1  ;;  %v1495_v59 = vadd.f32 %v1494_v0, %v1299_v28  ;;  %v1073_v8 = vadd.f32 %v1072_v60, %v4012_v9  ;;  %v1147_v39 = vadd.f32 %v1146_v1, %v4014_v30 }
 0x1cd   : > { %1611 = vst [vmem:[%s3682_s24 + $0x1c8] sm:$0xff] %v4026_v38  ;;  %1613 = vst [vmem:[%s3682_s24 + $0x1d8] sm:$0xff] %v4028_v43  ;;  %v1301_v20 = vmul.f32 %v4026_v38, %v4026_v38  ;;  %v1303_v7 = vmul.f32 %v4028_v43, %v4028_v43  ;;  %v1385_v11 = vadd.f32 %v1384_v61, %v1300_v44 }
 0x1ce   : > { %v4044_v42 = vpop.f32.mrf.mxu0  ;;  %v4046_v47 = vpop.f32.mrf.mxu1  ;;  %v1110_v34 = vadd.f32 %v1109_v3, %v4026_v38  ;;  %v1184_v37 = vadd.f32 %v1183_v4, %v4028_v43  ;;  %v1459_v9 = vadd.f32 %v1458_v31, %v1302_v5 }
 0x1cf   : > { %1614 = vst [vmem:[%s3682_s24 + $0x1e0] sm:$0xff] %v4044_v42  ;;  %1616 = vst [vmem:[%s3682_s24 + $0x1f0] sm:$0xff] %v4046_v47  ;;  %v1304_v29 = vmul.f32 %v4044_v42, %v4044_v42  ;;  %v1306_v45 = vmul.f32 %v4046_v47, %v4046_v47  ;;  %v1422_v30 = vadd.f32 %v1421_v54, %v1301_v20 }
 0x1d0   : > { %v4060_v58 = vpop.f32.mrf.mxu0  ;;  %v4062_v50 = vpop.f32.mrf.mxu1  ;;  %v1496_v36 = vadd.f32 %v1495_v59, %v1303_v7  ;;  %v1074_v53 = vadd.f32 %v1073_v8, %v4044_v42  ;;  %v1148_v62 = vadd.f32 %v1147_v39, %v4046_v47 }
 0x1d1   : > { %1615 = vst [vmem:[%s3682_s24 + $0x1e8] sm:$0xff] %v4060_v58  ;;  %1617 = vst [vmem:[%s3682_s24 + $0x1f8] sm:$0xff] %v4062_v50  ;;  %v1305_v23 = vmul.f32 %v4060_v58, %v4060_v58  ;;  %v1307_v46 = vmul.f32 %v4062_v50, %v4062_v50  ;;  %v1386_v25 = vadd.f32 %v1385_v11, %v1304_v29 }
 0x1d2   : > { %v4074_v18 = vpop.f32.mrf.mxu0  ;;  %v4076_v19 = vpop.f32.mrf.mxu1  ;;  %v1111_v63 = vadd.f32 %v1110_v34, %v4060_v58  ;;  %v1185_v41 = vadd.f32 %v1184_v37, %v4062_v50  ;;  %v1460_v57 = vadd.f32 %v1459_v9, %v1306_v45 }
 0x1d3   : > { %1618 = vst [vmem:[%s3682_s24 + $0x200] sm:$0xff] %v4074_v18  ;;  %1620 = vst [vmem:[%s3682_s24 + $0x210] sm:$0xff] %v4076_v19  ;;  %v1308_v38 = vmul.f32 %v4074_v18, %v4074_v18  ;;  %v1310_v48 = vmul.f32 %v4076_v19, %v4076_v19  ;;  %v1423_v47 = vadd.f32 %v1422_v30, %v1305_v23 }
 0x1d4   : > { %v4092_v40 = vpop.f32.mrf.mxu0  ;;  %v4094_v32 = vpop.f32.mrf.mxu1  ;;  %v1497_v50 = vadd.f32 %v1496_v36, %v1307_v46  ;;  %v1075_v27 = vadd.f32 %v1074_v53, %v4074_v18  ;;  %v1149_v6 = vadd.f32 %v1148_v62, %v4076_v19 }
 0x1d5   : > { %1619 = vst [vmem:[%s3682_s24 + $0x208] sm:$0xff] %v4092_v40  ;;  %1621 = vst [vmem:[%s3682_s24 + $0x218] sm:$0xff] %v4094_v32  ;;  %v1309_v49 = vmul.f32 %v4092_v40, %v4092_v40  ;;  %v1311_v26 = vmul.f32 %v4094_v32, %v4094_v32  ;;  %v1387_v21 = vadd.f32 %v1386_v25, %v1308_v38 }
 0x1d6   : > { %v4108_v35 = vpop.f32.mrf.mxu0  ;;  %v4110_v52 = vpop.f32.mrf.mxu1  ;;  %v1112_v0 = vadd.f32 %v1111_v63, %v4092_v40  ;;  %v1186_v60 = vadd.f32 %v1185_v41, %v4094_v32  ;;  %v1461_v18 = vadd.f32 %v1460_v57, %v1310_v48 }
 0x1d7   : > { %1622 = vst [vmem:[%s3682_s24 + $0x220] sm:$0xff] %v4108_v35  ;;  %1624 = vst [vmem:[%s3682_s24 + $0x230] sm:$0xff] %v4110_v52  ;;  %v1312_v58 = vmul.f32 %v4108_v35, %v4108_v35  ;;  %v1314_v61 = vmul.f32 %v4110_v52, %v4110_v52  ;;  %v1424_v19 = vadd.f32 %v1423_v47, %v1309_v49 }
 0x1d8   : > { %v4122_v56 = vpop.f32.mrf.mxu0  ;;  %v4124_v16 = vpop.f32.mrf.mxu1  ;;  %v1498_v5 = vadd.f32 %v1497_v50, %v1311_v26  ;;  %v1076_v20 = vadd.f32 %v1075_v27, %v4108_v35  ;;  %v1150_v54 = vadd.f32 %v1149_v6, %v4110_v52 }
 0x1d9   : > { %1623 = vst [vmem:[%s3682_s24 + $0x228] sm:$0xff] %v4122_v56  ;;  %1625 = vst [vmem:[%s3682_s24 + $0x238] sm:$0xff] %v4124_v16  ;;  %v1313_v1 = vmul.f32 %v4122_v56, %v4122_v56  ;;  %v1315_v3 = vmul.f32 %v4124_v16, %v4124_v16  ;;  %v1388_v31 = vadd.f32 %v1387_v21, %v1312_v58 }
 0x1da   : > { %v4140_v22 = vpop.f32.mrf.mxu0  ;;  %v4142_v51 = vpop.f32.mrf.mxu1  ;;  %v1113_v7 = vadd.f32 %v1112_v0, %v4122_v56  ;;  %v1187_v29 = vadd.f32 %v1186_v60, %v4124_v16  ;;  %v1462_v39 = vadd.f32 %v1461_v18, %v1314_v61 }
 0x1db   : > { %1626 = vst [vmem:[%s3682_s24 + $0x240] sm:$0xff] %v4140_v22  ;;  %1628 = vst [vmem:[%s3682_s24 + $0x250] sm:$0xff] %v4142_v51  ;;  %v1316_v40 = vmul.f32 %v4140_v22, %v4140_v22  ;;  %v1318_v59 = vmul.f32 %v4142_v51, %v4142_v51  ;;  %v1425_v52 = vadd.f32 %v1424_v19, %v1313_v1 }
 0x1dc   : > { %v4156_v10 = vpop.f32.mrf.mxu0  ;;  %v4158_v15 = vpop.f32.mrf.mxu1  ;;  %v1499_v16 = vadd.f32 %v1498_v5, %v1315_v3  ;;  %v1077_v37 = vadd.f32 %v1076_v20, %v4140_v22  ;;  %v1151_v23 = vadd.f32 %v1150_v54, %v4142_v51 }
 0x1dd   : > { %1627 = vst [vmem:[%s3682_s24 + $0x248] sm:$0xff] %v4156_v10  ;;  %1629 = vst [vmem:[%s3682_s24 + $0x258] sm:$0xff] %v4158_v15  ;;  %v1317_v8 = vmul.f32 %v4156_v10, %v4156_v10  ;;  %v1319_v34 = vmul.f32 %v4158_v15, %v4158_v15  ;;  %v1389_v45 = vadd.f32 %v1388_v31, %v1316_v40 }
 0x1de   : > { %v4170_v33 = vpop.f32.mrf.mxu0  ;;  %v4172_v13 = vpop.f32.mrf.mxu1  ;;  %v1114_v46 = vadd.f32 %v1113_v7, %v4156_v10  ;;  %v1188_v38 = vadd.f32 %v1187_v29, %v4158_v15  ;;  %v1463_v22 = vadd.f32 %v1462_v39, %v1318_v59 }
 0x1df   : > { %1630 = vst [vmem:[%s3682_s24 + $0x260] sm:$0xff] %v4170_v33  ;;  %1632 = vst [vmem:[%s3682_s24 + $0x270] sm:$0xff] %v4172_v13  ;;  %v1320_v56 = vmul.f32 %v4170_v33, %v4170_v33  ;;  %v1322_v36 = vmul.f32 %v4172_v13, %v4172_v13  ;;  %v1426_v51 = vadd.f32 %v1425_v52, %v1317_v8 }
 0x1e0   : > { %v4188_v43 = vpop.f32.mrf.mxu0  ;;  %v4190_v24 = vpop.f32.mrf.mxu1  ;;  %v1500_v63 = vadd.f32 %v1499_v16, %v1319_v34  ;;  %v1078_v41 = vadd.f32 %v1077_v37, %v4170_v33  ;;  %v1152_v49 = vadd.f32 %v1151_v23, %v4172_v13 }
 0x1e1   : > { %1631 = vst [vmem:[%s3682_s24 + $0x268] sm:$0xff] %v4188_v43  ;;  %1633 = vst [vmem:[%s3682_s24 + $0x278] sm:$0xff] %v4190_v24  ;;  %v1321_v53 = vmul.f32 %v4188_v43, %v4188_v43  ;;  %v1323_v25 = vmul.f32 %v4190_v24, %v4190_v24  ;;  %v1390_v48 = vadd.f32 %v1389_v45, %v1320_v56 }
 0x1e2   : > { %v4204_v17 = vpop.f32.mrf.mxu0  ;;  %v4206_v42 = vpop.f32.mrf.mxu1  ;;  %v1115_v57 = vadd.f32 %v1114_v46, %v4188_v43  ;;  %v1189_v47 = vadd.f32 %v1188_v38, %v4190_v24  ;;  %v1464_v33 = vadd.f32 %v1463_v22, %v1322_v36 }
 0x1e3   : > { %1634 = vst [vmem:[%s3682_s24 + $0x280] sm:$0xff] %v4204_v17  ;;  %1636 = vst [vmem:[%s3682_s24 + $0x290] sm:$0xff] %v4206_v42  ;;  %v1324_v10 = vmul.f32 %v4204_v17, %v4204_v17  ;;  %v1326_v26 = vmul.f32 %v4206_v42, %v4206_v42  ;;  %v1427_v21 = vadd.f32 %v1426_v51, %v1321_v53 }
 0x1e4   : > { %v4218_v28 = vpop.f32.mrf.mxu0  ;;  %v4220_v44 = vpop.f32.mrf.mxu1  ;;  %v1501_v24 = vadd.f32 %v1500_v63, %v1323_v25  ;;  %v1079_v6 = vadd.f32 %v1078_v41, %v4204_v17  ;;  %v1153_v60 = vadd.f32 %v1152_v49, %v4206_v42 }
 0x1e5   : > { %1635 = vst [vmem:[%s3682_s24 + $0x288] sm:$0xff] %v4218_v28  ;;  %1637 = vst [vmem:[%s3682_s24 + $0x298] sm:$0xff] %v4220_v44  ;;  %v1325_v58 = vmul.f32 %v4218_v28, %v4218_v28  ;;  %v1327_v13 = vmul.f32 %v4220_v44, %v4220_v44  ;;  %v1391_v0 = vadd.f32 %v1390_v48, %v1324_v10 }
 0x1e6   : > { %v4236_v32 = vpop.f32.mrf.mxu0  ;;  %v4238_v4 = vpop.f32.mrf.mxu1  ;;  %v1116_v18 = vadd.f32 %v1115_v57, %v4218_v28  ;;  %v1190_v19 = vadd.f32 %v1189_v47, %v4220_v44  ;;  %v1465_v17 = vadd.f32 %v1464_v33, %v1326_v26 }
 0x1e7   : > { %1638 = vst [vmem:[%s3682_s24 + $0x2a0] sm:$0xff] %v4236_v32  ;;  %1640 = vst [vmem:[%s3682_s24 + $0x2b0] sm:$0xff] %v4238_v4  ;;  %v1328_v43 = vmul.f32 %v4236_v32, %v4236_v32  ;;  %v1330_v3 = vmul.f32 %v4238_v4, %v4238_v4  ;;  %v1428_v5 = vadd.f32 %v1427_v21, %v1325_v58 }
 0x1e8   : > { %v4252_v11 = vpop.f32.mrf.mxu0  ;;  %v4254_v35 = vpop.f32.mrf.mxu1  ;;  %v1502_v44 = vadd.f32 %v1501_v24, %v1327_v13  ;;  %v1080_v54 = vadd.f32 %v1079_v6, %v4236_v32  ;;  %v1154_v29 = vadd.f32 %v1153_v60, %v4238_v4 }
 0x1e9   : > { %1639 = vst [vmem:[%s3682_s24 + $0x2a8] sm:$0xff] %v4252_v11  ;;  %1641 = vst [vmem:[%s3682_s24 + $0x2b8] sm:$0xff] %v4254_v35  ;;  %v1329_v40 = vmul.f32 %v4252_v11, %v4252_v11  ;;  %v1331_v42 = vmul.f32 %v4254_v35, %v4254_v35  ;;  %v1392_v7 = vadd.f32 %v1391_v0, %v1328_v43 }
 0x1ea   : > { %v4266_v9 = vpop.f32.mrf.mxu0  ;;  %v4268_v30 = vpop.f32.mrf.mxu1  ;;  %v1117_v59 = vadd.f32 %v1116_v18, %v4252_v11  ;;  %v1191_v8 = vadd.f32 %v1190_v19, %v4254_v35  ;;  %v1466_v16 = vadd.f32 %v1465_v17, %v1330_v3 }
 0x1eb   : > { %1642 = vst [vmem:[%s3682_s24 + $0x2c0] sm:$0xff] %v4266_v9  ;;  %1644 = vst [vmem:[%s3682_s24 + $0x2d0] sm:$0xff] %v4268_v30  ;;  %v1332_v28 = vmul.f32 %v4266_v9, %v4266_v9  ;;  %v1334_v39 = vmul.f32 %v4268_v30, %v4268_v30  ;;  %v1429_v37 = vadd.f32 %v1428_v5, %v1329_v40 }
 0x1ec   : > { %v745_v15 = vpop.f32.mrf.mxu0  ;;  %v1002_v62 = vpop.f32.mrf.mxu1  ;;  %v1503_v45 = vadd.f32 %v1502_v44, %v1331_v42  ;;  %v1081_v11 = vadd.f32 %v1080_v54, %v4266_v9  ;;  %v1155_v23 = vadd.f32 %v1154_v29, %v4268_v30 }
 0x1ed   : > { %1643 = vst [vmem:[%s3682_s24 + $0x2c8] sm:$0xff] %v745_v15  ;;  %1645 = vst [vmem:[%s3682_s24 + $0x2d8] sm:$0xff] %v1002_v62  ;;  %v1333_v52 = vmul.f32 %v745_v15, %v745_v15  ;;  %v1335_v32 = vmul.f32 %v1002_v62, %v1002_v62  ;;  %v1393_v35 = vadd.f32 %v1392_v7, %v1332_v28 }
 0x1ee   : > { %v4294_v50 = vpop.f32.mrf.mxu0  ;;  %v4296_v27 = vpop.f32.mrf.mxu1  ;;  %v1118_v36 = vadd.f32 %v1117_v59, %v745_v15  ;;  %v1192_v53 = vadd.f32 %v1191_v8, %v1002_v62  ;;  %v1467_v25 = vadd.f32 %v1466_v16, %v1334_v39 }
 0x1ef   : > { %1646 = vst [vmem:[%s3682_s24 + $0x2e0] sm:$0xff] %v4294_v50  ;;  %1648 = vst [vmem:[%s3682_s24 + $0x2f0] sm:$0xff] %v4296_v27  ;;  %v1336_v4 = vmul.f32 %v4294_v50, %v4294_v50  ;;  %v1338_v22 = vmul.f32 %v4296_v27, %v4296_v27  ;;  %v1430_v10 = vadd.f32 %v1429_v37, %v1333_v52 }
 0x1f0   : > { %v751_v61 = vpop.f32.mrf.mxu0  ;;  %v1008_v1 = vpop.f32.mrf.mxu1  ;;  %v1504_v49 = vadd.f32 %v1503_v45, %v1335_v32  ;;  %v1082_v30 = vadd.f32 %v1081_v11, %v4294_v50  ;;  %v1156_v62 = vadd.f32 %v1155_v23, %v4296_v27 }
 0x1f1   : > { %1647 = vst [vmem:[%s3682_s24 + $0x2e8] sm:$0xff] %v751_v61  ;;  %1649 = vst [vmem:[%s3682_s24 + $0x2f8] sm:$0xff] %v1008_v1  ;;  %v1337_v51 = vmul.f32 %v751_v61, %v751_v61  ;;  %v1339_v63 = vmul.f32 %v1008_v1, %v1008_v1  ;;  %v1394_v15 = vadd.f32 %v1393_v35, %v1336_v4 }
 0x1f2   : > { %v755_v20 = vpop.f32.mrf.mxu0  ;;  %v1012_v31 = vpop.f32.mrf.mxu1  ;;  %v1119_v57 = vadd.f32 %v1118_v36, %v751_v61  ;;  %v1193_v47 = vadd.f32 %v1192_v53, %v1008_v1  ;;  %v1468_v13 = vadd.f32 %v1467_v25, %v1338_v22 }
 0x1f3   : > { %1650 = vst [vmem:[%s3682_s24 + $0x300] sm:$0xff] %v755_v20  ;;  %1652 = vst [vmem:[%s3682_s24 + $0x310] sm:$0xff] %v1012_v31  ;;  %v1340_v41 = vmul.f32 %v755_v20, %v755_v20  ;;  %v1342_v26 = vmul.f32 %v1012_v31, %v1012_v31  ;;  %v1431_v43 = vadd.f32 %v1430_v10, %v1337_v51 }
 0x1f4   : > { %v757_v34 = vpop.f32.mrf.mxu0  ;;  %v1014_v56 = vpop.f32.mrf.mxu1  ;;  %v1505_v50 = vadd.f32 %v1504_v49, %v1339_v63  ;;  %v1083_v0 = vadd.f32 %v1082_v30, %v755_v20  ;;  %v1157_v27 = vadd.f32 %v1156_v62, %v1012_v31 }
 0x1f5   : > { %1651 = vst [vmem:[%s3682_s24 + $0x308] sm:$0xff] %v757_v34  ;;  %1653 = vst [vmem:[%s3682_s24 + $0x318] sm:$0xff] %v1014_v56  ;;  %v1341_v58 = vmul.f32 %v757_v34, %v757_v34  ;;  %v1343_v24 = vmul.f32 %v1014_v56, %v1014_v56  ;;  %v1395_v60 = vadd.f32 %v1394_v15, %v1340_v41 }
 0x1f6   : > { %v761_v46 = vpop.f32.mrf.mxu0  ;;  %v1018_v38 = vpop.f32.mrf.mxu1  ;;  %v1120_v61 = vadd.f32 %v1119_v57, %v757_v34  ;;  %v1194_v1 = vadd.f32 %v1193_v47, %v1014_v56  ;;  %v1469_v17 = vadd.f32 %v1468_v13, %v1342_v26 }
 0x1f7   : > { %1654 = vst [vmem:[%s3682_s24 + $0x320] sm:$0xff] %v761_v46  ;;  %1656 = vst [vmem:[%s3682_s24 + $0x330] sm:$0xff] %v1018_v38  ;;  %v1344_v6 = vmul.f32 %v761_v46, %v761_v46  ;;  %v1346_v3 = vmul.f32 %v1018_v38, %v1018_v38  ;;  %v1432_v5 = vadd.f32 %v1431_v43, %v1341_v58 }
 0x1f8   : > { %v763_v9 = vpop.f32.mrf.mxu0  ;;  %v1020_v48 = vpop.f32.mrf.mxu1  ;;  %v1506_v7 = vadd.f32 %v1505_v50, %v1343_v24  ;;  %v1084_v20 = vadd.f32 %v1083_v0, %v761_v46  ;;  %v1158_v29 = vadd.f32 %v1157_v27, %v1018_v38 }
 0x1f9   : > { %1655 = vst [vmem:[%s3682_s24 + $0x328] sm:$0xff] %v763_v9  ;;  %1657 = vst [vmem:[%s3682_s24 + $0x338] sm:$0xff] %v1020_v48  ;;  %v1345_v40 = vmul.f32 %v763_v9, %v763_v9  ;;  %v1347_v42 = vmul.f32 %v1020_v48, %v1020_v48  ;;  %v1396_v31 = vadd.f32 %v1395_v60, %v1344_v6 }
 0x1fa   : > { %v767_v33 = vpop.f32.mrf.mxu0  ;;  %v1024_v21 = vpop.f32.mrf.mxu1  ;;  %v1121_v59 = vadd.f32 %v1120_v61, %v763_v9  ;;  %v1195_v8 = vadd.f32 %v1194_v1, %v1020_v48  ;;  %v1470_v16 = vadd.f32 %v1469_v17, %v1346_v3 }
 0x1fb   : > { %1658 = vst [vmem:[%s3682_s24 + $0x340] sm:$0xff] %v767_v33  ;;  %1660 = vst [vmem:[%s3682_s24 + $0x350] sm:$0xff] %v1024_v21  ;;  %v1348_v28 = vmul.f32 %v767_v33, %v767_v33  ;;  %v1350_v39 = vmul.f32 %v1024_v21, %v1024_v21  ;;  %v1433_v37 = vadd.f32 %v1432_v5, %v1345_v40 }
 0x1fc   : > { %v769_v18 = vpop.f32.mrf.mxu0  ;;  %v1026_v19 = vpop.f32.mrf.mxu1  ;;  %v1507_v45 = vadd.f32 %v1506_v7, %v1347_v42  ;;  %v1085_v11 = vadd.f32 %v1084_v20, %v767_v33  ;;  %v1159_v23 = vadd.f32 %v1158_v29, %v1024_v21 }
 0x1fd   : > { %1659 = vst [vmem:[%s3682_s24 + $0x348] sm:$0xff] %v769_v18  ;;  %1661 = vst [vmem:[%s3682_s24 + $0x358] sm:$0xff] %v1026_v19  ;;  %v1349_v52 = vmul.f32 %v769_v18, %v769_v18  ;;  %v1351_v32 = vmul.f32 %v1026_v19, %v1026_v19  ;;  %v1397_v35 = vadd.f32 %v1396_v31, %v1348_v28 }
 0x1fe   : > { %v773_v44 = vpop.f32.mrf.mxu0  ;;  %v1030_v54 = vpop.f32.mrf.mxu1  ;;  %v1122_v36 = vadd.f32 %v1121_v59, %v769_v18  ;;  %v1196_v53 = vadd.f32 %v1195_v8, %v1026_v19  ;;  %v1471_v25 = vadd.f32 %v1470_v16, %v1350_v39 }
 0x1ff   : > { %1662 = vst [vmem:[%s3682_s24 + $0x360] sm:$0xff] %v773_v44  ;;  %1664 = vst [vmem:[%s3682_s24 + $0x370] sm:$0xff] %v1030_v54  ;;  %v1352_v4 = vmul.f32 %v773_v44, %v773_v44  ;;  %v1354_v22 = vmul.f32 %v1030_v54, %v1030_v54  ;;  %v1434_v10 = vadd.f32 %v1433_v37, %v1349_v52 }
 0x200   : > { %v775_v34 = vpop.f32.mrf.mxu0  ;;  %v1032_v56 = vpop.f32.mrf.mxu1  ;;  %v1086_v63 = vadd.f32 %v1085_v11, %v773_v44  ;;  %v1508_v49 = vadd.f32 %v1507_v45, %v1351_v32  ;;  %v1160_v15 = vadd.f32 %v1159_v23, %v1030_v54 }
 0x201   : > { %1663 = vst [vmem:[%s3682_s24 + $0x368] sm:$0xff] %v775_v34  ;;  %1665 = vst [vmem:[%s3682_s24 + $0x378] sm:$0xff] %v1032_v56  ;;  %v1353_v51 = vmul.f32 %v775_v34, %v775_v34  ;;  %v1355_v41 = vmul.f32 %v1032_v56, %v1032_v56  ;;  %v1398_v30 = vadd.f32 %v1397_v35, %v1352_v4 }
 0x202   : > { %v779_v46 = vpop.f32.mrf.mxu0  ;;  %v1036_v38 = vpop.f32.mrf.mxu1  ;;  %v1123_v57 = vadd.f32 %v1122_v36, %v775_v34  ;;  %v1197_v47 = vadd.f32 %v1196_v53, %v1032_v56  ;;  %v1472_v13 = vadd.f32 %v1471_v25, %v1354_v22 }
 0x203   : > { %1666 = vst [vmem:[%s3682_s24 + $0x380] sm:$0xff] %v779_v46  ;;  %1668 = vst [vmem:[%s3682_s24 + $0x390] sm:$0xff] %v1036_v38  ;;  %v1356_v62 = vmul.f32 %v779_v46, %v779_v46  ;;  %v1358_v26 = vmul.f32 %v1036_v38, %v1036_v38  ;;  %v1435_v43 = vadd.f32 %v1434_v10, %v1353_v51 }
 0x204   : > { %v781_v9 = vpop.f32.mrf.mxu0  ;;  %v1038_v48 = vpop.f32.mrf.mxu1  ;;  %v1509_v50 = vadd.f32 %v1508_v49, %v1355_v41  ;;  %v1087_v0 = vadd.f32 %v1086_v63, %v779_v46  ;;  %v1161_v60 = vadd.f32 %v1160_v15, %v1036_v38 }
 0x205   : > { %1667 = vst [vmem:[%s3682_s24 + $0x388] sm:$0xff] %v781_v9  ;;  %1669 = vst [vmem:[%s3682_s24 + $0x398] sm:$0xff] %v1038_v48  ;;  %v1357_v58 = vmul.f32 %v781_v9, %v781_v9  ;;  %v1359_v24 = vmul.f32 %v1038_v48, %v1038_v48  ;;  %v1399_v61 = vadd.f32 %v1398_v30, %v1356_v62 }
 0x206   : > { %v785_v33 = vpop.f32.mrf.mxu0  ;;  %v1042_v21 = vpop.f32.mrf.mxu1  ;;  %v1124_v1 = vadd.f32 %v1123_v57, %v781_v9  ;;  %v1198_v3 = vadd.f32 %v1197_v47, %v1038_v48  ;;  %v1473_v17 = vadd.f32 %v1472_v13, %v1358_v26 }
 0x207   : > { %v1360_v6 = vmul.f32 %v785_v33, %v785_v33  ;;  %1670 = vst [vmem:[%s3682_s24 + $0x3a0] sm:$0xff] %v785_v33  ;;  %1672 = vst [vmem:[%s3682_s24 + $0x3b0] sm:$0xff] %v1042_v21  ;;  %v1362_v27 = vmul.f32 %v1042_v21, %v1042_v21  ;;  %v1436_v5 = vadd.f32 %v1435_v43, %v1357_v58 }
 0x208   : > { %v787_v18 = vpop.f32.mrf.mxu0  ;;  %v1044_v19 = vpop.f32.mrf.mxu1  ;;  %v1088_v42 = vadd.f32 %v1087_v0, %v785_v33  ;;  %v1510_v7 = vadd.f32 %v1509_v50, %v1359_v24  ;;  %v1162_v31 = vadd.f32 %v1161_v60, %v1042_v21 }
 0x209   : > { %v1361_v40 = vmul.f32 %v787_v18, %v787_v18  ;;  %1671 = vst [vmem:[%s3682_s24 + $0x3a8] sm:$0xff] %v787_v18  ;;  %1673 = vst [vmem:[%s3682_s24 + $0x3b8] sm:$0xff] %v1044_v19  ;;  %v1363_v28 = vmul.f32 %v1044_v19, %v1044_v19  ;;  %v1400_v20 = vadd.f32 %v1399_v61, %v1360_v6 }
 0x20a   : > { %v791_v44 = vpop.f32.mrf.mxu0  ;;  %v1048_v54 = vpop.f32.mrf.mxu1  ;;  %v1474_v59 = vadd.f32 %v1473_v17, %v1362_v27  ;;  %v1125_v8 = vadd.f32 %v1124_v1, %v787_v18  ;;  %v1199_v39 = vadd.f32 %v1198_v3, %v1044_v19 }
 0x20b   : > { %v1364_v29 = vmul.f32 %v791_v44, %v791_v44  ;;  %1674 = vst [vmem:[%s3682_s24 + $0x3c0] sm:$0xff] %v791_v44  ;;  %1676 = vst [vmem:[%s3682_s24 + $0x3d0] sm:$0xff] %v1048_v54  ;;  %v1366_v52 = vmul.f32 %v1048_v54, %v1048_v54  ;;  %v1437_v16 = vadd.f32 %v1436_v5, %v1361_v40 }
 0x20c   : > { %v793_v34 = vpop.f32.mrf.mxu0  ;;  %v1050_v56 = vpop.f32.mrf.mxu1  ;;  %v1089_v37 = vadd.f32 %v1088_v42, %v791_v44  ;;  %v1163_v32 = vadd.f32 %v1162_v31, %v1048_v54  ;;  %v1511_v45 = vadd.f32 %v1510_v7, %v1363_v28 }
 0x20d   : > { %v1365_v4 = vmul.f32 %v793_v34, %v793_v34  ;;  %1675 = vst [vmem:[%s3682_s24 + $0x3c8] sm:$0xff] %v793_v34  ;;  %1677 = vst [vmem:[%s3682_s24 + $0x3d8] sm:$0xff] %v1050_v56  ;;  %v1401_v11 = vadd.f32 %v1400_v20, %v1364_v29  ;;  %v1126_v35 = vadd.f32 %v1125_v8, %v793_v34 }
 0x20e   : > { %v1367_v23 = vmul.f32 %v1050_v56, %v1050_v56  ;;  %v797_v46 = vpop.f32.mrf.mxu0  ;;  %v1054_v38 = vpop.f32.mrf.mxu1  ;;  %v1200_v36 = vadd.f32 %v1199_v39, %v1050_v56  ;;  %v1475_v25 = vadd.f32 %v1474_v59, %v1366_v52 }
 0x20f   : > { %v1090_v53 = vadd.f32 %v1089_v37, %v797_v46  ;;  %v1368_v22 = vmul.f32 %v797_v46, %v797_v46  ;;  %1678 = vst [vmem:[%s3682_s24 + $0x3e0] sm:$0xff] %v797_v46  ;;  %v1164_v51 = vadd.f32 %v1163_v32, %v1054_v38  ;;  %1680 = vst [vmem:[%s3682_s24 + $0x3f0] sm:$0xff] %v1054_v38 }
 0x210   : > { %v1438_v10 = vadd.f32 %v1437_v16, %v1365_v4  ;;  %v1512_v63 = vadd.f32 %v1511_v45, %v1367_v23  ;;  %v1370_v41 = vmul.f32 %v1054_v38, %v1054_v38  ;;  %v799_v9 = vpop.f32.mrf.mxu0  ;;  %v1056_v48 = vpop.f32.mrf.mxu1  ;;  %v1219_v46 = vsub.s32 %v1216_v14, %v3893_v12  ;;  %v1243_v14 = vld [vmem:[#allocation3] sm:$0xf] }
 0x211   : > { %v1091_v49 = vrot.slane %v1090_v53, 4  ;;  %v1402_v30 = vadd.f32 %v1401_v11, %v1368_v22  ;;  %v1165_v15 = vrot.slane %v1164_v51, 4  ;;  %v1127_v62 = vadd.f32 %v1126_v35, %v799_v9  ;;  %1679 = vst [vmem:[%s3682_s24 + $0x3e8] sm:$0xff] %v799_v9  ;;  %1681 = vst [vmem:[%s3682_s24 + $0x3f8] sm:$0xff] %v1056_v48 }
 0x212   : > { %v1476_v57 = vadd.f32 %v1475_v25, %v1370_v41  ;;  %v1369_v47 = vmul.f32 %v799_v9, %v799_v9  ;;  %v1201_v26 = vadd.f32 %v1200_v36, %v1056_v48  ;;  %v1371_v58 = vmul.f32 %v1056_v48, %v1056_v48 }
 0x213   : > { %v1092_v33 = vadd.f32 %v1091_v49, %v1090_v53  ;;  %v1403_v21 = vrot.slane %v1402_v30, 4  ;;  %v1166_v13 = vadd.f32 %v1165_v15, %v1164_v51  ;;  %v1128_v43 = vrot.slane %v1127_v62, 4 }
 0x214   : > { %v1477_v24 = vrot.slane %v1476_v57, 4  ;;  %v1439_v6 = vadd.f32 %v1438_v10, %v1369_v47  ;;  %v1202_v50 = vrot.slane %v1201_v26, 4  ;;  %v1513_v0 = vadd.f32 %v1512_v63, %v1371_v58 }
 0x215   : > { %v1093_v60 = vrot.slane %v1092_v33, 2  ;;  %v1404_v27 = vadd.f32 %v1403_v21, %v1402_v30  ;;  %v1167_v18 = vrot.slane %v1166_v13, 2  ;;  %v1129_v19 = vadd.f32 %v1128_v43, %v1127_v62 }
 0x216   : > { %v1478_v61 = vadd.f32 %v1477_v24, %v1476_v57  ;;  %v1440_v1 = vrot.slane %v1439_v6, 4  ;;  %v1203_v3 = vadd.f32 %v1202_v50, %v1201_v26  ;;  %v1514_v40 = vrot.slane %v1513_v0, 4  ;;  %v1059_v26 = vld [vmem:[#allocation2] sm:$0xf] }
 0x217   : > { %v1094_v17 = vadd.f32 %v1093_v60, %v1092_v33  ;;  %v1405_v5 = vrot.slane %v1404_v27, 2  ;;  %v1168_v42 = vadd.f32 %v1167_v18, %v1166_v13  ;;  %v1130_v28 = vrot.slane %v1129_v19, 2 }
 0x218   : > { %v1479_v44 = vrot.slane %v1478_v61, 2  ;;  %v1441_v54 = vadd.f32 %v1440_v1, %v1439_v6  ;;  %v1204_v7 = vrot.slane %v1203_v3, 2  ;;  %v1515_v20 = vadd.f32 %v1514_v40, %v1513_v0 }
 0x219   : > { %v1095_v31 = vrot.slane %v1094_v17, 1  ;;  %v1406_v29 = vadd.f32 %v1405_v5, %v1404_v27  ;;  %v1169_v59 = vrot.slane %v1168_v42, 1  ;;  %v1131_v8 = vadd.f32 %v1130_v28, %v1129_v19 }
 0x21a   : > { %v1480_v39 = vadd.f32 %v1479_v44, %v1478_v61  ;;  %v1442_v52 = vrot.slane %v1441_v54, 2  ;;  %v1205_v34 = vadd.f32 %v1204_v7, %v1203_v3  ;;  %v1516_v56 = vrot.slane %v1515_v20, 2 }
 0x21b   : > { %v1407_v16 = vrot.slane %v1406_v29, 1  ;;  %v1132_v37 = vrot.slane %v1131_v8, 1  ;;  %v1096_v35 = vadd.f32 %v1095_v31, %v1094_v17  ;;  %v1170_v38 = vadd.f32 %v1169_v59, %v1168_v42 }
 0x21c   : > { %v1481_v32 = vrot.slane %v1480_v39, 1  ;;  %v1443_v4 = vadd.f32 %v1442_v52, %v1441_v54  ;;  %v1206_v45 = vrot.slane %v1205_v34, 1  ;;  %v1517_v11 = vadd.f32 %v1516_v56, %v1515_v20 }
 0x21d   : > { %v1133_v23 = vadd.f32 %v1132_v37, %v1131_v8  ;;  %v1408_v51 = vadd.f32 %v1407_v16, %v1406_v29 }
 0x21e   : > { %v1444_v36 = vrot.slane %v1443_v4, 1  ;;  %v1207_v53 = vadd.f32 %v1206_v45, %v1205_v34  ;;  %v1518_v22 = vrot.slane %v1517_v11, 1  ;;  %v1482_v10 = vadd.f32 %v1481_v32, %v1480_v39 }
 0x21f   : > { %v1212_v25 = vcombine.low %v1096_v35, %v1133_v23 }
 0x220   : > { %v1445_v63 = vadd.f32 %v1444_v36, %v1443_v4  ;;  %v1213_v41 = vcombine.low %v1170_v38, %v1207_v53  ;;  %v1519_v9 = vadd.f32 %v1518_v22, %v1517_v11 }
 0x221   : > { %v1220_v48 = vrot.slane %v1212_v25, %v1219_v46 }
 0x222   : > { %v1524_v49 = vcombine.low %v1408_v51, %v1445_v63  ;;  %v1227_v30 = vrot.slane %v1213_v41, %v1219_v46  ;;  %v1525_v15 = vcombine.low %v1482_v10, %v1519_v9 }
 0x224   : > { %v1532_v62 = vrot.slane %v1524_v49, %v1219_v46  ;;  %v1228_v57 = vcombine.low %v1220_v48, %v1227_v30  ;;  %v1539_v47 = vrot.slane %v1525_v15, %v1219_v46 }
 0x226   : > { %v1235_v2 = vrot.slane %v1228_v57, %v1219_v46  ;;  %v1540_v12 = vcombine.low %v1532_v62, %v1539_v47 }
 0x228   : > { %v1237_v58 = vadd.f32 %v1235_v2, %v1059_v26  ;;  %v1547_v33 = vrot.slane %v1540_v12, %v1219_v46 }
 0x22a   : > { %1242 = vst.msk [vmem:[#allocation2] sm:$0xf] %vm1240_vm1, %v1237_v58  ;;  %v1549_v21 = vadd.f32 %v1547_v33, %v1243_v14 }
 0x22c   : > { %1550 = vst.msk [vmem:[#allocation3] sm:$0xf] %vm1240_vm1, %v1549_v21 }
 0x22d PF: > { %s5038_s18 = sld [smem:[#allocation22_spill]] }
 0x233   : > { %p2973_p9 = scmp.ne.s32.totalorder %s5038_s18, 1 }
 0x234   : > { %s5039_s2 = sld [smem:[#allocation21_spill]] (!%p2973_p9) }
 0x235   : > { %1685 = sbr.rel (%p2973_p9) target bundleno = 997 (0x3e5), region = 72 }
 0x23a   : > { %p2974_p12 = scmp.ne.s32.totalorder %s5039_s2, 0 }
 0x23b   : > { %s5040_s13 = sld [smem:[#allocation29_spill]] (!%p2974_p12) }
 0x23c   : > { %1688 = sbr.rel (%p2974_p12) target bundleno = 609 (0x261), region = 76 }
 0x241   : > { %v1689_v13 = vld [vmem:[#allocation2] sm:$0xf]  ;;  %v1691_v43 = vld [vmem:[#allocation3] sm:$0xf]  ;;  %v1700_v27 = vlaneseq  ;;  %v1696_v18 = vld [vmem:[#allocation12] sm:$0xf] }
 0x242   : > { %v1690_v24 = vmul.f32 0.001953125, %v1689_v13  ;;  %v1692_v6 = vmul.f32 0.001953125, %v1691_v43  ;;  %v1705_v1 = vld [vmem:[%s5040_s13] sm:$0xf] }
 0x243   : > { %vm1702_vm2 = vcmp.lt.s32.totalorder %v1700_v27, 512 }
 0x244   : > { %v1693_v50 = vmul.f32 %v1690_v24, %v1690_v24 }
 0x246   : > { %v1694_v0 = vsub.f32 %v1692_v6, %v1693_v50 }
 0x248   : > { %v1695_v55 = vmax.f32 %v1694_v0, 0.0 }
 0x24a   : > { %v1697_v60 = vadd.f32 1e-05, %v1695_v55 }
 0x24c   : > { %3132 = vrsqrt.f32 %v1697_v60 }
 0x259   : > { %v3133_v19 = vpop.eup %3132 }
 0x25a   : > { %v1699_v61 = vmul.f32 %v3133_v19, %v1696_v18 }
 0x25c   : > { %1704 = vst.msk [vmem:[#allocation4] sm:$0xf] %vm1702_vm2, %v1699_v61  ;;  %v1706_v3 = vmul.f32 %v1699_v61, %v1690_v24 }
 0x25e   : > { %v1707_v40 = vsub.f32 %v1705_v1, %v1706_v3 }
 0x260   : > { %1708 = vst.msk [vmem:[#allocation5] sm:$0xf] %vm1702_vm2, %v1707_v40 }
 0x261 PF: > { %v2283_v17 = vld [vmem:[#allocation13 + $0x78] sm:$0xff]  ;;  %v3382_v42 = vmov 0.0   ;;  %v2282_v28 = vld [vmem:[#allocation13 + $0x70] sm:$0xff]  ;;  %v2281_v54 = vld [vmem:[#allocation13 + $0x68] sm:$0xff]  ;;  %v1842_v62 = vlaneseq  ;;  %s5041_s3 = sld [smem:[#allocation21_spill]] }
 0x262   : > { %v2315_v5 = vld [vmem:[#allocation13 + $0x178] sm:$0xff]  ;;  %2339 = vmatprep.subr.mxu0 %v3382_v42  ;;  %2564 = vmatprep.subr.mxu1 %v3382_v42  ;;  %v2314_v44 = vld [vmem:[#allocation13 + $0x170] sm:$0xff]  ;;  %v2313_v7 = vld [vmem:[#allocation13 + $0x168] sm:$0xff]  ;;  %s5042_s8 = sld [smem:[#allocation31_spill]] }
 0x263   : > { %2340 = vmatpush1.msra.mxu0 %v2283_v17  ;;  %2565 = vmatpush1.msra.mxu1 %v2315_v5  ;;  %v2280_v20 = vld [vmem:[#allocation13 + $0x60] sm:$0xff]  ;;  %v2279_v29 = vld [vmem:[#allocation13 + $0x58] sm:$0xff]  ;;  %v2278_v8 = vld [vmem:[#allocation13 + $0x50] sm:$0xff]  ;;  %v4415_v12 = vshrl.u32 %v1842_v62, 7 }
 0x264   : > { %2341 = vmatprep.subr.mxu0 %v3382_v42  ;;  %2566 = vmatprep.subr.mxu1 %v3382_v42  ;;  %v2312_v31 = vld [vmem:[#allocation13 + $0x160] sm:$0xff]  ;;  %v2311_v59 = vld [vmem:[#allocation13 + $0x158] sm:$0xff]  ;;  %v2310_v39 = vld [vmem:[#allocation13 + $0x150] sm:$0xff] }
 0x265   : > { %2342 = vmatpush1.msra.mxu0 %v2282_v28  ;;  %2567 = vmatpush1.msra.mxu1 %v2314_v44  ;;  %v2277_v52 = vld [vmem:[#allocation13 + $0x48] sm:$0xff]  ;;  %v2276_v56 = vld [vmem:[#allocation13 + $0x40] sm:$0xff]  ;;  %v2275_v37 = vld [vmem:[#allocation13 + $0x38] sm:$0xff]  ;;  %v1848_v13 = vsub.s32 1, %v4415_v12  ;;  %v1856_v43 = vsub.s32 3, %v4415_v12  ;;  %v1844_v0 = vsub.s32 0, %v4415_v12 }
 0x266   : > { %2343 = vmatprep.subr.mxu0 %v3382_v42  ;;  %2568 = vmatprep.subr.mxu1 %v3382_v42  ;;  %v2309_v34 = vld [vmem:[#allocation13 + $0x148] sm:$0xff]  ;;  %v2308_v16 = vld [vmem:[#allocation13 + $0x140] sm:$0xff]  ;;  %v2307_v32 = vld [vmem:[#allocation13 + $0x138] sm:$0xff]  ;;  %v1852_v55 = vsub.s32 2, %v4415_v12 }
 0x267   : > { %2344 = vmatpush1.msra.mxu0 %v2281_v54  ;;  %2569 = vmatpush1.msra.mxu1 %v2313_v7  ;;  %v2274_v4 = vld [vmem:[#allocation13 + $0x30] sm:$0xff]  ;;  %v2273_v11 = vld [vmem:[#allocation13 + $0x28] sm:$0xff]  ;;  %v2272_v23 = vld [vmem:[#allocation13 + $0x20] sm:$0xff]  ;;  %s2986_s6 = sshll.u32 %s5041_s3, 10 }
 0x268   : > { %2345 = vmatprep.subr.mxu0 %v3382_v42  ;;  %2570 = vmatprep.subr.mxu1 %v3382_v42  ;;  %v2306_v45 = vld [vmem:[#allocation13 + $0x130] sm:$0xff]  ;;  %v2305_v35 = vld [vmem:[#allocation13 + $0x128] sm:$0xff]  ;;  %v2304_v46 = vld [vmem:[#allocation13 + $0x120] sm:$0xff]  ;;  %s4436_s27 = scalar_lea.vmem [#allocation6], %s2986_s6 }
 0x269   : > { %2346 = vmatpush1.msra.mxu0 %v2280_v20  ;;  %2571 = vmatpush1.msra.mxu1 %v2312_v31  ;;  %v2271_v38 = vld [vmem:[#allocation13 + $0x18] sm:$0xff]  ;;  %v2270_v53 = vld [vmem:[#allocation13 + $0x10] sm:$0xff]  ;;  %v2269_v51 = vld [vmem:[#allocation13 + $0x8] sm:$0xff] }
 0x26a   : > { %2347 = vmatprep.subr.mxu0 %v3382_v42  ;;  %2572 = vmatprep.subr.mxu1 %v3382_v42  ;;  %v2303_v36 = vld [vmem:[#allocation13 + $0x118] sm:$0xff]  ;;  %v2302_v22 = vld [vmem:[#allocation13 + $0x110] sm:$0xff]  ;;  %v2301_v25 = vld [vmem:[#allocation13 + $0x108] sm:$0xff] }
 0x26b   : > { %2348 = vmatpush1.msra.mxu0 %v2279_v29  ;;  %2573 = vmatpush1.msra.mxu1 %v2311_v59  ;;  %v2268_v10 = vld [vmem:[#allocation13] sm:$0xff]  ;;  %v2299_v41 = vld [vmem:[#allocation13 + $0xf8] sm:$0xff]  ;;  %v2298_v48 = vld [vmem:[#allocation13 + $0xf0] sm:$0xff] }
 0x26c   : > { %2349 = vmatprep.subr.mxu0 %v3382_v42  ;;  %2574 = vmatprep.subr.mxu1 %v3382_v42  ;;  %v2300_v63 = vld [vmem:[#allocation13 + $0x100] sm:$0xff]  ;;  %v2331_v9 = vld [vmem:[#allocation13 + $0x1f8] sm:$0xff]  ;;  %v2330_v49 = vld [vmem:[#allocation13 + $0x1f0] sm:$0xff] }
 0x26d   : > { %2350 = vmatpush1.msra.mxu0 %v2278_v8  ;;  %2575 = vmatpush1.msra.mxu1 %v2310_v39  ;;  %v2297_v30 = vld [vmem:[#allocation13 + $0xe8] sm:$0xff]  ;;  %v2296_v57 = vld [vmem:[#allocation13 + $0xe0] sm:$0xff]  ;;  %v2295_v26 = vld [vmem:[#allocation13 + $0xd8] sm:$0xff] }
 0x26e   : > { %2351 = vmatprep.subr.mxu0 %v3382_v42  ;;  %2576 = vmatprep.subr.mxu1 %v3382_v42  ;;  %v2329_v15 = vld [vmem:[#allocation13 + $0x1e8] sm:$0xff]  ;;  %v2328_v47 = vld [vmem:[#allocation13 + $0x1e0] sm:$0xff]  ;;  %v2327_v2 = vld [vmem:[#allocation13 + $0x1d8] sm:$0xff] }
 0x26f   : > { %2352 = vmatpush1.msra.mxu0 %v2277_v52  ;;  %2577 = vmatpush1.msra.mxu1 %v2309_v34  ;;  %v2294_v14 = vld [vmem:[#allocation13 + $0xd0] sm:$0xff]  ;;  %v2293_v33 = vld [vmem:[#allocation13 + $0xc8] sm:$0xff]  ;;  %v2292_v24 = vld [vmem:[#allocation13 + $0xc0] sm:$0xff] }
 0x270   : > { %2353 = vmatprep.subr.mxu0 %v3382_v42  ;;  %2578 = vmatprep.subr.mxu1 %v3382_v42  ;;  %v2326_v58 = vld [vmem:[#allocation13 + $0x1d0] sm:$0xff]  ;;  %v2325_v21 = vld [vmem:[#allocation13 + $0x1c8] sm:$0xff]  ;;  %v2324_v6 = vld [vmem:[#allocation13 + $0x1c0] sm:$0xff] }
 0x271   : > { %2354 = vmatpush1.msra.mxu0 %v2276_v56  ;;  %2579 = vmatpush1.msra.mxu1 %v2308_v16  ;;  %v1840_v50 = vld [vmem:[#allocation4] sm:$0xf]  ;;  %v2291_v60 = vld [vmem:[#allocation13 + $0xb8] sm:$0xff]  ;;  %v1715_v17 = vld [vmem:[%s4436_s27 + $0x18] sm:$0xff] }
 0x272   : > { %2355 = vmatprep.subr.mxu0 %v3382_v42  ;;  %2580 = vmatprep.subr.mxu1 %v3382_v42  ;;  %v2323_v27 = vld [vmem:[#allocation13 + $0x1b8] sm:$0xff]  ;;  %v2290_v18 = vld [vmem:[#allocation13 + $0xb0] sm:$0xff]  ;;  %v4430_v19 = vrot.slane %v1840_v50, %v1848_v13  ;;  %v4432_v1 = vrot.slane %v1840_v50, %v1856_v43  ;;  %v4440_v5 = vrot.slane %v1840_v50, %v1844_v0  ;;  %v2289_v54 = vld [vmem:[#allocation13 + $0xa8] sm:$0xff] }
 0x273   : > { %2356 = vmatpush1.msra.mxu0 %v2275_v37  ;;  %2581 = vmatpush1.msra.mxu1 %v2307_v32  ;;  %v1990_v61 = vld [vmem:[#allocation5] sm:$0xf]  ;;  %v2322_v3 = vld [vmem:[#allocation13 + $0x1b0] sm:$0xff]  ;;  %v4443_v44 = vrot.slane %v1840_v50, %v1852_v55  ;;  %v2321_v7 = vld [vmem:[#allocation13 + $0x1a8] sm:$0xff] }
 0x274   : > { %2357 = vmatprep.subr.mxu0 %v3382_v42  ;;  %2582 = vmatprep.subr.mxu1 %v3382_v42  ;;  %v1713_v40 = vld [vmem:[%s4436_s27 + $0x8] sm:$0xff]  ;;  %v1712_v28 = vld [vmem:[%s4436_s27] sm:$0xff]  ;;  %v4447_v20 = vrot.slane %v1990_v61, %v1848_v13  ;;  %v1714_v31 = vld [vmem:[%s4436_s27 + $0x10] sm:$0xff]  ;;  %v1865_v59 = vmul.f32 %v4432_v1, %v1715_v17  ;;  %v4452_v8 = vrot.slane %v1990_v61, %v1856_v43 }
 0x275   : > { %2358 = vmatpush1.msra.mxu0 %v2274_v4  ;;  %2583 = vmatpush1.msra.mxu1 %v2306_v45  ;;  %v1863_v29 = vmul.f32 %v4430_v19, %v1713_v40  ;;  %v1717_v39 = vld [vmem:[%s4436_s27 + $0x28] sm:$0xff]  ;;  %v1719_v52 = vld [vmem:[%s4436_s27 + $0x38] sm:$0xff]  ;;  %v1862_v16 = vmul.f32 %v4440_v5, %v1712_v28  ;;  %v4459_v37 = vrot.slane %v1990_v61, %v1844_v0  ;;  %v1716_v45 = vld [vmem:[%s4436_s27 + $0x20] sm:$0xff] }
 0x276   : > { %2359 = vmatprep.subr.mxu0 %v3382_v42  ;;  %2584 = vmatprep.subr.mxu1 %v3382_v42  ;;  %v2288_v34 = vld [vmem:[#allocation13 + $0xa0] sm:$0xff]  ;;  %v1864_v32 = vmul.f32 %v4443_v44, %v1714_v31  ;;  %v4462_v4 = vrot.slane %v1990_v61, %v1852_v55  ;;  %v2317_v62 = vld [vmem:[#allocation13 + $0x188] sm:$0xff]  ;;  %v1725_v12 = vld [vmem:[%s4436_s27 + $0x68] sm:$0xff] }
 0x277   : > { %2360 = vmatpush1.msra.mxu0 %v2273_v11  ;;  %2585 = vmatpush1.msra.mxu1 %v2305_v35  ;;  %v2320_v56 = vld [vmem:[#allocation13 + $0x1a0] sm:$0xff]  ;;  %v2287_v35 = vld [vmem:[#allocation13 + $0x98] sm:$0xff] }
 0x278   : > { %2361 = vmatprep.subr.mxu0 %v3382_v42  ;;  %2586 = vmatprep.subr.mxu1 %v3382_v42  ;;  %v1718_v11 = vld [vmem:[%s4436_s27 + $0x30] sm:$0xff] }
 0x279   : > { %2362 = vmatpush1.msra.mxu0 %v2272_v23  ;;  %2587 = vmatpush1.msra.mxu1 %v2304_v46  ;;  %v2319_v23 = vld [vmem:[#allocation13 + $0x198] sm:$0xff]  ;;  %v1867_v46 = vmul.f32 %v4430_v19, %v1717_v39  ;;  %v2316_v50 = vld [vmem:[#allocation13 + $0x180] sm:$0xff] }
 0x27a   : > { %2363 = vmatprep.subr.mxu0 %v3382_v42  ;;  %2588 = vmatprep.subr.mxu1 %v3382_v42  ;;  %v1726_v28 = vld [vmem:[%s4436_s27 + $0x70] sm:$0xff] }
 0x27b   : > { %2364 = vmatpush1.msra.mxu0 %v2271_v38  ;;  %2589 = vmatpush1.msra.mxu1 %v2303_v36  ;;  %v1869_v38 = vmul.f32 %v4432_v1, %v1719_v52  ;;  %v1721_v36 = vld [vmem:[%s4436_s27 + $0x48] sm:$0xff] }
 0x27c   : > { %2365 = vmatprep.subr.mxu0 %v3382_v42  ;;  %2590 = vmatprep.subr.mxu1 %v3382_v42 }
 0x27d   : > { %2366 = vmatpush1.msra.mxu0 %v2270_v53  ;;  %2591 = vmatpush1.msra.mxu1 %v2302_v22  ;;  %v2013_v53 = vadd.f32 %v4447_v20, %v1863_v29  ;;  %v2015_v22 = vadd.f32 %v4452_v8, %v1865_v59 }
 0x27e   : > { %2367 = vmatprep.subr.mxu0 %v3382_v42  ;;  %2592 = vmatprep.subr.mxu1 %v3382_v42 }
 0x27f   : > { %2368 = vmatpush1.msra.mxu0 %v2269_v51  ;;  %2593 = vmatpush1.msra.mxu1 %v2301_v25  ;;  %v1723_v51 = vld [vmem:[%s4436_s27 + $0x58] sm:$0xff]  ;;  %v2286_v25 = vld [vmem:[#allocation13 + $0x90] sm:$0xff] }
 0x280   : > { %2369 = vmatprep.subr.mxu0 %v3382_v42  ;;  %2594 = vmatprep.subr.mxu1 %v3382_v42 }
 0x281   : > { %2370 = vmatpush1.msra.mxu0 %v2268_v10  ;;  %2595 = vmatpush1.msra.mxu1 %v2300_v63  ;;  %v2318_v10 = vld [vmem:[#allocation13 + $0x190] sm:$0xff]  ;;  %v2012_v63 = vadd.f32 %v4459_v37, %v1862_v16 }
 0x282   : > { %2371 = vmatprep.subr.mxu0 %v3382_v42  ;;  %2596 = vmatprep.subr.mxu1 %v3382_v42  ;;  %v1728_v16 = vld [vmem:[%s4436_s27 + $0x80] sm:$0xff] }
 0x283   : > { %2372 = vmatpush2.msra.mxu0 %v2299_v41  ;;  %2597 = vmatpush2.msra.mxu1 %v2331_v9  ;;  %v1866_v41 = vmul.f32 %v4440_v5, %v1716_v45  ;;  %v1868_v9 = vmul.f32 %v4443_v44, %v1718_v11  ;;  %v2140_v13 = vmax.f32 %v2012_v63, 0.0 }
 0x284   : > { %2373 = vmatprep.subr.mxu0 %v3382_v42  ;;  %2598 = vmatprep.subr.mxu1 %v3382_v42 }
 0x285   : > { %2374 = vmatpush2.msra.mxu0 %v2298_v48  ;;  %2599 = vmatpush2.msra.mxu1 %v2330_v49  ;;  %v2285_v48 = vld [vmem:[#allocation13 + $0x88] sm:$0xff]  ;;  %v2014_v49 = vadd.f32 %v4462_v4, %v1864_v32  ;;  %v2016_v43 = vadd.f32 %v4459_v37, %v1866_v41  ;;  %v1730_v32 = vld [vmem:[%s4436_s27 + $0x90] sm:$0xff] }
 0x286   : > { %2375 = vmatprep.subr.mxu0 %v3382_v42  ;;  %2600 = vmatprep.subr.mxu1 %v3382_v42 }
 0x287   : > { %2376 = vmatpush2.msra.mxu0 %v2297_v30  ;;  %2601 = vmatpush2.msra.mxu1 %v2329_v15  ;;  %v1871_v30 = vmul.f32 %v4430_v19, %v1721_v36  ;;  %v1720_v15 = vld [vmem:[%s4436_s27 + $0x40] sm:$0xff]  ;;  %v2142_v0 = vmax.f32 %v2014_v49, 0.0  ;;  %v2144_v31 = vmax.f32 %v2016_v43, 0.0 }
 0x288   : > { %2377 = vmatprep.subr.mxu0 %v3382_v42  ;;  %2602 = vmatprep.subr.mxu1 %v3382_v42  ;;  %v1736_v43 = vld [vmem:[%s4436_s27 + $0xc0] sm:$0xff] }
 0x289   : > { %2378 = vmatpush2.msra.mxu0 %v2296_v57  ;;  %2603 = vmatpush2.msra.mxu1 %v2328_v47  ;;  %v2017_v57 = vadd.f32 %v4447_v20, %v1867_v46  ;;  %v2019_v47 = vadd.f32 %v4452_v8, %v1869_v38  ;;  %v2021_v55 = vadd.f32 %v4447_v20, %v1871_v30  ;;  %v1733_v46 = vld [vmem:[%s4436_s27 + $0xa8] sm:$0xff]  ;;  %v1735_v38 = vld [vmem:[%s4436_s27 + $0xb8] sm:$0xff] }
 0x28a   : > { %2379 = vmatprep.subr.mxu0 %v3382_v42  ;;  %2604 = vmatprep.subr.mxu1 %v3382_v42  ;;  %v1883_v41 = vmul.f32 %v4430_v19, %v1733_v46 }
 0x28b   : > { %2380 = vmatpush2.msra.mxu0 %v2295_v26  ;;  %2605 = vmatpush2.msra.mxu1 %v2327_v2  ;;  %v1873_v26 = vmul.f32 %v4432_v1, %v1723_v51  ;;  %v1722_v2 = vld [vmem:[%s4436_s27 + $0x50] sm:$0xff]  ;;  %v2145_v61 = vmax.f32 %v2017_v57, 0.0  ;;  %v2149_v39 = vmax.f32 %v2021_v55, 0.0  ;;  %v1880_v51 = vmul.f32 %v4443_v44, %v1730_v32  ;;  %v1737_v57 = vld [vmem:[%s4436_s27 + $0xc8] sm:$0xff] }
 0x28c   : > { %2381 = vmatprep.subr.mxu0 %v3382_v42  ;;  %2606 = vmatprep.subr.mxu1 %v3382_v42  ;;  %v1738_v55 = vld [vmem:[%s4436_s27 + $0xd0] sm:$0xff] }
 0x28d   : > { %2382 = vmatpush2.msra.mxu0 %v2294_v14  ;;  %2607 = vmatpush2.msra.mxu1 %v2326_v58  ;;  %v2141_v14 = vmax.f32 %v2013_v53, 0.0  ;;  %v2143_v58 = vmax.f32 %v2015_v22, 0.0  ;;  %v2023_v40 = vadd.f32 %v4452_v8, %v1873_v26  ;;  %v1878_v22 = vmul.f32 %v4440_v5, %v1728_v16 }
 0x28e   : > { %2383 = vmatprep.subr.mxu0 %v3382_v42  ;;  %2608 = vmatprep.subr.mxu1 %v3382_v42 }
 0x28f   : > { %2384 = vmatpush2.msra.mxu0 %v2293_v33  ;;  %2609 = vmatpush2.msra.mxu1 %v2325_v21  ;;  %v1727_v33 = vld [vmem:[%s4436_s27 + $0x78] sm:$0xff]  ;;  %v2151_v45 = vmax.f32 %v2023_v40, 0.0  ;;  %v1886_v40 = vmul.f32 %v4440_v5, %v1736_v43 }
 0x290   : > { %2385 = vmatprep.subr.mxu0 %v3382_v42  ;;  %2610 = vmatprep.subr.mxu1 %v3382_v42  ;;  %v2284_v21 = vld [vmem:[#allocation13 + $0x80] sm:$0xff]  ;;  %v1877_v17 = vmul.f32 %v4432_v1, %v1727_v33  ;;  %v2033_v33 = vadd.f32 %v4447_v20, %v1883_v41 }
 0x291   : > { %2386 = vmatpush2.msra.mxu0 %v2292_v24  ;;  %2611 = vmatpush2.msra.mxu1 %v2324_v6  ;;  %v2018_v24 = vadd.f32 %v4462_v4, %v1868_v9  ;;  %v1870_v6 = vmul.f32 %v4440_v5, %v1720_v15  ;;  %v1732_v9 = vld [vmem:[%s4436_s27 + $0xa0] sm:$0xff]  ;;  %v1885_v15 = vmul.f32 %v4432_v1, %v1735_v38  ;;  %v1751_v41 = vld [vmem:[%s4436_s27 + $0x138] sm:$0xff] }
 0x292   : > { %2387 = vmatprep.subr.mxu0 %v3382_v42  ;;  %2612 = vmatprep.subr.mxu1 %v3382_v42  ;;  %v2027_v11 = vadd.f32 %v4452_v8, %v1877_v17  ;;  %v2161_v17 = vmax.f32 %v2033_v33, 0.0  ;;  %v2036_v32 = vadd.f32 %v4459_v37, %v1886_v40  ;;  %v1750_v33 = vld [vmem:[%s4436_s27 + $0x130] sm:$0xff] }
 0x293   : > { %2388 = vmatpush2.msra.mxu0 %v2291_v60  ;;  %2613 = vmatpush2.msra.mxu1 %v2323_v27  ;;  %v1872_v60 = vmul.f32 %v4443_v44, %v1722_v2  ;;  %v1875_v27 = vmul.f32 %v4430_v19, %v1725_v12  ;;  %v2146_v29 = vmax.f32 %v2018_v24, 0.0  ;;  %v2020_v59 = vadd.f32 %v4459_v37, %v1870_v6 }
 0x294   : > { %2389 = vmatprep.subr.mxu0 %v3382_v42  ;;  %2614 = vmatprep.subr.mxu1 %v3382_v42  ;;  %v2028_v2 = vadd.f32 %v4459_v37, %v1878_v22  ;;  %v2030_v12 = vadd.f32 %v4462_v4, %v1880_v51 }
 0x295   : > { %2390 = vmatpush2.msra.mxu0 %v2290_v18  ;;  %2615 = vmatpush2.msra.mxu1 %v2322_v3  ;;  %v1724_v18 = vld [vmem:[%s4436_s27 + $0x60] sm:$0xff]  ;;  %v2147_v3 = vmax.f32 %v2019_v47, 0.0  ;;  %v2022_v52 = vadd.f32 %v4462_v4, %v1872_v60  ;;  %v2148_v36 = vmax.f32 %v2020_v59, 0.0  ;;  %v1739_v47 = vld [vmem:[%s4436_s27 + $0xd8] sm:$0xff]  ;;  %v1741_v60 = vld [vmem:[%s4436_s27 + $0xe8] sm:$0xff] }
 0x296   : > { %2391 = vmatprep.subr.mxu0 %v3382_v42  ;;  %2616 = vmatprep.subr.mxu1 %v3382_v42 }
 0x297   : > { %2392 = vmatpush2.msra.mxu0 %v2289_v54  ;;  %2617 = vmatpush2.msra.mxu1 %v2321_v7  ;;  %v1729_v54 = vld [vmem:[%s4436_s27 + $0x88] sm:$0xff]  ;;  %v1731_v7 = vld [vmem:[%s4436_s27 + $0x98] sm:$0xff] }
 0x298   : > { %2393 = vmatprep.subr.mxu0 %v3382_v42  ;;  %2618 = vmatprep.subr.mxu1 %v3382_v42 }
 0x299   : > { %2394 = vmatpush2.msra.mxu0 %v2288_v34  ;;  %2619 = vmatpush2.msra.mxu1 %v2320_v56  ;;  %v2025_v34 = vadd.f32 %v4447_v20, %v1875_v27  ;;  %v1876_v56 = vmul.f32 %v4443_v44, %v1726_v28  ;;  %v1743_v27 = vld [vmem:[%s4436_s27 + $0xf8] sm:$0xff] }
 0x29a   : > { %2395 = vmatprep.subr.mxu0 %v3382_v42  ;;  %2620 = vmatprep.subr.mxu1 %v3382_v42 }
 0x29b   : > { %2396 = vmatpush2.msra.mxu0 %v2287_v35  ;;  %2621 = vmatpush2.msra.mxu1 %v2319_v23  ;;  %v1879_v35 = vmul.f32 %v4430_v19, %v1729_v54  ;;  %v1881_v23 = vmul.f32 %v4432_v1, %v1731_v7  ;;  %v2026_v63 = vadd.f32 %v4462_v4, %v1876_v56  ;;  %v1747_v56 = vld [vmem:[%s4436_s27 + $0x118] sm:$0xff] }
 0x29c   : > { %2397 = vmatprep.subr.mxu0 %v3382_v42  ;;  %2622 = vmatprep.subr.mxu1 %v3382_v42  ;;  %v1888_v7 = vmul.f32 %v4443_v44, %v1738_v55 }
 0x29d   : > { %2398 = vmatpush2.msra.mxu0 %v2286_v25  ;;  %2623 = vmatpush2.msra.mxu1 %v2318_v10  ;;  %v2150_v25 = vmax.f32 %v2022_v52, 0.0  ;;  %v2153_v10 = vmax.f32 %v2025_v34, 0.0  ;;  %v2029_v49 = vadd.f32 %v4447_v20, %v1879_v35  ;;  %v2031_v30 = vadd.f32 %v4452_v8, %v1881_v23  ;;  %v1745_v34 = vld [vmem:[%s4436_s27 + $0x108] sm:$0xff] }
 0x29e   : > { %2399 = vmatprep.subr.mxu0 %v3382_v42  ;;  %2624 = vmatprep.subr.mxu1 %v3382_v42  ;;  %v1893_v52 = vmul.f32 %v4432_v1, %v1743_v27  ;;  %v2038_v46 = vadd.f32 %v4462_v4, %v1888_v7  ;;  %v1895_v38 = vmul.f32 %v4430_v19, %v1745_v34  ;;  %v1759_v7 = vld [vmem:[%s4436_s27 + $0x178] sm:$0xff] }
 0x29f   : > { %2400 = vmatpush2.msra.mxu0 %v2285_v48  ;;  %2625 = vmatpush2.msra.mxu1 %v2317_v62  ;;  %v2155_v48 = vmax.f32 %v2027_v11, 0.0  ;;  %v1734_v62 = vld [vmem:[%s4436_s27 + $0xb0] sm:$0xff]  ;;  %v2157_v24 = vmax.f32 %v2029_v49, 0.0  ;;  %v2159_v6 = vmax.f32 %v2031_v30, 0.0  ;;  %v1900_v27 = vmul.f32 %v4443_v44, %v1750_v33 }
 0x2a0   : > { %2401 = vmatprep.subr.mxu0 %v3382_v42  ;;  %2626 = vmatprep.subr.mxu1 %v3382_v42  ;;  %v1874_v42 = vmul.f32 %v4440_v5, %v1724_v18  ;;  %v2156_v18 = vmax.f32 %v2028_v2, 0.0  ;;  %v2043_v51 = vadd.f32 %v4452_v8, %v1893_v52 }
 0x2a1   : > { %2402 = vmatpush2.msra.mxu0 %v2284_v21  ;;  %2403 = vmatprep.mubr.f32.mxu0 %v2141_v14  ;;  %v1882_v14 = vmul.f32 %v4440_v5, %v1732_v9  ;;  %v1884_v21 = vmul.f32 %v4443_v44, %v1734_v62  ;;  %v2164_v9 = vmax.f32 %v2036_v32, 0.0  ;;  %v2045_v62 = vadd.f32 %v4447_v20, %v1895_v38  ;;  %v1763_v38 = vld [vmem:[%s4436_s27 + $0x198] sm:$0xff] }
 0x2a2   : > { %2627 = vmatpush2.msra.mxu1 %v2316_v50  ;;  %2628 = vmatprep.mubr.f32.mxu1 %v2143_v58  ;;  %v2024_v53 = vadd.f32 %v4459_v37, %v1874_v42  ;;  %v2154_v58 = vmax.f32 %v2026_v63, 0.0  ;;  %v2035_v50 = vadd.f32 %v4452_v8, %v1885_v15  ;;  %v1749_v63 = vld [vmem:[%s4436_s27 + $0x128] sm:$0xff]  ;;  %v2166_v15 = vmax.f32 %v2038_v46, 0.0 }
 0x2a3   : > { %2404 = vmatmul.mubr.f32.vlgmr.msra.gmra.mxu0 %v2140_v13  ;;  %2629 = vmatmul.mubr.f32.vlgmr.msra.gmra.mxu1 %v2142_v0  ;;  %v1887_v13 = vmul.f32 %v4430_v19, %v1737_v57  ;;  %v1889_v0 = vmul.f32 %v4432_v1, %v1739_v47  ;;  %v2034_v28 = vadd.f32 %v4462_v4, %v1884_v21  ;;  %v1753_v21 = vld [vmem:[%s4436_s27 + $0x148] sm:$0xff] }
 0x2a4   : > { %2408 = vmatprep.mubr.f32.mxu0 %v2145_v61  ;;  %2633 = vmatprep.mubr.f32.mxu1 %v2147_v3  ;;  %v2152_v26 = vmax.f32 %v2024_v53, 0.0  ;;  %v2158_v61 = vmax.f32 %v2030_v12, 0.0  ;;  %v2032_v3 = vadd.f32 %v4459_v37, %v1882_v14  ;;  %v2163_v59 = vmax.f32 %v2035_v50, 0.0  ;;  %v1761_v46 = vld [vmem:[%s4436_s27 + $0x188] sm:$0xff] }
 0x2a5   : > { %v2037_v54 = vadd.f32 %v4447_v20, %v1887_v13  ;;  %v2039_v42 = vadd.f32 %v4452_v8, %v1889_v0  ;;  %v2162_v35 = vmax.f32 %v2034_v28, 0.0  ;;  %v1899_v47 = vmul.f32 %v4430_v19, %v1749_v63  ;;  %v1755_v13 = vld [vmem:[%s4436_s27 + $0x158] sm:$0xff] }
 0x2a6   : > { %v2160_v16 = vmax.f32 %v2032_v3, 0.0  ;;  %v2171_v12 = vmax.f32 %v2043_v51, 0.0  ;;  %v2173_v0 = vmax.f32 %v2045_v62, 0.0  ;;  %v1905_v28 = vmul.f32 %v4432_v1, %v1755_v13  ;;  %v1762_v62 = vld [vmem:[%s4436_s27 + $0x190] sm:$0xff] }
 0x2a7   : > { %2409 = vmatmul.mubr.f32.gmra.mxu0 %v2144_v31  ;;  %2634 = vmatmul.mubr.f32.gmra.mxu1 %v2146_v29  ;;  %v1740_v31 = vld [vmem:[%s4436_s27 + $0xe0] sm:$0xff]  ;;  %v1742_v29 = vld [vmem:[%s4436_s27 + $0xf0] sm:$0xff]  ;;  %v2165_v23 = vmax.f32 %v2037_v54, 0.0  ;;  %v2167_v53 = vmax.f32 %v2039_v42, 0.0  ;;  %v1757_v54 = vld [vmem:[%s4436_s27 + $0x168] sm:$0xff]  ;;  %v2050_v34 = vadd.f32 %v4462_v4, %v1900_v27  ;;  %v1912_v13 = vmul.f32 %v4443_v44, %v1762_v62 }
 0x2a8   : > { %2413 = vmatprep.mubr.f32.mxu0 %v2149_v39  ;;  %2638 = vmatprep.mubr.f32.mxu1 %v2151_v45  ;;  %v1891_v39 = vmul.f32 %v4430_v19, %v1741_v60  ;;  %v1890_v45 = vmul.f32 %v4440_v5, %v1740_v31  ;;  %v1892_v11 = vmul.f32 %v4443_v44, %v1742_v29  ;;  %v1771_v27 = vld [vmem:[%s4436_s27 + $0x1d8] sm:$0xff] }
 0x2a9   : > { %v2049_v60 = vadd.f32 %v4447_v20, %v1899_v47  ;;  %v1767_v47 = vld [vmem:[%s4436_s27 + $0x1b8] sm:$0xff] }
 0x2aa   : > { %v2041_v22 = vadd.f32 %v4447_v20, %v1891_v39  ;;  %v2042_v49 = vadd.f32 %v4462_v4, %v1892_v11  ;;  %v2055_v11 = vadd.f32 %v4452_v8, %v1905_v28 }
 0x2ab   : > { %2414 = vmatmul.mubr.f32.gmra.mxu0 %v2148_v36  ;;  %2639 = vmatmul.mubr.f32.gmra.mxu1 %v2150_v25  ;;  %v1744_v36 = vld [vmem:[%s4436_s27 + $0x100] sm:$0xff]  ;;  %v1897_v25 = vmul.f32 %v4432_v1, %v1747_v56  ;;  %v2177_v52 = vmax.f32 %v2049_v60, 0.0  ;;  %v1907_v56 = vmul.f32 %v4430_v19, %v1757_v54  ;;  %v1769_v60 = vld [vmem:[%s4436_s27 + $0x1c8] sm:$0xff]  ;;  %v2062_v54 = vadd.f32 %v4462_v4, %v1912_v13  ;;  %v1783_v13 = vld [vmem:[%s4436_s27 + $0x238] sm:$0xff] }
 0x2ac   : > { %2418 = vmatprep.mubr.f32.mxu0 %v2153_v10  ;;  %2643 = vmatprep.mubr.f32.mxu1 %v2155_v48  ;;  %v1746_v10 = vld [vmem:[%s4436_s27 + $0x110] sm:$0xff]  ;;  %v2040_v48 = vadd.f32 %v4459_v37, %v1890_v45  ;;  %v1894_v30 = vmul.f32 %v4440_v5, %v1744_v36  ;;  %v2169_v2 = vmax.f32 %v2041_v22, 0.0 }
 0x2ad   : > { %v1896_v57 = vmul.f32 %v4443_v44, %v1746_v10  ;;  %v2047_v14 = vadd.f32 %v4452_v8, %v1897_v25  ;;  %v2178_v25 = vmax.f32 %v2050_v34, 0.0  ;;  %v2057_v10 = vadd.f32 %v4447_v20, %v1907_v56  ;;  %v1773_v34 = vld [vmem:[%s4436_s27 + $0x1e8] sm:$0xff]  ;;  %v1775_v56 = vld [vmem:[%s4436_s27 + $0x1f8] sm:$0xff] }
 0x2ae   : > { %v2168_v43 = vmax.f32 %v2040_v48, 0.0 }
 0x2af   : > { %2419 = vmatmul.mubr.f32.gmra.mxu0 %v2152_v26  ;;  %2644 = vmatmul.mubr.f32.gmra.mxu1 %v2154_v58  ;;  %v1748_v26 = vld [vmem:[%s4436_s27 + $0x120] sm:$0xff]  ;;  %v1901_v58 = vmul.f32 %v4432_v1, %v1751_v41  ;;  %v2046_v55 = vadd.f32 %v4462_v4, %v1896_v57  ;;  %v2175_v3 = vmax.f32 %v2047_v14, 0.0  ;;  %v1911_v41 = vmul.f32 %v4430_v19, %v1761_v46  ;;  %v1765_v57 = vld [vmem:[%s4436_s27 + $0x1a8] sm:$0xff] }
 0x2b0   : > { %2423 = vmatprep.mubr.f32.mxu0 %v2157_v24  ;;  %2648 = vmatprep.mubr.f32.mxu1 %v2159_v6  ;;  %v2170_v24 = vmax.f32 %v2042_v49, 0.0  ;;  %v2044_v6 = vadd.f32 %v4459_v37, %v1894_v30  ;;  %v1898_v50 = vmul.f32 %v4440_v5, %v1748_v26  ;;  %v2183_v49 = vmax.f32 %v2055_v11, 0.0 }
 0x2b1   : > { %v2051_v40 = vadd.f32 %v4452_v8, %v1901_v58  ;;  %v2174_v39 = vmax.f32 %v2046_v55, 0.0  ;;  %v2185_v58 = vmax.f32 %v2057_v10, 0.0  ;;  %v1917_v55 = vmul.f32 %v4432_v1, %v1767_v47  ;;  %v1774_v10 = vld [vmem:[%s4436_s27 + $0x1f0] sm:$0xff] }
 0x2b2   : > { %v2172_v31 = vmax.f32 %v2044_v6, 0.0  ;;  %v2048_v29 = vadd.f32 %v4459_v37, %v1898_v50  ;;  %v1924_v47 = vmul.f32 %v4443_v44, %v1774_v10 }
 0x2b3   : > { %2424 = vmatmul.mubr.f32.gmra.mxu0 %v2156_v18  ;;  %2649 = vmatmul.mubr.f32.gmra.mxu1 %v2158_v61  ;;  %v1752_v18 = vld [vmem:[%s4436_s27 + $0x140] sm:$0xff]  ;;  %v1754_v61 = vld [vmem:[%s4436_s27 + $0x150] sm:$0xff]  ;;  %v2179_v32 = vmax.f32 %v2051_v40, 0.0 }
 0x2b4   : > { %2428 = vmatprep.mubr.f32.mxu0 %v2161_v17  ;;  %2653 = vmatprep.mubr.f32.mxu1 %v2163_v59  ;;  %v1903_v17 = vmul.f32 %v4430_v19, %v1753_v21  ;;  %v1902_v59 = vmul.f32 %v4440_v5, %v1752_v18  ;;  %v1904_v42 = vmul.f32 %v4443_v44, %v1754_v61  ;;  %v2176_v36 = vmax.f32 %v2048_v29, 0.0 }
 0x2b5   : > { %v2061_v21 = vadd.f32 %v4447_v20, %v1911_v41  ;;  %v1779_v41 = vld [vmem:[%s4436_s27 + $0x218] sm:$0xff] }
 0x2b6   : > { %v2053_v45 = vadd.f32 %v4447_v20, %v1903_v17  ;;  %v2054_v22 = vadd.f32 %v4462_v4, %v1904_v42  ;;  %v2067_v42 = vadd.f32 %v4452_v8, %v1917_v55 }
 0x2b7   : > { %2429 = vmatmul.mubr.f32.gmra.mxu0 %v2160_v16  ;;  %2654 = vmatmul.mubr.f32.gmra.mxu1 %v2162_v35  ;;  %v1756_v16 = vld [vmem:[%s4436_s27 + $0x160] sm:$0xff]  ;;  %v1909_v35 = vmul.f32 %v4432_v1, %v1759_v7  ;;  %v2189_v28 = vmax.f32 %v2061_v21, 0.0  ;;  %v1919_v7 = vmul.f32 %v4430_v19, %v1769_v60  ;;  %v1781_v21 = vld [vmem:[%s4436_s27 + $0x228] sm:$0xff]  ;;  %v2074_v60 = vadd.f32 %v4462_v4, %v1924_v47  ;;  %v1795_v47 = vld [vmem:[%s4436_s27 + $0x298] sm:$0xff] }
 0x2b8   : > { %2433 = vmatprep.mubr.f32.mxu0 %v2165_v23  ;;  %2658 = vmatprep.mubr.f32.mxu1 %v2167_v53  ;;  %v1758_v23 = vld [vmem:[%s4436_s27 + $0x170] sm:$0xff]  ;;  %v2052_v53 = vadd.f32 %v4459_v37, %v1902_v59  ;;  %v1906_v51 = vmul.f32 %v4440_v5, %v1756_v16  ;;  %v2181_v48 = vmax.f32 %v2053_v45, 0.0 }
 0x2b9   : > { %v1908_v63 = vmul.f32 %v4443_v44, %v1758_v23  ;;  %v2059_v30 = vadd.f32 %v4452_v8, %v1909_v35  ;;  %v2190_v35 = vmax.f32 %v2062_v54, 0.0  ;;  %v2069_v23 = vadd.f32 %v4447_v20, %v1919_v7  ;;  %v1785_v54 = vld [vmem:[%s4436_s27 + $0x248] sm:$0xff]  ;;  %v1787_v7 = vld [vmem:[%s4436_s27 + $0x258] sm:$0xff] }
 0x2ba   : > { %v2180_v26 = vmax.f32 %v2052_v53, 0.0 }
 0x2bb   : > { %2434 = vmatmul.mubr.f32.gmra.mxu0 %v2164_v9  ;;  %2659 = vmatmul.mubr.f32.gmra.mxu1 %v2166_v15  ;;  %v1760_v9 = vld [vmem:[%s4436_s27 + $0x180] sm:$0xff]  ;;  %v1913_v15 = vmul.f32 %v4432_v1, %v1763_v38  ;;  %v2058_v33 = vadd.f32 %v4462_v4, %v1908_v63  ;;  %v2187_v6 = vmax.f32 %v2059_v30, 0.0  ;;  %v1923_v38 = vmul.f32 %v4430_v19, %v1773_v34  ;;  %v1777_v63 = vld [vmem:[%s4436_s27 + $0x208] sm:$0xff] }
 0x2bc   : > { %2438 = vmatprep.mubr.f32.mxu0 %v2169_v2  ;;  %2663 = vmatprep.mubr.f32.mxu1 %v2171_v12  ;;  %v2182_v2 = vmax.f32 %v2054_v22, 0.0  ;;  %v2056_v12 = vadd.f32 %v4459_v37, %v1906_v51  ;;  %v1910_v14 = vmul.f32 %v4440_v5, %v1760_v9  ;;  %v2195_v22 = vmax.f32 %v2067_v42, 0.0 }
 0x2bd   : > { %v2063_v50 = vadd.f32 %v4452_v8, %v1913_v15  ;;  %v2186_v17 = vmax.f32 %v2058_v33, 0.0  ;;  %v2197_v15 = vmax.f32 %v2069_v23, 0.0  ;;  %v1929_v33 = vmul.f32 %v4432_v1, %v1779_v41  ;;  %v1786_v23 = vld [vmem:[%s4436_s27 + $0x250] sm:$0xff] }
 0x2be   : > { %v2184_v18 = vmax.f32 %v2056_v12, 0.0  ;;  %v2060_v61 = vadd.f32 %v4459_v37, %v1910_v14  ;;  %v1936_v41 = vmul.f32 %v4443_v44, %v1786_v23 }
 0x2bf   : > { %2439 = vmatmul.mubr.f32.gmra.mxu0 %v2168_v43  ;;  %2664 = vmatmul.mubr.f32.gmra.mxu1 %v2170_v24  ;;  %v1764_v43 = vld [vmem:[%s4436_s27 + $0x1a0] sm:$0xff]  ;;  %v1766_v24 = vld [vmem:[%s4436_s27 + $0x1b0] sm:$0xff]  ;;  %v2191_v29 = vmax.f32 %v2063_v50, 0.0 }
 0x2c0   : > { %2443 = vmatprep.mubr.f32.mxu0 %v2173_v0  ;;  %2668 = vmatprep.mubr.f32.mxu1 %v2175_v3  ;;  %v1915_v0 = vmul.f32 %v4430_v19, %v1765_v57  ;;  %v1914_v3 = vmul.f32 %v4440_v5, %v1764_v43  ;;  %v1916_v40 = vmul.f32 %v4443_v44, %v1766_v24  ;;  %v2188_v16 = vmax.f32 %v2060_v61, 0.0 }
 0x2c1   : > { %v2073_v57 = vadd.f32 %v4447_v20, %v1923_v38  ;;  %v1791_v38 = vld [vmem:[%s4436_s27 + $0x278] sm:$0xff] }
 0x2c2   : > { %v2065_v59 = vadd.f32 %v4447_v20, %v1915_v0  ;;  %v2066_v45 = vadd.f32 %v4462_v4, %v1916_v40  ;;  %v2079_v40 = vadd.f32 %v4452_v8, %v1929_v33 }
 0x2c3   : > { %2444 = vmatmul.mubr.f32.gmra.mxu0 %v2172_v31  ;;  %2669 = vmatmul.mubr.f32.gmra.mxu1 %v2174_v39  ;;  %v1768_v31 = vld [vmem:[%s4436_s27 + $0x1c0] sm:$0xff]  ;;  %v1921_v39 = vmul.f32 %v4432_v1, %v1771_v27  ;;  %v2201_v55 = vmax.f32 %v2073_v57, 0.0  ;;  %v1931_v27 = vmul.f32 %v4430_v19, %v1781_v21  ;;  %v1793_v57 = vld [vmem:[%s4436_s27 + $0x288] sm:$0xff]  ;;  %v2086_v21 = vadd.f32 %v4462_v4, %v1936_v41  ;;  %v1807_v41 = vld [vmem:[%s4436_s27 + $0x2f8] sm:$0xff] }
 0x2c4   : > { %2448 = vmatprep.mubr.f32.mxu0 %v2177_v52  ;;  %2673 = vmatprep.mubr.f32.mxu1 %v2179_v32  ;;  %v1770_v52 = vld [vmem:[%s4436_s27 + $0x1d0] sm:$0xff]  ;;  %v2064_v32 = vadd.f32 %v4459_v37, %v1914_v3  ;;  %v1918_v11 = vmul.f32 %v4440_v5, %v1768_v31  ;;  %v2193_v53 = vmax.f32 %v2065_v59, 0.0 }
 0x2c5   : > { %v1920_v46 = vmul.f32 %v4443_v44, %v1770_v52  ;;  %v2071_v51 = vadd.f32 %v4452_v8, %v1921_v39  ;;  %v2202_v39 = vmax.f32 %v2074_v60, 0.0  ;;  %v2081_v52 = vadd.f32 %v4447_v20, %v1931_v27  ;;  %v1797_v60 = vld [vmem:[%s4436_s27 + $0x2a8] sm:$0xff]  ;;  %v1799_v27 = vld [vmem:[%s4436_s27 + $0x2b8] sm:$0xff] }
 0x2c6   : > { %v2192_v9 = vmax.f32 %v2064_v32, 0.0 }
 0x2c7   : > { %2449 = vmatmul.mubr.f32.gmra.mxu0 %v2176_v36  ;;  %2674 = vmatmul.mubr.f32.gmra.mxu1 %v2178_v25  ;;  %v1772_v36 = vld [vmem:[%s4436_s27 + $0x1e0] sm:$0xff]  ;;  %v1925_v25 = vmul.f32 %v4432_v1, %v1775_v56  ;;  %v2070_v62 = vadd.f32 %v4462_v4, %v1920_v46  ;;  %v2199_v12 = vmax.f32 %v2071_v51, 0.0  ;;  %v1935_v56 = vmul.f32 %v4430_v19, %v1785_v54  ;;  %v1789_v46 = vld [vmem:[%s4436_s27 + $0x268] sm:$0xff] }
 0x2c8   : > { %2453 = vmatprep.mubr.f32.mxu0 %v2181_v48  ;;  %2678 = vmatprep.mubr.f32.mxu1 %v2183_v49  ;;  %v2194_v48 = vmax.f32 %v2066_v45, 0.0  ;;  %v2068_v49 = vadd.f32 %v4459_v37, %v1918_v11  ;;  %v1922_v30 = vmul.f32 %v4440_v5, %v1772_v36  ;;  %v2207_v45 = vmax.f32 %v2079_v40, 0.0 }
 0x2c9   : > { %v2075_v14 = vadd.f32 %v4452_v8, %v1925_v25  ;;  %v2198_v0 = vmax.f32 %v2070_v62, 0.0  ;;  %v2209_v25 = vmax.f32 %v2081_v52, 0.0  ;;  %v1941_v62 = vmul.f32 %v4432_v1, %v1791_v38  ;;  %v1798_v52 = vld [vmem:[%s4436_s27 + $0x2b0] sm:$0xff] }
 0x2ca   : > { %v2196_v43 = vmax.f32 %v2068_v49, 0.0  ;;  %v2072_v24 = vadd.f32 %v4459_v37, %v1922_v30  ;;  %v1948_v38 = vmul.f32 %v4443_v44, %v1798_v52 }
 0x2cb   : > { %2454 = vmatmul.mubr.f32.gmra.mxu0 %v2180_v26  ;;  %2679 = vmatmul.mubr.f32.gmra.mxu1 %v2182_v2  ;;  %v1776_v26 = vld [vmem:[%s4436_s27 + $0x200] sm:$0xff]  ;;  %v1778_v2 = vld [vmem:[%s4436_s27 + $0x210] sm:$0xff]  ;;  %v2203_v61 = vmax.f32 %v2075_v14, 0.0 }
 0x2cc   : > { %2458 = vmatprep.mubr.f32.mxu0 %v2185_v58  ;;  %2683 = vmatprep.mubr.f32.mxu1 %v2187_v6  ;;  %v1927_v58 = vmul.f32 %v4430_v19, %v1777_v63  ;;  %v1926_v6 = vmul.f32 %v4440_v5, %v1776_v26  ;;  %v1928_v50 = vmul.f32 %v4443_v44, %v1778_v2  ;;  %v2200_v31 = vmax.f32 %v2072_v24, 0.0 }
 0x2cd   : > { %v2085_v63 = vadd.f32 %v4447_v20, %v1935_v56  ;;  %v1803_v56 = vld [vmem:[%s4436_s27 + $0x2d8] sm:$0xff] }
 0x2ce   : > { %v2077_v3 = vadd.f32 %v4447_v20, %v1927_v58  ;;  %v2078_v59 = vadd.f32 %v4462_v4, %v1928_v50  ;;  %v2091_v50 = vadd.f32 %v4452_v8, %v1941_v62 }
 0x2cf   : > { %2459 = vmatmul.mubr.f32.gmra.mxu0 %v2184_v18  ;;  %2684 = vmatmul.mubr.f32.gmra.mxu1 %v2186_v17  ;;  %v1780_v18 = vld [vmem:[%s4436_s27 + $0x220] sm:$0xff]  ;;  %v1933_v17 = vmul.f32 %v4432_v1, %v1783_v13  ;;  %v2213_v33 = vmax.f32 %v2085_v63, 0.0  ;;  %v1943_v13 = vmul.f32 %v4430_v19, %v1793_v57  ;;  %v1805_v63 = vld [vmem:[%s4436_s27 + $0x2e8] sm:$0xff]  ;;  %v2098_v57 = vadd.f32 %v4462_v4, %v1948_v38  ;;  %v1819_v38 = vld [vmem:[%s4436_s27 + $0x358] sm:$0xff] }
 0x2d0   : > { %2463 = vmatprep.mubr.f32.mxu0 %v2189_v28  ;;  %2688 = vmatprep.mubr.f32.mxu1 %v2191_v29  ;;  %v1782_v28 = vld [vmem:[%s4436_s27 + $0x230] sm:$0xff]  ;;  %v2076_v29 = vadd.f32 %v4459_v37, %v1926_v6  ;;  %v1930_v42 = vmul.f32 %v4440_v5, %v1780_v18  ;;  %v2205_v32 = vmax.f32 %v2077_v3, 0.0 }
 0x2d1   : > { %v1932_v34 = vmul.f32 %v4443_v44, %v1782_v28  ;;  %v2083_v11 = vadd.f32 %v4452_v8, %v1933_v17  ;;  %v2214_v17 = vmax.f32 %v2086_v21, 0.0  ;;  %v2093_v28 = vadd.f32 %v4447_v20, %v1943_v13  ;;  %v1809_v21 = vld [vmem:[%s4436_s27 + $0x308] sm:$0xff]  ;;  %v1811_v13 = vld [vmem:[%s4436_s27 + $0x318] sm:$0xff] }
 0x2d2   : > { %v2204_v36 = vmax.f32 %v2076_v29, 0.0 }
 0x2d3   : > { %2464 = vmatmul.mubr.f32.gmra.mxu0 %v2188_v16  ;;  %2689 = vmatmul.mubr.f32.gmra.mxu1 %v2190_v35  ;;  %v1784_v16 = vld [vmem:[%s4436_s27 + $0x240] sm:$0xff]  ;;  %v1937_v35 = vmul.f32 %v4432_v1, %v1787_v7  ;;  %v2082_v10 = vadd.f32 %v4462_v4, %v1932_v34  ;;  %v2211_v49 = vmax.f32 %v2083_v11, 0.0  ;;  %v1947_v7 = vmul.f32 %v4430_v19, %v1797_v60  ;;  %v1801_v34 = vld [vmem:[%s4436_s27 + $0x2c8] sm:$0xff] }
 0x2d4   : > { %2468 = vmatprep.mubr.f32.mxu0 %v2193_v53  ;;  %2693 = vmatprep.mubr.f32.mxu1 %v2195_v22  ;;  %v2206_v53 = vmax.f32 %v2078_v59, 0.0  ;;  %v2080_v22 = vadd.f32 %v4459_v37, %v1930_v42  ;;  %v1934_v51 = vmul.f32 %v4440_v5, %v1784_v16  ;;  %v2219_v59 = vmax.f32 %v2091_v50, 0.0 }
 0x2d5   : > { %v2087_v30 = vadd.f32 %v4452_v8, %v1937_v35  ;;  %v2210_v58 = vmax.f32 %v2082_v10, 0.0  ;;  %v2221_v35 = vmax.f32 %v2093_v28, 0.0  ;;  %v1953_v10 = vmul.f32 %v4432_v1, %v1803_v56  ;;  %v1810_v28 = vld [vmem:[%s4436_s27 + $0x310] sm:$0xff] }
 0x2d6   : > { %v2208_v26 = vmax.f32 %v2080_v22, 0.0  ;;  %v2084_v2 = vadd.f32 %v4459_v37, %v1934_v51  ;;  %v1960_v56 = vmul.f32 %v4443_v44, %v1810_v28 }
 0x2d7   : > { %2469 = vmatmul.mubr.f32.gmra.mxu0 %v2192_v9  ;;  %2694 = vmatmul.mubr.f32.gmra.mxu1 %v2194_v48  ;;  %v1788_v9 = vld [vmem:[%s4436_s27 + $0x260] sm:$0xff]  ;;  %v1790_v48 = vld [vmem:[%s4436_s27 + $0x270] sm:$0xff]  ;;  %v2215_v24 = vmax.f32 %v2087_v30, 0.0 }
 0x2d8   : > { %2473 = vmatprep.mubr.f32.mxu0 %v2197_v15  ;;  %2698 = vmatprep.mubr.f32.mxu1 %v2199_v12  ;;  %v1939_v15 = vmul.f32 %v4430_v19, %v1789_v46  ;;  %v1938_v12 = vmul.f32 %v4440_v5, %v1788_v9  ;;  %v1940_v14 = vmul.f32 %v4443_v44, %v1790_v48  ;;  %v2212_v18 = vmax.f32 %v2084_v2, 0.0 }
 0x2d9   : > { %v2097_v46 = vadd.f32 %v4447_v20, %v1947_v7  ;;  %v1815_v7 = vld [vmem:[%s4436_s27 + $0x338] sm:$0xff] }
 0x2da   : > { %v2089_v6 = vadd.f32 %v4447_v20, %v1939_v15  ;;  %v2090_v3 = vadd.f32 %v4462_v4, %v1940_v14  ;;  %v2103_v14 = vadd.f32 %v4452_v8, %v1953_v10 }
 0x2db   : > { %2474 = vmatmul.mubr.f32.gmra.mxu0 %v2196_v43  ;;  %2699 = vmatmul.mubr.f32.gmra.mxu1 %v2198_v0  ;;  %v1792_v43 = vld [vmem:[%s4436_s27 + $0x280] sm:$0xff]  ;;  %v1945_v0 = vmul.f32 %v4432_v1, %v1795_v47  ;;  %v2225_v62 = vmax.f32 %v2097_v46, 0.0  ;;  %v1955_v47 = vmul.f32 %v4430_v19, %v1805_v63  ;;  %v1817_v46 = vld [vmem:[%s4436_s27 + $0x348] sm:$0xff]  ;;  %v2110_v63 = vadd.f32 %v4462_v4, %v1960_v56  ;;  %v1831_v56 = vld [vmem:[%s4436_s27 + $0x3b8] sm:$0xff] }
 0x2dc   : > { %2478 = vmatprep.mubr.f32.mxu0 %v2201_v55  ;;  %2703 = vmatprep.mubr.f32.mxu1 %v2203_v61  ;;  %v1794_v55 = vld [vmem:[%s4436_s27 + $0x290] sm:$0xff]  ;;  %v2088_v61 = vadd.f32 %v4459_v37, %v1938_v12  ;;  %v1942_v40 = vmul.f32 %v4440_v5, %v1792_v43  ;;  %v2217_v29 = vmax.f32 %v2089_v6, 0.0 }
 0x2dd   : > { %v1944_v54 = vmul.f32 %v4443_v44, %v1794_v55  ;;  %v2095_v42 = vadd.f32 %v4452_v8, %v1945_v0  ;;  %v2226_v0 = vmax.f32 %v2098_v57, 0.0  ;;  %v2105_v55 = vadd.f32 %v4447_v20, %v1955_v47  ;;  %v1821_v57 = vld [vmem:[%s4436_s27 + $0x368] sm:$0xff]  ;;  %v1823_v47 = vld [vmem:[%s4436_s27 + $0x378] sm:$0xff] }
 0x2de   : > { %v2216_v16 = vmax.f32 %v2088_v61, 0.0 }
 0x2df   : > { %2479 = vmatmul.mubr.f32.gmra.mxu0 %v2200_v31  ;;  %2704 = vmatmul.mubr.f32.gmra.mxu1 %v2202_v39  ;;  %v1796_v31 = vld [vmem:[%s4436_s27 + $0x2a0] sm:$0xff]  ;;  %v1949_v39 = vmul.f32 %v4432_v1, %v1799_v27  ;;  %v2094_v23 = vadd.f32 %v4462_v4, %v1944_v54  ;;  %v2223_v22 = vmax.f32 %v2095_v42, 0.0  ;;  %v1959_v27 = vmul.f32 %v4430_v19, %v1809_v21  ;;  %v1813_v54 = vld [vmem:[%s4436_s27 + $0x328] sm:$0xff] }
 0x2e0   : > { %2483 = vmatprep.mubr.f32.mxu0 %v2205_v32  ;;  %2708 = vmatprep.mubr.f32.mxu1 %v2207_v45  ;;  %v2218_v32 = vmax.f32 %v2090_v3, 0.0  ;;  %v2092_v45 = vadd.f32 %v4459_v37, %v1942_v40  ;;  %v1946_v11 = vmul.f32 %v4440_v5, %v1796_v31  ;;  %v2231_v3 = vmax.f32 %v2103_v14, 0.0 }
 0x2e1   : > { %v2099_v51 = vadd.f32 %v4452_v8, %v1949_v39  ;;  %v2222_v15 = vmax.f32 %v2094_v23, 0.0  ;;  %v2233_v39 = vmax.f32 %v2105_v55, 0.0  ;;  %v1965_v23 = vmul.f32 %v4432_v1, %v1815_v7  ;;  %v1822_v55 = vld [vmem:[%s4436_s27 + $0x370] sm:$0xff] }
 0x2e2   : > { %v2220_v9 = vmax.f32 %v2092_v45, 0.0  ;;  %v2096_v48 = vadd.f32 %v4459_v37, %v1946_v11  ;;  %v1972_v7 = vmul.f32 %v4443_v44, %v1822_v55 }
 0x2e3   : > { %2484 = vmatmul.mubr.f32.gmra.mxu0 %v2204_v36  ;;  %2709 = vmatmul.mubr.f32.gmra.mxu1 %v2206_v53  ;;  %v1800_v36 = vld [vmem:[%s4436_s27 + $0x2c0] sm:$0xff]  ;;  %v1802_v53 = vld [vmem:[%s4436_s27 + $0x2d0] sm:$0xff]  ;;  %v2227_v2 = vmax.f32 %v2099_v51, 0.0 }
 0x2e4   : > { %2488 = vmatprep.mubr.f32.mxu0 %v2209_v25  ;;  %2713 = vmatprep.mubr.f32.mxu1 %v2211_v49  ;;  %v1951_v25 = vmul.f32 %v4430_v19, %v1801_v34  ;;  %v1950_v49 = vmul.f32 %v4440_v5, %v1800_v36  ;;  %v1952_v30 = vmul.f32 %v4443_v44, %v1802_v53  ;;  %v2224_v43 = vmax.f32 %v2096_v48, 0.0 }
 0x2e5   : > { %v2109_v34 = vadd.f32 %v4447_v20, %v1959_v27  ;;  %v1827_v27 = vld [vmem:[%s4436_s27 + $0x398] sm:$0xff] }
 0x2e6   : > { %v2101_v12 = vadd.f32 %v4447_v20, %v1951_v25  ;;  %v2102_v6 = vadd.f32 %v4462_v4, %v1952_v30  ;;  %v2115_v30 = vadd.f32 %v4452_v8, %v1965_v23 }
 0x2e7   : > { %2489 = vmatmul.mubr.f32.gmra.mxu0 %v2208_v26  ;;  %2714 = vmatmul.mubr.f32.gmra.mxu1 %v2210_v58  ;;  %v1804_v26 = vld [vmem:[%s4436_s27 + $0x2e0] sm:$0xff]  ;;  %v1957_v58 = vmul.f32 %v4432_v1, %v1807_v41  ;;  %v2237_v10 = vmax.f32 %v2109_v34, 0.0  ;;  %v1967_v41 = vmul.f32 %v4430_v19, %v1817_v46  ;;  %v1829_v34 = vld [vmem:[%s4436_s27 + $0x3a8] sm:$0xff]  ;;  %v2122_v46 = vadd.f32 %v4462_v4, %v1972_v7 }
 0x2e8   : > { %2493 = vmatprep.mubr.f32.mxu0 %v2213_v33  ;;  %2718 = vmatprep.mubr.f32.mxu1 %v2215_v24  ;;  %v1806_v33 = vld [vmem:[%s4436_s27 + $0x2f0] sm:$0xff]  ;;  %v2100_v24 = vadd.f32 %v4459_v37, %v1950_v49  ;;  %v1954_v50 = vmul.f32 %v4440_v5, %v1804_v26  ;;  %v2229_v61 = vmax.f32 %v2101_v12, 0.0 }
 0x2e9   : > { %v1956_v60 = vmul.f32 %v4443_v44, %v1806_v33  ;;  %v2107_v40 = vadd.f32 %v4452_v8, %v1957_v58  ;;  %v2238_v58 = vmax.f32 %v2110_v63, 0.0  ;;  %v2117_v33 = vadd.f32 %v4447_v20, %v1967_v41  ;;  %v1833_v63 = vld [vmem:[%s4436_s27 + $0x3c8] sm:$0xff]  ;;  %v1835_v41 = vld [vmem:[%s4436_s27 + $0x3d8] sm:$0xff] }
 0x2ea   : > { %v2228_v31 = vmax.f32 %v2100_v24, 0.0 }
 0x2eb   : > { %2494 = vmatmul.mubr.f32.gmra.mxu0 %v2212_v18  ;;  %2719 = vmatmul.mubr.f32.gmra.mxu1 %v2214_v17  ;;  %v1808_v18 = vld [vmem:[%s4436_s27 + $0x300] sm:$0xff]  ;;  %v1961_v17 = vmul.f32 %v4432_v1, %v1811_v13  ;;  %v2106_v52 = vadd.f32 %v4462_v4, %v1956_v60  ;;  %v2235_v45 = vmax.f32 %v2107_v40, 0.0  ;;  %v1971_v13 = vmul.f32 %v4430_v19, %v1821_v57  ;;  %v1825_v60 = vld [vmem:[%s4436_s27 + $0x388] sm:$0xff] }
 0x2ec   : > { %2498 = vmatprep.mubr.f32.mxu0 %v2217_v29  ;;  %2723 = vmatprep.mubr.f32.mxu1 %v2219_v59  ;;  %v2230_v29 = vmax.f32 %v2102_v6, 0.0  ;;  %v2104_v59 = vadd.f32 %v4459_v37, %v1954_v50  ;;  %v1958_v42 = vmul.f32 %v4440_v5, %v1808_v18  ;;  %v2243_v6 = vmax.f32 %v2115_v30, 0.0 }
 0x2ed   : > { %v2111_v11 = vadd.f32 %v4452_v8, %v1961_v17  ;;  %v2234_v25 = vmax.f32 %v2106_v52, 0.0  ;;  %v2245_v17 = vmax.f32 %v2117_v33, 0.0  ;;  %v1977_v52 = vmul.f32 %v4432_v1, %v1827_v27  ;;  %v1834_v33 = vld [vmem:[%s4436_s27 + $0x3d0] sm:$0xff] }
 0x2ee   : > { %v2232_v36 = vmax.f32 %v2104_v59, 0.0  ;;  %v2108_v53 = vadd.f32 %v4459_v37, %v1958_v42  ;;  %v1984_v27 = vmul.f32 %v4443_v44, %v1834_v33 }
 0x2ef   : > { %2499 = vmatmul.mubr.f32.gmra.mxu0 %v2216_v16  ;;  %2724 = vmatmul.mubr.f32.gmra.mxu1 %v2218_v32  ;;  %v1812_v16 = vld [vmem:[%s4436_s27 + $0x320] sm:$0xff]  ;;  %v1814_v32 = vld [vmem:[%s4436_s27 + $0x330] sm:$0xff]  ;;  %v2239_v48 = vmax.f32 %v2111_v11, 0.0 }
 0x2f0   : > { %2503 = vmatprep.mubr.f32.mxu0 %v2221_v35  ;;  %2728 = vmatprep.mubr.f32.mxu1 %v2223_v22  ;;  %v1963_v35 = vmul.f32 %v4430_v19, %v1813_v54  ;;  %v1962_v22 = vmul.f32 %v4440_v5, %v1812_v16  ;;  %v1964_v51 = vmul.f32 %v4443_v44, %v1814_v32  ;;  %v2236_v26 = vmax.f32 %v2108_v53, 0.0 }
 0x2f1   : > { %v2121_v54 = vadd.f32 %v4447_v20, %v1971_v13  ;;  %v1839_v13 = vld [vmem:[%s4436_s27 + $0x3f8] sm:$0xff] }
 0x2f2   : > { %v2113_v49 = vadd.f32 %v4447_v20, %v1963_v35  ;;  %v2114_v12 = vadd.f32 %v4462_v4, %v1964_v51  ;;  %v2127_v51 = vadd.f32 %v4452_v8, %v1977_v52 }
 0x2f3   : > { %2504 = vmatmul.mubr.f32.gmra.mxu0 %v2220_v9  ;;  %2729 = vmatmul.mubr.f32.gmra.mxu1 %v2222_v15  ;;  %v1816_v9 = vld [vmem:[%s4436_s27 + $0x340] sm:$0xff]  ;;  %v1969_v15 = vmul.f32 %v4432_v1, %v1819_v38  ;;  %v2249_v23 = vmax.f32 %v2121_v54, 0.0  ;;  %v1979_v38 = vmul.f32 %v4430_v19, %v1829_v34 }
 0x2f4   : > { %2508 = vmatprep.mubr.f32.mxu0 %v2225_v62  ;;  %2733 = vmatprep.mubr.f32.mxu1 %v2227_v2  ;;  %v1818_v62 = vld [vmem:[%s4436_s27 + $0x350] sm:$0xff]  ;;  %v2112_v2 = vadd.f32 %v4459_v37, %v1962_v22  ;;  %v1966_v14 = vmul.f32 %v4440_v5, %v1816_v9  ;;  %v2241_v24 = vmax.f32 %v2113_v49, 0.0 }
 0x2f5   : > { %v1968_v21 = vmul.f32 %v4443_v44, %v1818_v62  ;;  %v2119_v50 = vadd.f32 %v4452_v8, %v1969_v15  ;;  %v2250_v15 = vmax.f32 %v2122_v46, 0.0  ;;  %v2129_v62 = vadd.f32 %v4447_v20, %v1979_v38 }
 0x2f6   : > { %v2240_v18 = vmax.f32 %v2112_v2, 0.0 }
 0x2f7   : > { %2509 = vmatmul.mubr.f32.gmra.mxu0 %v2224_v43  ;;  %2734 = vmatmul.mubr.f32.gmra.mxu1 %v2226_v0  ;;  %v1820_v43 = vld [vmem:[%s4436_s27 + $0x360] sm:$0xff]  ;;  %v1973_v0 = vmul.f32 %v4432_v1, %v1823_v47  ;;  %v2118_v28 = vadd.f32 %v4462_v4, %v1968_v21  ;;  %v2247_v59 = vmax.f32 %v2119_v50, 0.0  ;;  %v1983_v47 = vmul.f32 %v4430_v19, %v1833_v63  ;;  %v1837_v21 = vld [vmem:[%s4436_s27 + $0x3e8] sm:$0xff] }
 0x2f8   : > { %2513 = vmatprep.mubr.f32.mxu0 %v2229_v61  ;;  %2738 = vmatprep.mubr.f32.mxu1 %v2231_v3  ;;  %v2242_v61 = vmax.f32 %v2114_v12, 0.0  ;;  %v2116_v3 = vadd.f32 %v4459_v37, %v1966_v14  ;;  %v1970_v40 = vmul.f32 %v4440_v5, %v1820_v43  ;;  %v2255_v12 = vmax.f32 %v2127_v51, 0.0 }
 0x2f9   : > { %v2123_v42 = vadd.f32 %v4452_v8, %v1973_v0  ;;  %v2246_v35 = vmax.f32 %v2118_v28, 0.0  ;;  %v2257_v0 = vmax.f32 %v2129_v62, 0.0  ;;  %v1838_v28 = vld [vmem:[%s4436_s27 + $0x3f0] sm:$0xff] }
 0x2fa   : > { %v2244_v16 = vmax.f32 %v2116_v3, 0.0  ;;  %v2120_v32 = vadd.f32 %v4459_v37, %v1970_v40  ;;  %v1987_v3 = vmul.f32 %v4430_v19, %v1837_v21  ;;  %v1989_v40 = vmul.f32 %v4432_v1, %v1839_v13 }
 0x2fb   : > { %2514 = vmatmul.mubr.f32.gmra.mxu0 %v2228_v31  ;;  %2739 = vmatmul.mubr.f32.gmra.mxu1 %v2230_v29  ;;  %v1824_v31 = vld [vmem:[%s4436_s27 + $0x380] sm:$0xff]  ;;  %v1826_v29 = vld [vmem:[%s4436_s27 + $0x390] sm:$0xff]  ;;  %v2251_v53 = vmax.f32 %v2123_v42, 0.0  ;;  %v1988_v42 = vmul.f32 %v4443_v44, %v1838_v28 }
 0x2fc   : > { %2518 = vmatprep.mubr.f32.mxu0 %v2233_v39  ;;  %2743 = vmatprep.mubr.f32.mxu1 %v2235_v45  ;;  %v1975_v39 = vmul.f32 %v4430_v19, %v1825_v60  ;;  %v1974_v45 = vmul.f32 %v4440_v5, %v1824_v31  ;;  %v1976_v11 = vmul.f32 %v4443_v44, %v1826_v29  ;;  %v2248_v9 = vmax.f32 %v2120_v32, 0.0 }
 0x2fd   : > { %v2133_v60 = vadd.f32 %v4447_v20, %v1983_v47  ;;  %v2134_v29 = vadd.f32 %v4462_v4, %v1984_v27  ;;  %v2139_v52 = vadd.f32 %v4452_v8, %v1989_v40  ;;  %v2138_v32 = vadd.f32 %v4462_v4, %v1988_v42 }
 0x2fe   : > { %v2125_v22 = vadd.f32 %v4447_v20, %v1975_v39  ;;  %v2126_v49 = vadd.f32 %v4462_v4, %v1976_v11 }
 0x2ff   : > { %2519 = vmatmul.mubr.f32.gmra.mxu0 %v2232_v36  ;;  %2744 = vmatmul.mubr.f32.gmra.mxu1 %v2234_v25  ;;  %v1828_v36 = vld [vmem:[%s4436_s27 + $0x3a0] sm:$0xff]  ;;  %v1981_v25 = vmul.f32 %v4432_v1, %v1831_v56  ;;  %v2261_v39 = vmax.f32 %v2133_v60, 0.0  ;;  %v2262_v56 = vmax.f32 %v2134_v29, 0.0  ;;  %v2266_v11 = vmax.f32 %v2138_v32, 0.0 }
 0x300   : > { %2523 = vmatprep.mubr.f32.mxu0 %v2237_v10  ;;  %2748 = vmatprep.mubr.f32.mxu1 %v2239_v48  ;;  %v1830_v10 = vld [vmem:[%s4436_s27 + $0x3b0] sm:$0xff]  ;;  %v2124_v48 = vadd.f32 %v4459_v37, %v1974_v45  ;;  %v1978_v30 = vmul.f32 %v4440_v5, %v1828_v36  ;;  %v2253_v2 = vmax.f32 %v2125_v22, 0.0 }
 0x301   : > { %v1980_v57 = vmul.f32 %v4443_v44, %v1830_v10  ;;  %v2131_v14 = vadd.f32 %v4452_v8, %v1981_v25  ;;  %v2267_v44 = vmax.f32 %v2139_v52, 0.0 }
 0x302   : > { %v2252_v43 = vmax.f32 %v2124_v48, 0.0 }
 0x303   : > { %2524 = vmatmul.mubr.f32.gmra.mxu0 %v2236_v26  ;;  %2749 = vmatmul.mubr.f32.gmra.mxu1 %v2238_v58  ;;  %v1832_v26 = vld [vmem:[%s4436_s27 + $0x3c0] sm:$0xff]  ;;  %v1985_v58 = vmul.f32 %v4432_v1, %v1835_v41  ;;  %v2130_v55 = vadd.f32 %v4462_v4, %v1980_v57  ;;  %v2137_v1 = vadd.f32 %v4447_v20, %v1987_v3 }
 0x304   : > { %2528 = vmatprep.mubr.f32.mxu0 %v2241_v24  ;;  %2753 = vmatprep.mubr.f32.mxu1 %v2243_v6  ;;  %v2254_v24 = vmax.f32 %v2126_v49, 0.0  ;;  %v2128_v6 = vadd.f32 %v4459_v37, %v1978_v30  ;;  %v1982_v50 = vmul.f32 %v4440_v5, %v1832_v26  ;;  %v4851_v20 = vld [vmem:[%s5042_s8] ss:$0 sm:$0xff] }
 0x305   : > { %v2258_v31 = vmax.f32 %v2130_v55, 0.0 }
 0x306   : > { %v2256_v54 = vmax.f32 %v2128_v6, 0.0  ;;  %v2132_v7 = vadd.f32 %v4459_v37, %v1982_v50 }
 0x307   : > { %2529 = vmatmul.mubr.f32.gmra.mxu0 %v2240_v18  ;;  %2754 = vmatmul.mubr.f32.gmra.mxu1 %v2242_v61  ;;  %v2259_v18 = vmax.f32 %v2131_v14, 0.0  ;;  %v2135_v61 = vadd.f32 %v4452_v8, %v1985_v58 }
 0x308   : > { %2533 = vmatprep.mubr.f32.mxu0 %v2245_v17  ;;  %2758 = vmatprep.mubr.f32.mxu1 %v2247_v59  ;;  %v1836_v17 = vld [vmem:[%s4436_s27 + $0x3e0] sm:$0xff]  ;;  %v2260_v34 = vmax.f32 %v2132_v7, 0.0 }
 0x309   : > { %v1986_v59 = vmul.f32 %v4440_v5, %v1836_v17  ;;  %v2263_v19 = vmax.f32 %v2135_v61, 0.0  ;;  %v2265_v5 = vmax.f32 %v2137_v1, 0.0 }
 0x30b   : > { %2534 = vmatmul.mubr.f32.gmra.mxu0 %v2244_v16  ;;  %2759 = vmatmul.mubr.f32.gmra.mxu1 %v2246_v35  ;;  %v2136_v16 = vadd.f32 %v4459_v37, %v1986_v59 }
 0x30c   : > { %2538 = vmatprep.mubr.f32.mxu0 %v2249_v23  ;;  %2763 = vmatprep.mubr.f32.mxu1 %v2251_v53 }
 0x30d   : > { %v2264_v45 = vmax.f32 %v2136_v16, 0.0 }
 0x30f   : > { %2539 = vmatmul.mubr.f32.gmra.mxu0 %v2248_v9  ;;  %2764 = vmatmul.mubr.f32.gmra.mxu1 %v2250_v15 }
 0x310   : > { %2543 = vmatprep.mubr.f32.mxu0 %v2253_v2  ;;  %2768 = vmatprep.mubr.f32.mxu1 %v2255_v12 }
 0x313   : > { %2544 = vmatmul.mubr.f32.gmra.mxu0 %v2252_v43  ;;  %2769 = vmatmul.mubr.f32.gmra.mxu1 %v2254_v24 }
 0x314   : > { %2548 = vmatprep.mubr.f32.mxu0 %v2257_v0  ;;  %2773 = vmatprep.mubr.f32.mxu1 %v2259_v18 }
 0x317   : > { %2549 = vmatmul.mubr.f32.gmra.mxu0 %v2256_v54  ;;  %2774 = vmatmul.mubr.f32.gmra.mxu1 %v2258_v31 }
 0x318   : > { %2553 = vmatprep.mubr.f32.mxu0 %v2261_v39  ;;  %2778 = vmatprep.mubr.f32.mxu1 %v2263_v19 }
 0x31b   : > { %2554 = vmatmul.mubr.f32.gmra.mxu0 %v2260_v34  ;;  %2779 = vmatmul.mubr.f32.gmra.mxu1 %v2262_v56 }
 0x31c   : > { %2558 = vmatprep.mubr.f32.mxu0 %v2265_v5  ;;  %2783 = vmatprep.mubr.f32.mxu1 %v2267_v44 }
 0x31f   : > { %2559 = vmatmul.mubr.f32.gmra.mxu0 %v2264_v45  ;;  %2784 = vmatmul.mubr.f32.gmra.mxu1 %v2266_v11 }
 0x363   : > { %v2405_v8 = vpop.f32.mrf.mxu0  ;;  %v2630_v37 = vpop.f32.mrf.mxu1 }
 0x364   : > { %v2406_v4 = vadd.f32 %v4851_v20, %v2405_v8 }
 0x365   : > { %v2407_v35 = vpop.f32.mrf.mxu0  ;;  %v2632_v23 = vpop.f32.mrf.mxu1 }
 0x366   : > { %v2631_v46 = vadd.f32 %v2630_v37, %v2406_v4 }
 0x367   : > { %v2410_v38 = vpop.f32.mrf.mxu0  ;;  %v2635_v36 = vpop.f32.mrf.mxu1 }
 0x368   : > { %2789 = vst [vmem:[%s3610_s21] sm:$0xff] %v2631_v46  ;;  %v2411_v53 = vadd.f32 %v4851_v20, %v2410_v38 }
 0x369   : > { %v2412_v22 = vpop.f32.mrf.mxu0  ;;  %v2637_v51 = vpop.f32.mrf.mxu1 }
 0x36a   : > { %v2636_v25 = vadd.f32 %v2635_v36, %v2411_v53 }
 0x36b   : > { %v2415_v10 = vpop.f32.mrf.mxu0  ;;  %v2640_v63 = vpop.f32.mrf.mxu1 }
 0x36c   : > { %2790 = vst [vmem:[%s3610_s21 + $0x8] sm:$0xff] %v2636_v25  ;;  %v2416_v41 = vadd.f32 %v4851_v20, %v2415_v10 }
 0x36d   : > { %v2417_v9 = vpop.f32.mrf.mxu0  ;;  %v2642_v48 = vpop.f32.mrf.mxu1 }
 0x36e   : > { %v2641_v49 = vadd.f32 %v2640_v63, %v2416_v41 }
 0x36f   : > { %v2420_v30 = vpop.f32.mrf.mxu0  ;;  %v2645_v15 = vpop.f32.mrf.mxu1 }
 0x370   : > { %2791 = vst [vmem:[%s3610_s21 + $0x10] sm:$0xff] %v2641_v49  ;;  %v2421_v62 = vadd.f32 %v4851_v20, %v2420_v30 }
 0x371   : > { %v2422_v57 = vpop.f32.mrf.mxu0  ;;  %v2647_v47 = vpop.f32.mrf.mxu1 }
 0x372   : > { %v2646_v26 = vadd.f32 %v2645_v15, %v2421_v62 }
 0x373   : > { %v2425_v2 = vpop.f32.mrf.mxu0  ;;  %v2650_v12 = vpop.f32.mrf.mxu1 }
 0x374   : > { %2792 = vst [vmem:[%s3610_s21 + $0x18] sm:$0xff] %v2646_v26  ;;  %v2426_v14 = vadd.f32 %v4851_v20, %v2425_v2 }
 0x375   : > { %v2427_v58 = vpop.f32.mrf.mxu0  ;;  %v2652_v33 = vpop.f32.mrf.mxu1 }
 0x376   : > { %v2651_v21 = vadd.f32 %v2650_v12, %v2426_v14 }
 0x377   : > { %v2430_v13 = vpop.f32.mrf.mxu0  ;;  %v2655_v43 = vpop.f32.mrf.mxu1 }
 0x378   : > { %2793 = vst [vmem:[%s3610_s21 + $0x20] sm:$0xff] %v2651_v21  ;;  %v2431_v24 = vadd.f32 %v4851_v20, %v2430_v13 }
 0x379   : > { %v2432_v6 = vpop.f32.mrf.mxu0  ;;  %v2657_v50 = vpop.f32.mrf.mxu1 }
 0x37a   : > { %v2656_v0 = vadd.f32 %v2655_v43, %v2431_v24 }
 0x37b   : > { %v2435_v55 = vpop.f32.mrf.mxu0  ;;  %v2660_v60 = vpop.f32.mrf.mxu1 }
 0x37c   : > { %2794 = vst [vmem:[%s3610_s21 + $0x28] sm:$0xff] %v2656_v0  ;;  %v2436_v27 = vadd.f32 %v4851_v20, %v2435_v55 }
 0x37d   : > { %v2437_v18 = vpop.f32.mrf.mxu0  ;;  %v2662_v61 = vpop.f32.mrf.mxu1 }
 0x37e   : > { %v2661_v3 = vadd.f32 %v2660_v60, %v2436_v27 }
 0x37f   : > { %v2440_v40 = vpop.f32.mrf.mxu0  ;;  %v2665_v17 = vpop.f32.mrf.mxu1 }
 0x380   : > { %2795 = vst [vmem:[%s3610_s21 + $0x30] sm:$0xff] %v2661_v3  ;;  %v2441_v28 = vadd.f32 %v4851_v20, %v2440_v40 }
 0x381   : > { %v2442_v54 = vpop.f32.mrf.mxu0  ;;  %v2667_v7 = vpop.f32.mrf.mxu1 }
 0x382   : > { %v2666_v31 = vadd.f32 %v2665_v17, %v2441_v28 }
 0x383   : > { %v2445_v29 = vpop.f32.mrf.mxu0  ;;  %v2670_v59 = vpop.f32.mrf.mxu1 }
 0x384   : > { %2796 = vst [vmem:[%s3610_s21 + $0x38] sm:$0xff] %v2666_v31  ;;  %v2446_v42 = vadd.f32 %v4851_v20, %v2445_v29 }
 0x385   : > { %v2447_v39 = vpop.f32.mrf.mxu0  ;;  %v2672_v19 = vpop.f32.mrf.mxu1 }
 0x386   : > { %v2671_v1 = vadd.f32 %v2670_v59, %v2446_v42 }
 0x387   : > { %v2450_v52 = vpop.f32.mrf.mxu0  ;;  %v2675_v34 = vpop.f32.mrf.mxu1 }
 0x388   : > { %2797 = vst [vmem:[%s3610_s21 + $0x40] sm:$0xff] %v2671_v1  ;;  %v2451_v56 = vadd.f32 %v4851_v20, %v2450_v52 }
 0x389   : > { %v2452_v16 = vpop.f32.mrf.mxu0  ;;  %v2677_v32 = vpop.f32.mrf.mxu1 }
 0x38a   : > { %v2676_v5 = vadd.f32 %v2675_v34, %v2451_v56 }
 0x38b   : > { %v2455_v44 = vpop.f32.mrf.mxu0  ;;  %v2680_v45 = vpop.f32.mrf.mxu1 }
 0x38c   : > { %2798 = vst [vmem:[%s3610_s21 + $0x48] sm:$0xff] %v2676_v5  ;;  %v2456_v11 = vadd.f32 %v4851_v20, %v2455_v44 }
 0x38d   : > { %v2457_v8 = vpop.f32.mrf.mxu0  ;;  %v2682_v37 = vpop.f32.mrf.mxu1 }
 0x38e   : > { %v2681_v4 = vadd.f32 %v2680_v45, %v2456_v11 }
 0x38f   : > { %v2460_v35 = vpop.f32.mrf.mxu0  ;;  %v2685_v23 = vpop.f32.mrf.mxu1 }
 0x390   : > { %2799 = vst [vmem:[%s3610_s21 + $0x50] sm:$0xff] %v2681_v4  ;;  %v2461_v46 = vadd.f32 %v4851_v20, %v2460_v35 }
 0x391   : > { %v2462_v38 = vpop.f32.mrf.mxu0  ;;  %v2687_v36 = vpop.f32.mrf.mxu1 }
 0x392   : > { %v2686_v53 = vadd.f32 %v2685_v23, %v2461_v46 }
 0x393   : > { %v2465_v22 = vpop.f32.mrf.mxu0  ;;  %v2690_v51 = vpop.f32.mrf.mxu1 }
 0x394   : > { %2800 = vst [vmem:[%s3610_s21 + $0x58] sm:$0xff] %v2686_v53  ;;  %v2466_v25 = vadd.f32 %v4851_v20, %v2465_v22 }
 0x395   : > { %v2467_v10 = vpop.f32.mrf.mxu0  ;;  %v2692_v63 = vpop.f32.mrf.mxu1 }
 0x396   : > { %v2691_v41 = vadd.f32 %v2690_v51, %v2466_v25 }
 0x397   : > { %v2470_v9 = vpop.f32.mrf.mxu0  ;;  %v2695_v48 = vpop.f32.mrf.mxu1 }
 0x398   : > { %2801 = vst [vmem:[%s3610_s21 + $0x60] sm:$0xff] %v2691_v41  ;;  %v2471_v49 = vadd.f32 %v4851_v20, %v2470_v9 }
 0x399   : > { %v2472_v30 = vpop.f32.mrf.mxu0  ;;  %v2697_v15 = vpop.f32.mrf.mxu1 }
 0x39a   : > { %v2696_v62 = vadd.f32 %v2695_v48, %v2471_v49 }
 0x39b   : > { %v2475_v57 = vpop.f32.mrf.mxu0  ;;  %v2700_v47 = vpop.f32.mrf.mxu1 }
 0x39c   : > { %2802 = vst [vmem:[%s3610_s21 + $0x68] sm:$0xff] %v2696_v62  ;;  %v2476_v26 = vadd.f32 %v4851_v20, %v2475_v57 }
 0x39d   : > { %v2477_v2 = vpop.f32.mrf.mxu0  ;;  %v2702_v12 = vpop.f32.mrf.mxu1 }
 0x39e   : > { %v2701_v14 = vadd.f32 %v2700_v47, %v2476_v26 }
 0x39f   : > { %v2480_v58 = vpop.f32.mrf.mxu0  ;;  %v2705_v33 = vpop.f32.mrf.mxu1 }
 0x3a0   : > { %2803 = vst [vmem:[%s3610_s21 + $0x70] sm:$0xff] %v2701_v14  ;;  %v2481_v21 = vadd.f32 %v4851_v20, %v2480_v58 }
 0x3a1   : > { %v2482_v13 = vpop.f32.mrf.mxu0  ;;  %v2707_v43 = vpop.f32.mrf.mxu1 }
 0x3a2   : > { %v2706_v24 = vadd.f32 %v2705_v33, %v2481_v21 }
 0x3a3   : > { %v2485_v6 = vpop.f32.mrf.mxu0  ;;  %v2710_v50 = vpop.f32.mrf.mxu1 }
 0x3a4   : > { %2804 = vst [vmem:[%s3610_s21 + $0x78] sm:$0xff] %v2706_v24  ;;  %v2486_v0 = vadd.f32 %v4851_v20, %v2485_v6 }
 0x3a5   : > { %v2487_v55 = vpop.f32.mrf.mxu0  ;;  %v2712_v60 = vpop.f32.mrf.mxu1 }
 0x3a6   : > { %v2711_v27 = vadd.f32 %v2710_v50, %v2486_v0 }
 0x3a7   : > { %v2490_v18 = vpop.f32.mrf.mxu0  ;;  %v2715_v61 = vpop.f32.mrf.mxu1 }
 0x3a8   : > { %2805 = vst [vmem:[%s3610_s21 + $0x80] sm:$0xff] %v2711_v27  ;;  %v2491_v3 = vadd.f32 %v4851_v20, %v2490_v18 }
 0x3a9   : > { %v2492_v40 = vpop.f32.mrf.mxu0  ;;  %v2717_v17 = vpop.f32.mrf.mxu1 }
 0x3aa   : > { %v2716_v28 = vadd.f32 %v2715_v61, %v2491_v3 }
 0x3ab   : > { %v2495_v54 = vpop.f32.mrf.mxu0  ;;  %v2720_v7 = vpop.f32.mrf.mxu1 }
 0x3ac   : > { %2806 = vst [vmem:[%s3610_s21 + $0x88] sm:$0xff] %v2716_v28  ;;  %v2496_v31 = vadd.f32 %v4851_v20, %v2495_v54 }
 0x3ad   : > { %v2497_v29 = vpop.f32.mrf.mxu0  ;;  %v2722_v59 = vpop.f32.mrf.mxu1 }
 0x3ae   : > { %v2721_v42 = vadd.f32 %v2720_v7, %v2496_v31 }
 0x3af   : > { %v2500_v39 = vpop.f32.mrf.mxu0  ;;  %v2725_v19 = vpop.f32.mrf.mxu1 }
 0x3b0   : > { %2807 = vst [vmem:[%s3610_s21 + $0x90] sm:$0xff] %v2721_v42  ;;  %v2501_v1 = vadd.f32 %v4851_v20, %v2500_v39 }
 0x3b1   : > { %v2502_v52 = vpop.f32.mrf.mxu0  ;;  %v2727_v34 = vpop.f32.mrf.mxu1 }
 0x3b2   : > { %v2726_v56 = vadd.f32 %v2725_v19, %v2501_v1 }
 0x3b3   : > { %v2505_v16 = vpop.f32.mrf.mxu0  ;;  %v2730_v32 = vpop.f32.mrf.mxu1 }
 0x3b4   : > { %2808 = vst [vmem:[%s3610_s21 + $0x98] sm:$0xff] %v2726_v56  ;;  %v2506_v5 = vadd.f32 %v4851_v20, %v2505_v16 }
 0x3b5   : > { %v2507_v44 = vpop.f32.mrf.mxu0  ;;  %v2732_v45 = vpop.f32.mrf.mxu1 }
 0x3b6   : > { %v2731_v11 = vadd.f32 %v2730_v32, %v2506_v5 }
 0x3b7   : > { %v2510_v8 = vpop.f32.mrf.mxu0  ;;  %v2735_v37 = vpop.f32.mrf.mxu1 }
 0x3b8   : > { %2809 = vst [vmem:[%s3610_s21 + $0xa0] sm:$0xff] %v2731_v11  ;;  %v2511_v4 = vadd.f32 %v4851_v20, %v2510_v8 }
 0x3b9   : > { %v2512_v35 = vpop.f32.mrf.mxu0  ;;  %v2737_v23 = vpop.f32.mrf.mxu1 }
 0x3ba   : > { %v2736_v46 = vadd.f32 %v2735_v37, %v2511_v4 }
 0x3bb   : > { %v2515_v38 = vpop.f32.mrf.mxu0  ;;  %v2740_v36 = vpop.f32.mrf.mxu1 }
 0x3bc   : > { %2810 = vst [vmem:[%s3610_s21 + $0xa8] sm:$0xff] %v2736_v46  ;;  %v2516_v53 = vadd.f32 %v4851_v20, %v2515_v38 }
 0x3bd   : > { %v2517_v22 = vpop.f32.mrf.mxu0  ;;  %v2742_v51 = vpop.f32.mrf.mxu1 }
 0x3be   : > { %v2741_v25 = vadd.f32 %v2740_v36, %v2516_v53 }
 0x3bf   : > { %v2520_v10 = vpop.f32.mrf.mxu0  ;;  %v2745_v63 = vpop.f32.mrf.mxu1 }
 0x3c0   : > { %2811 = vst [vmem:[%s3610_s21 + $0xb0] sm:$0xff] %v2741_v25  ;;  %v2521_v41 = vadd.f32 %v4851_v20, %v2520_v10 }
 0x3c1   : > { %v2522_v9 = vpop.f32.mrf.mxu0  ;;  %v2747_v48 = vpop.f32.mrf.mxu1 }
 0x3c2   : > { %v2746_v49 = vadd.f32 %v2745_v63, %v2521_v41 }
 0x3c3   : > { %v2525_v30 = vpop.f32.mrf.mxu0  ;;  %v2750_v15 = vpop.f32.mrf.mxu1 }
 0x3c4   : > { %2812 = vst [vmem:[%s3610_s21 + $0xb8] sm:$0xff] %v2746_v49  ;;  %v2526_v62 = vadd.f32 %v4851_v20, %v2525_v30 }
 0x3c5   : > { %v2527_v57 = vpop.f32.mrf.mxu0  ;;  %v2752_v47 = vpop.f32.mrf.mxu1 }
 0x3c6   : > { %v2751_v26 = vadd.f32 %v2750_v15, %v2526_v62 }
 0x3c7   : > { %v2530_v2 = vpop.f32.mrf.mxu0  ;;  %v2755_v12 = vpop.f32.mrf.mxu1 }
 0x3c8   : > { %2813 = vst [vmem:[%s3610_s21 + $0xc0] sm:$0xff] %v2751_v26  ;;  %v2531_v14 = vadd.f32 %v4851_v20, %v2530_v2 }
 0x3c9   : > { %v2532_v58 = vpop.f32.mrf.mxu0  ;;  %v2757_v33 = vpop.f32.mrf.mxu1 }
 0x3ca   : > { %v2756_v21 = vadd.f32 %v2755_v12, %v2531_v14 }
 0x3cb   : > { %v2535_v13 = vpop.f32.mrf.mxu0  ;;  %v2760_v43 = vpop.f32.mrf.mxu1 }
 0x3cc   : > { %2814 = vst [vmem:[%s3610_s21 + $0xc8] sm:$0xff] %v2756_v21  ;;  %v2536_v24 = vadd.f32 %v4851_v20, %v2535_v13 }
 0x3cd   : > { %v2537_v6 = vpop.f32.mrf.mxu0  ;;  %v2762_v50 = vpop.f32.mrf.mxu1 }
 0x3ce   : > { %v2761_v0 = vadd.f32 %v2760_v43, %v2536_v24 }
 0x3cf   : > { %v2540_v55 = vpop.f32.mrf.mxu0  ;;  %v2765_v60 = vpop.f32.mrf.mxu1 }
 0x3d0   : > { %2815 = vst [vmem:[%s3610_s21 + $0xd0] sm:$0xff] %v2761_v0  ;;  %v2541_v27 = vadd.f32 %v4851_v20, %v2540_v55 }
 0x3d1   : > { %v2542_v18 = vpop.f32.mrf.mxu0  ;;  %v2767_v61 = vpop.f32.mrf.mxu1 }
 0x3d2   : > { %v2766_v3 = vadd.f32 %v2765_v60, %v2541_v27 }
 0x3d3   : > { %v2545_v40 = vpop.f32.mrf.mxu0  ;;  %v2770_v17 = vpop.f32.mrf.mxu1 }
 0x3d4   : > { %2816 = vst [vmem:[%s3610_s21 + $0xd8] sm:$0xff] %v2766_v3  ;;  %v2546_v28 = vadd.f32 %v4851_v20, %v2545_v40 }
 0x3d5   : > { %v2547_v54 = vpop.f32.mrf.mxu0  ;;  %v2772_v7 = vpop.f32.mrf.mxu1 }
 0x3d6   : > { %v2771_v31 = vadd.f32 %v2770_v17, %v2546_v28 }
 0x3d7   : > { %v2550_v29 = vpop.f32.mrf.mxu0  ;;  %v2775_v59 = vpop.f32.mrf.mxu1 }
 0x3d8   : > { %2817 = vst [vmem:[%s3610_s21 + $0xe0] sm:$0xff] %v2771_v31  ;;  %v2551_v42 = vadd.f32 %v4851_v20, %v2550_v29 }
 0x3d9   : > { %v2552_v39 = vpop.f32.mrf.mxu0  ;;  %v2777_v19 = vpop.f32.mrf.mxu1 }
 0x3da   : > { %v2776_v1 = vadd.f32 %v2775_v59, %v2551_v42 }
 0x3db   : > { %v2555_v52 = vpop.f32.mrf.mxu0  ;;  %v2780_v34 = vpop.f32.mrf.mxu1 }
 0x3dc   : > { %2818 = vst [vmem:[%s3610_s21 + $0xe8] sm:$0xff] %v2776_v1  ;;  %v2556_v56 = vadd.f32 %v4851_v20, %v2555_v52 }
 0x3dd   : > { %v2557_v16 = vpop.f32.mrf.mxu0  ;;  %v2782_v32 = vpop.f32.mrf.mxu1 }
 0x3de   : > { %v2781_v5 = vadd.f32 %v2780_v34, %v2556_v56 }
 0x3df   : > { %v2560_v44 = vpop.f32.mrf.mxu0  ;;  %v2785_v45 = vpop.f32.mrf.mxu1 }
 0x3e0   : > { %2819 = vst [vmem:[%s3610_s21 + $0xf0] sm:$0xff] %v2781_v5  ;;  %v2561_v11 = vadd.f32 %v4851_v20, %v2560_v44 }
 0x3e1   : > { %v2562_v8 = vpop.f32.mrf.mxu0  ;;  %v2787_v37 = vpop.f32.mrf.mxu1 }
 0x3e2   : > { %v2786_v4 = vadd.f32 %v2785_v45, %v2561_v11 }
 0x3e4   : > { %2820 = vst [vmem:[%s3610_s21 + $0xf8] sm:$0xff] %v2786_v4 }
 0x3e5 PF: > { %s5043_s14 = sld [smem:[#allocation22_spill]]  ;;  %s2836_s10 = sshll.u32 %s3610_s21, 4  ;;  %s4920_s10 = int_to_ptr.vmem [resolvable:$true] %s2836_s10 }
 0x3e6   : > { %s5044_s5 = sld [smem:[#allocation21_spill]]  ;;  %s4929_s4 = scalar_lea.sflag [#allocation9], %s330_s15 }
 0x3e7   : > { %s5045_s28 = sld [smem:[#allocation25_spill]]  ;;  %s3240_s1 = scalar_lea.vmem %s4920_s10, 4096 }
 0x3e8   : > { %s5046_s18 = sld [smem:[#allocation32_spill]]  ;;  %p3241_p2 = scmp.ne.s32.totalorder %s4920_s10, %s3240_s1 }
 0x3e9   : > { %s3383_s21 = smov [#allocation15]  }
 0x3ea   : > { %s3244_s13 = sshll.u32 %s3383_s21, 4  ;;  %s3245_s13 = int_to_ptr.vmem [resolvable:$false] %s3244_s13 }
 0x3eb   : > { %s3246_s3 = scalar_lea.vmem %s3245_s13, 8192  ;;  %p3247_p0 = scmp.lt.s32.totalorder %s4920_s10, %s3245_s13 }
 0x3ec   : > { %s2829_s12 = smul.u32 %s5044_s5, %s5043_s14  ;;  %p3248_p4 = scmp.lt.s32.totalorder %s3246_s3, %s3240_s1 }
 0x3ed   : > { %p5047_p1 = scmp.ne.s32.totalorder %s5045_s28, 0 }
 0x3ee   : > { %s2987_s17 = sshll.u32 %s2829_s12, 12  ;;  %p3249_p13 = por %p3248_p4, %p3247_p0 }
 0x3ef   : > { %s4925_s2 = scalar_lea.hbm %s5046_s18, %s2987_s17  ;;  %p3242_p3 = pnand %p3241_p2, %p5047_p1 }
 0x3f1   : > { %p3243_p7 = pneg %p3242_p3 }
 0x3f3   : > { %p3250_p6 = pnand %p3249_p13, %p3243_p7 }
 0x3f5   : > { %3253 = shalt.err (!%p3250_p6)
}
 0x3f6   : > { %s3254_s15 = scalar_lea.hbm %s4925_s2, 4096  ;;  %s3258_s9 = scalar_lea.hbm %s5046_s18, 8192 }
 0x3f7   : > { %p3255_p11 = scmp.ne.s32.totalorder %s4925_s2, %s3254_s15  ;;  %p3259_p10 = scmp.lt.s32.totalorder %s4925_s2, %s5046_s18 }
 0x3f8   : > { %p3260_p9 = scmp.lt.s32.totalorder %s3258_s9, %s3254_s15 }
 0x3f9   : > { %p3256_p5 = pnand %p3255_p11, %p5047_p1 }
 0x3fa   : > { %p3261_p12 = por %p3260_p9, %p3259_p10 }
 0x3fb   : > { %p3257_p8 = pneg %p3256_p5 }
 0x3fd   : > { %p3262_p2 = pnand %p3261_p12, %p3257_p8 }
 0x3ff   : > { %3265 = shalt.err (!%p3262_p2)
}
 0x400   : > { %s3384_s14 = smov 128   ;;  %s3385_s5 = smov 8  }
 0x401   : > { %3002 = dma.vmem_to_hbm [thread:$0]  (%p5047_p1), %s4920_s10, 4096, %s4925_s2, %s4929_s4, %s3384_s14, %s3384_s14, %s3385_s5  }
 0x402 PF: > { %s5048_s12 = sld [smem:[#allocation20_spill]]  ;;  %p3029_p3 = scmp.ge.s32.totalorder %s3368_s7, 2 }
 0x403   : > { %s5049_s17 = sld [smem:[#allocation26_spill]] }
 0x408   : > { %s2851_s20 = sand.u32 1, %s5048_s12  }
 0x409   : > { %p5050_p7 = scmp.ne.s32.totalorder %s5049_s17, 0  ;;  %s2852_s24 = scalar_lea.sflag [#allocation9], %s2851_s20 }
 0x40b   : > { %p3019_p0 = pnand %p3029_p3, %p5050_p7 }
 0x40d   : > { %p3020_p4 = pneg %p3019_p0 }
 0x40f   : > { %3323 = dma.done.wait (%p3020_p4), %s2852_s24, 4096  }
 0x410   : > { %3325 = vsyncadd (%p3020_p4), %s2852_s24, 4294963200  ;;  %s24_s7 = sadd.s32 1, %s3368_s7   ;;  %s5051_s27 = sld [smem:[#allocation23_spill]] }
 0x411   : > { %p21_p13 = scmp.ge.s32.totalorder %s24_s7, 6   ;;  %s5052_s28 = sld [smem:[#allocation24_spill]] }
 0x412   : > { %s5053_s21 = smov %s3332_s22  ;;  %s5054_s22 = smov %s3336_s23 }
 0x413   : > { %s5055_s23 = smov %s3568_s30  ;;  %s5056_s24 = smov %s3344_s25 }
 0x414   : > { %s5057_s25 = smov %s3348_s26  ;;  %s5058_s26 = smov %s3571_s29 }
 0x415   : > { %s5059_s29 = smov %s5062_s16  ;;  %s5060_s30 = smov %s5066_s19 }
 0x416   :  { %23 = sbr.rel (!%p21_p13) target bundleno = 18 (0x12), region = 119 }
 0x41b   :  { %2857 = vsyncpa [#allocation8], 1 }
 0x41c   :  { %2859 = vsyncpa [#allocation8 + $0x1], 1 }
 0x41d   :  { %2860 = vsyncpa [#allocation11], 1 }
 0x41e   :  { %2861 = vsyncpa [#allocation14], 1 }
 0x41f   :  { %2862 = vsyncpa [#allocation9], 1 }
 0x420   :  { %2864 = vsyncpa [#allocation9 + $0x1], 1 }

</bundles_post_ra>
